<compile_context>
chip_gen: v7x
topology: tpu7x:2x2x1
jax: 0.10.0
libtpu: 0.0.40
codegen_flags: <defaults>
</compile_context>

<pallas_src>
import jax
import jax.numpy as jnp
from jax.experimental import pallas as pl
from jax.experimental.pallas import tpu as pltpu

EPS = 1e-5  # CustomBatchNormAutograd default eps

D_IN, H1, H2, D_OUT = 3 * 32 * 32, 400, 200, 10
H1P, H2P, D_OUTP = 512, 256, 128      # lane-dense (multiple-of-128) padded feature dims
VEC_ROWS = 8                          # rows of the packed bias/gamma/beta slab


def _batchnorm_folded(h, gamma, beta):
    """BatchNorm over the batch axis (biased variance), folded into one affine pass."""
    mu = jnp.mean(h, axis=0, keepdims=True)
    ex2 = jnp.mean(h * h, axis=0, keepdims=True)
    var = jnp.maximum(ex2 - mu * mu, 0.0)          # clamp f32 cancellation
    s = gamma * jax.lax.rsqrt(var + EPS)           # EUP rsqrt (free slot)
    return h * s + (beta - mu * s)                 # single VPU sweep over h


def mlp_kernel(x_ref, w1_ref, w2_ref, w3_ref, vec_ref, o_ref):
    # x arrives as f32; cast to bf16 only here, right before the MXU.
    x = x_ref[...].astype(jnp.bfloat16)                                   # (B, 3072)

    # Unpack the single bias/BN slab (rows: b1,g1,be1,b2,g2,be2,b3,unused).
    vecs = vec_ref[...]                                                   # (8, 512) f32
    b1, g1, be1 = vecs[0:1, :], vecs[1:2, :], vecs[2:3, :]
    b2, g2, be2 = vecs[3:4, :H2P], vecs[4:5, :H2P], vecs[5:6, :H2P]
    b3 = vecs[6:7, :D_OUTP]

    # linear1 + ReLU + batch_norm                                          (B, 512)
    h1 = jnp.dot(x, w1_ref[...], preferred_element_type=jnp.float32) + b1
    h1 = _batchnorm_folded(jnp.maximum(h1, 0.0), g1, be1)

    # linear2 + ReLU + batch_norm1                                         (B, 256)
    h2 = jnp.dot(h1.astype(jnp.bfloat16), w2_ref[...],
                 preferred_element_type=jnp.float32) + b2
    h2 = _batchnorm_folded(jnp.maximum(h2, 0.0), g2, be2)

    # linear4 (lane-dense padded output; real logits are columns [:10])    (B, 128)
    y = jnp.dot(h2.astype(jnp.bfloat16), w3_ref[...],
                preferred_element_type=jnp.float32) + b3
    o_ref[...] = y.astype(o_ref.dtype)


def two_layer_net_forward_batched(xs, params):
    """xs: (R, B, 3072) f32 — R independent requests (BN stats are per request).

    Returns the padded (R, B, 128) logit slab; columns [:10] are the real logits.
    """
    R, B, d_in = xs.shape
    assert d_in == D_IN

    def resident(shape):
        # Constant block index across the request grid -> fetched into VMEM once.
        return pl.BlockSpec(shape, lambda r: (0, 0))

    return pl.pallas_call(
        mlp_kernel,
        out_shape=jax.ShapeDtypeStruct((R, B, D_OUTP), jnp.float32),
        grid=(R,),
        in_specs=[
            pl.BlockSpec((None, B, D_IN), lambda r: (r, 0, 0)),   # per-request x
            resident((D_IN, H1P)),                                # w1 (resident)
            resident((H1P, H2P)),                                 # w2 (resident)
            resident((H2P, D_OUTP)),                              # w3 (resident)
            resident((VEC_ROWS, H1P)),                            # packed bias/BN slab
        ],
        out_specs=pl.BlockSpec((None, B, D_OUTP), lambda r: (r, 0, 0)),
        compiler_params=pltpu.CompilerParams(
            dimension_semantics=("parallel",),
            vmem_limit_bytes=32 * 1024 * 1024,
        ),
    )(xs, params["w1"], params["w2"], params["w3"], params["vecs"])


def two_layer_net_forward(x, params):
    """Module-compatible API: x (B, 3072) f32 -> (B, 10) logits.

    (Serving hot paths should call two_layer_net_forward_batched and keep the padded
    (B, 128) slab, masking logits 10..127 downstream, to avoid this extra slice op.)
    """
    out_padded = two_layer_net_forward_batched(x[None], params)[0]
    return out_padded[:, :D_OUT]


def init_params(key):
    k1, k2, k3 = jax.random.split(key, 3)
    # PyTorch nn.Linear stores weight as (out, in); keep transposed (in, out) for x @ W.
    w1 = (jax.random.normal(k1, (H1, D_IN), jnp.float32) * 0.001).T       # (3072, 400)
    w2 = (jax.random.normal(k2, (H2, H1), jnp.float32) * 0.001).T         # (400, 200)
    w3 = (jax.random.normal(k3, (D_OUT, H2), jnp.float32) * 0.0001).T     # (200, 10)

    # Zero-pad to lane-dense shapes; padded gamma/beta/bias/weight-cols stay 0 so the
    # padded lanes are exactly 0 through linear+ReLU+BN.
    w1p = jnp.zeros((D_IN, H1P), jnp.float32).at[:, :H1].set(w1)
    w2p = jnp.zeros((H1P, H2P), jnp.float32).at[:H1, :H2].set(w2)
    w3p = jnp.zeros((H2P, D_OUTP), jnp.float32).at[:H2, :D_OUT].set(w3)

    # One (8, 512) f32 slab for all small per-feature vectors -> one DMA descriptor.
    # rows: 0=b1, 1=gamma1, 2=beta1, 3=b2, 4=gamma2, 5=beta2, 6=b3, 7=unused.
    vecs = jnp.zeros((VEC_ROWS, H1P), jnp.float32)
    vecs = vecs.at[1, :H1].set(1.0)   # gamma1 = 1 on real features, 0 on padding
    vecs = vecs.at[4, :H2].set(1.0)   # gamma2
    # biases / betas are 0 at init (matches the PyTorch module); already zero.

    # Padding invariants (must hold for the lane-padding trick to stay exact).
    assert float(jnp.abs(vecs[1, H1:]).max()) == 0.0, "padded gamma1 must be 0"
    assert float(jnp.abs(vecs[4, H2:]).max()) == 0.0, "padded gamma2 must be 0"
    assert float(jnp.abs(w1p[:, H1:]).max()) == 0.0, "padded w1 columns must be 0"

    return {
        "w1": w1p.astype(jnp.bfloat16),
        "w2": w2p.astype(jnp.bfloat16),
        "w3": w3p.astype(jnp.bfloat16),
        "vecs": vecs,
    }


def reference_forward(x, p):
    """Pure-JAX reference (single request) using the same bf16 casts as the kernel."""
    vecs = p["vecs"]
    b1, g1, be1 = vecs[0:1, :], vecs[1:2, :], vecs[2:3, :]
    b2, g2, be2 = vecs[3:4, :H2P], vecs[4:5, :H2P], vecs[5:6, :H2P]
    b3 = vecs[6:7, :D_OUTP]

    h1 = jnp.dot(x.astype(jnp.bfloat16), p["w1"],
                 preferred_element_type=jnp.float32) + b1
    h1 = _batchnorm_folded(jnp.maximum(h1, 0.0), g1, be1)
    h2 = jnp.dot(h1.astype(jnp.bfloat16), p["w2"],
                 preferred_element_type=jnp.float32) + b2
    h2 = _batchnorm_folded(jnp.maximum(h2, 0.0), g2, be2)
    return jnp.dot(h2.astype(jnp.bfloat16), p["w3"],
                   preferred_element_type=jnp.float32) + b3            # (B, 128) padded


if __name__ == "__main__":
    key = jax.random.PRNGKey(0)
    kx, kp = jax.random.split(key)
    R, B = 2, 8                                   # 2 independent requests of batch 8
    xs = jax.random.normal(kx, (R, B, D_IN), jnp.float32)
    params = init_params(kp)

    out_padded = two_layer_net_forward_batched(xs, params)
    out_padded = jax.block_until_ready(out_padded)
    assert out_padded.shape == (R, B, D_OUTP)

    ref = jnp.stack([reference_forward(xs[r], params) for r in range(R)])
    assert jnp.allclose(out_padded, ref, atol=1e-4, rtol=1e-2), "mismatch vs JAX reference"

    # Module-compatible single-batch API returning (B, 10) logits.
    logits = jax.block_until_ready(two_layer_net_forward(xs[0], params))
    assert logits.shape == (B, D_OUT)
    assert jnp.allclose(logits, ref[0, :, :D_OUT], atol=1e-4, rtol=1e-2)

    print("KERNEL_OK")
</pallas_src>

<mosaic_0001>
module attributes {stable_mosaic.version = 11 : i64} {
  func.func @mlp_kernel(%arg0: i32, %arg1: memref<1x8x3072xf32, #tpu.memory_space<vmem>>, %arg2: memref<3072x512xbf16, #tpu.memory_space<vmem>>, %arg3: memref<512x256xbf16, #tpu.memory_space<vmem>>, %arg4: memref<256x128xbf16, #tpu.memory_space<vmem>>, %arg5: memref<8x512xf32, #tpu.memory_space<vmem>>, %arg6: memref<1x8x128xf32, #tpu.memory_space<vmem>>) attributes {dimension_semantics = [#tpu.dimension_semantics<parallel>], iteration_bounds = array<i64: 2>, scalar_prefetch = 0 : i64, scratch_operands = 0 : i64, tpu.core_type = #tpu.core_type<tc>, window_params = [{transform_indices = @transform_0, window_bounds = array<i64: 1, 8, 3072>}, {pipeline_mode = #tpu.pipeline_mode<synchronous>, transform_indices = @transform_1, window_bounds = array<i64: 3072, 512>}, {pipeline_mode = #tpu.pipeline_mode<synchronous>, transform_indices = @transform_2, window_bounds = array<i64: 512, 256>}, {pipeline_mode = #tpu.pipeline_mode<synchronous>, transform_indices = @transform_3, window_bounds = array<i64: 256, 128>}, {pipeline_mode = #tpu.pipeline_mode<synchronous>, transform_indices = @transform_4, window_bounds = array<i64: 8, 512>}, {transform_indices = @transform_5, window_bounds = array<i64: 1, 8, 128>}]} {
    %c0 = arith.constant 0 : index
    %c0_0 = arith.constant 0 : index
    %c0_1 = arith.constant 0 : index
    %0 = vector.load %arg1[%c0, %c0_0, %c0_1] : memref<1x8x3072xf32, #tpu.memory_space<vmem>>, vector<1x8x3072xf32>
    %1 = vector.shape_cast %0 : vector<1x8x3072xf32> to vector<8x3072xf32>
    %2 = arith.truncf %1 : vector<8x3072xf32> to vector<8x3072xbf16>
    %c0_2 = arith.constant 0 : index
    %c0_3 = arith.constant 0 : index
    %3 = vector.load %arg5[%c0_2, %c0_3] : memref<8x512xf32, #tpu.memory_space<vmem>>, vector<8x512xf32>
    %4 = vector.extract_strided_slice %3 {offsets = [0, 0], sizes = [1, 512], strides = [1, 1]} : vector<8x512xf32> to vector<1x512xf32>
    %5 = vector.extract_strided_slice %3 {offsets = [1, 0], sizes = [1, 512], strides = [1, 1]} : vector<8x512xf32> to vector<1x512xf32>
    %6 = vector.extract_strided_slice %3 {offsets = [2, 0], sizes = [1, 512], strides = [1, 1]} : vector<8x512xf32> to vector<1x512xf32>
    %7 = vector.extract_strided_slice %3 {offsets = [3, 0], sizes = [1, 256], strides = [1, 1]} : vector<8x512xf32> to vector<1x256xf32>
    %8 = vector.extract_strided_slice %3 {offsets = [4, 0], sizes = [1, 256], strides = [1, 1]} : vector<8x512xf32> to vector<1x256xf32>
    %9 = vector.extract_strided_slice %3 {offsets = [5, 0], sizes = [1, 256], strides = [1, 1]} : vector<8x512xf32> to vector<1x256xf32>
    %10 = vector.extract_strided_slice %3 {offsets = [6, 0], sizes = [1, 128], strides = [1, 1]} : vector<8x512xf32> to vector<1x128xf32>
    %c0_4 = arith.constant 0 : index
    %c0_5 = arith.constant 0 : index
    %11 = vector.load %arg2[%c0_4, %c0_5] : memref<3072x512xbf16, #tpu.memory_space<vmem>>, vector<3072x512xbf16>
    %cst = arith.constant dense<0.000000e+00> : vector<8x512xf32>
    %12 = tpu.matmul %2, %11, %cst {dimension_numbers = #tpu.dot_dimension_numbers<[1], [0], [0], [1], [0, 0, 1, 1], [], []>} : vector<8x3072xbf16>, vector<3072x512xbf16>, vector<8x512xf32> -> vector<8x512xf32>
    %13 = vector.broadcast %4 : vector<1x512xf32> to vector<8x512xf32>
    %14 = arith.addf %12, %13 : vector<8x512xf32>
    %cst_6 = arith.constant 0.000000e+00 : f32
    %15 = vector.broadcast %cst_6 : f32 to vector<8x512xf32>
    %16 = arith.maximumf %14, %15 : vector<8x512xf32>
    %cst_7 = arith.constant dense<0.000000e+00> : vector<512xf32>
    %17 = vector.multi_reduction <add>, %16, %cst_7 [0] : vector<8x512xf32> to vector<512xf32>
    %18 = vector.shape_cast %17 : vector<512xf32> to vector<1x512xf32>
    %cst_8 = arith.constant 8.000000e+00 : f32
    %19 = vector.broadcast %cst_8 : f32 to vector<1x512xf32>
    %20 = arith.divf %18, %19 : vector<1x512xf32>
    %21 = arith.mulf %16, %16 : vector<8x512xf32>
    %cst_9 = arith.constant dense<0.000000e+00> : vector<512xf32>
    %22 = vector.multi_reduction <add>, %21, %cst_9 [0] : vector<8x512xf32> to vector<512xf32>
    %23 = vector.shape_cast %22 : vector<512xf32> to vector<1x512xf32>
    %cst_10 = arith.constant 8.000000e+00 : f32
    %24 = vector.broadcast %cst_10 : f32 to vector<1x512xf32>
    %25 = arith.divf %23, %24 : vector<1x512xf32>
    %26 = arith.mulf %20, %20 : vector<1x512xf32>
    %27 = arith.subf %25, %26 : vector<1x512xf32>
    %cst_11 = arith.constant 0.000000e+00 : f32
    %28 = vector.broadcast %cst_11 : f32 to vector<1x512xf32>
    %29 = arith.maximumf %27, %28 : vector<1x512xf32>
    %cst_12 = arith.constant 9.99999974E-6 : f32
    %30 = vector.broadcast %cst_12 : f32 to vector<1x512xf32>
    %31 = arith.addf %29, %30 : vector<1x512xf32>
    %32 = math.rsqrt %31 : vector<1x512xf32>
    %33 = arith.mulf %5, %32 : vector<1x512xf32>
    %34 = vector.broadcast %33 : vector<1x512xf32> to vector<8x512xf32>
    %35 = arith.mulf %16, %34 : vector<8x512xf32>
    %36 = arith.mulf %20, %33 : vector<1x512xf32>
    %37 = arith.subf %6, %36 : vector<1x512xf32>
    %38 = vector.broadcast %37 : vector<1x512xf32> to vector<8x512xf32>
    %39 = arith.addf %35, %38 : vector<8x512xf32>
    %40 = arith.truncf %39 : vector<8x512xf32> to vector<8x512xbf16>
    %c0_13 = arith.constant 0 : index
    %c0_14 = arith.constant 0 : index
    %41 = vector.load %arg3[%c0_13, %c0_14] : memref<512x256xbf16, #tpu.memory_space<vmem>>, vector<512x256xbf16>
    %cst_15 = arith.constant dense<0.000000e+00> : vector<8x256xf32>
    %42 = tpu.matmul %40, %41, %cst_15 {dimension_numbers = #tpu.dot_dimension_numbers<[1], [0], [0], [1], [0, 0, 1, 1], [], []>} : vector<8x512xbf16>, vector<512x256xbf16>, vector<8x256xf32> -> vector<8x256xf32>
    %43 = vector.broadcast %7 : vector<1x256xf32> to vector<8x256xf32>
    %44 = arith.addf %42, %43 : vector<8x256xf32>
    %cst_16 = arith.constant 0.000000e+00 : f32
    %45 = vector.broadcast %cst_16 : f32 to vector<8x256xf32>
    %46 = arith.maximumf %44, %45 : vector<8x256xf32>
    %cst_17 = arith.constant dense<0.000000e+00> : vector<256xf32>
    %47 = vector.multi_reduction <add>, %46, %cst_17 [0] : vector<8x256xf32> to vector<256xf32>
    %48 = vector.shape_cast %47 : vector<256xf32> to vector<1x256xf32>
    %cst_18 = arith.constant 8.000000e+00 : f32
    %49 = vector.broadcast %cst_18 : f32 to vector<1x256xf32>
    %50 = arith.divf %48, %49 : vector<1x256xf32>
    %51 = arith.mulf %46, %46 : vector<8x256xf32>
    %cst_19 = arith.constant dense<0.000000e+00> : vector<256xf32>
    %52 = vector.multi_reduction <add>, %51, %cst_19 [0] : vector<8x256xf32> to vector<256xf32>
    %53 = vector.shape_cast %52 : vector<256xf32> to vector<1x256xf32>
    %cst_20 = arith.constant 8.000000e+00 : f32
    %54 = vector.broadcast %cst_20 : f32 to vector<1x256xf32>
    %55 = arith.divf %53, %54 : vector<1x256xf32>
    %56 = arith.mulf %50, %50 : vector<1x256xf32>
    %57 = arith.subf %55, %56 : vector<1x256xf32>
    %cst_21 = arith.constant 0.000000e+00 : f32
    %58 = vector.broadcast %cst_21 : f32 to vector<1x256xf32>
    %59 = arith.maximumf %57, %58 : vector<1x256xf32>
    %cst_22 = arith.constant 9.99999974E-6 : f32
    %60 = vector.broadcast %cst_22 : f32 to vector<1x256xf32>
    %61 = arith.addf %59, %60 : vector<1x256xf32>
    %62 = math.rsqrt %61 : vector<1x256xf32>
    %63 = arith.mulf %8, %62 : vector<1x256xf32>
    %64 = vector.broadcast %63 : vector<1x256xf32> to vector<8x256xf32>
    %65 = arith.mulf %46, %64 : vector<8x256xf32>
    %66 = arith.mulf %50, %63 : vector<1x256xf32>
    %67 = arith.subf %9, %66 : vector<1x256xf32>
    %68 = vector.broadcast %67 : vector<1x256xf32> to vector<8x256xf32>
    %69 = arith.addf %65, %68 : vector<8x256xf32>
    %70 = arith.truncf %69 : vector<8x256xf32> to vector<8x256xbf16>
    %c0_23 = arith.constant 0 : index
    %c0_24 = arith.constant 0 : index
    %71 = vector.load %arg4[%c0_23, %c0_24] : memref<256x128xbf16, #tpu.memory_space<vmem>>, vector<256x128xbf16>
    %cst_25 = arith.constant dense<0.000000e+00> : vector<8x128xf32>
    %72 = tpu.matmul %70, %71, %cst_25 {dimension_numbers = #tpu.dot_dimension_numbers<[1], [0], [0], [1], [0, 0, 1, 1], [], []>} : vector<8x256xbf16>, vector<256x128xbf16>, vector<8x128xf32> -> vector<8x128xf32>
    %73 = vector.broadcast %10 : vector<1x128xf32> to vector<8x128xf32>
    %74 = arith.addf %72, %73 : vector<8x128xf32>
    %c0_26 = arith.constant 0 : index
    %c0_27 = arith.constant 0 : index
    %c0_28 = arith.constant 0 : index
    %75 = vector.load %arg6[%c0_26, %c0_27, %c0_28] : memref<1x8x128xf32, #tpu.memory_space<vmem>>, vector<1x8x128xf32>
    %76 = vector.shape_cast %75 : vector<1x8x128xf32> to vector<8x128xf32>
    %77 = vector.shape_cast %74 : vector<8x128xf32> to vector<1x8x128xf32>
    tpu.vector_store %arg6[%c0_26, %c0_27, %c0_28], %77 {strides = array<i32>} : memref<1x8x128xf32, #tpu.memory_space<vmem>>, vector<1x8x128xf32>,
    return
  }
  func.func @transform_0(%arg0: i32) -> (i32, i32, i32) {
    %c0_i32 = arith.constant 0 : i32
    %c0_i32_0 = arith.constant 0 : i32
    %c0_i32_1 = arith.constant 0 : i32
    return %arg0, %c0_i32, %c0_i32_0 : i32, i32, i32
  }
  func.func @transform_1(%arg0: i32) -> (i32, i32) {
    %c0_i32 = arith.constant 0 : i32
    %c0_i32_0 = arith.constant 0 : i32
    %c0_i32_1 = arith.constant 0 : i32
    return %c0_i32, %c0_i32_0 : i32, i32
  }
  func.func @transform_2(%arg0: i32) -> (i32, i32) {
    %c0_i32 = arith.constant 0 : i32
    %c0_i32_0 = arith.constant 0 : i32
    %c0_i32_1 = arith.constant 0 : i32
    return %c0_i32, %c0_i32_0 : i32, i32
  }
  func.func @transform_3(%arg0: i32) -> (i32, i32) {
    %c0_i32 = arith.constant 0 : i32
    %c0_i32_0 = arith.constant 0 : i32
    %c0_i32_1 = arith.constant 0 : i32
    return %c0_i32, %c0_i32_0 : i32, i32
  }
  func.func @transform_4(%arg0: i32) -> (i32, i32) {
    %c0_i32 = arith.constant 0 : i32
    %c0_i32_0 = arith.constant 0 : i32
    %c0_i32_1 = arith.constant 0 : i32
    return %c0_i32, %c0_i32_0 : i32, i32
  }
  func.func @transform_5(%arg0: i32) -> (i32, i32, i32) {
    %c0_i32 = arith.constant 0 : i32
    %c0_i32_0 = arith.constant 0 : i32
    %c0_i32_1 = arith.constant 0 : i32
    return %arg0, %c0_i32, %c0_i32_0 : i32, i32, i32
  }
}

</mosaic_0001>

<bundles_post_ra>
// kernel: tpu_custom_call.1
= control target key start
LH: loop header
LB: loop body
LE: loop exit
PB: predicated region body
PF: predicated region fallthrough
CT: control target
= control target key end

     0   :  { %10 = vsyncpa [#allocation3], 0  ;;  %s10015_s0 = inlined_call_operand.hbm [shape: f32[2,8,3072], index: 0, kind: input, shape index: {}]   ;;  %s10016_s1 = inlined_call_operand.hbm [shape: bf16[3072,512], index: 1, kind: input, shape index: {}]   ;;  %s10017_s2 = inlined_call_operand.hbm [shape: bf16[512,256], index: 2, kind: input, shape index: {}]   ;;  %s10018_s3 = inlined_call_operand.hbm [shape: bf16[256,128], index: 3, kind: input, shape index: {}]   ;;  %s10019_s4 = inlined_call_operand.hbm [shape: f32[8,512], index: 4, kind: input, shape index: {}]   ;;  %s10020_s5 = inlined_call_operand.hbm [shape: f32[2,8,128], index: 5, kind: output, shape index: {}]  }
   0x1   :  { %12 = vsyncpa [#allocation3 + $0x1], 0 }
   0x2   :  { %13 = vsyncpa [#allocation6], 0 }
   0x3   :  { %14 = vsyncpa [#allocation9], 0 }
   0x4   :  { %15 = vsyncpa [#allocation4], 0 }
   0x5   :  { %17 = vsyncpa [#allocation4 + $0x1], 0  ;;  %s9572_s18 = smov 0   ;;  %s9574_s19 = smov 0  }
   0x6   :  { %s9576_s20 = smov 0   ;;  %s9578_s21 = smov 0  }
   0x7 LB: > { %s9530_s22 = smov [#allocation5]   ;;  %s9593_s24 = sadd.s32 4294967295, %s9528_s21   ;;  %s9528_s21 = sphi %s9578_s21, %s10043_s21   ;;  %s9524_s20 = sphi %s9576_s20, %s10042_s20   ;;  %s9520_s19 = sphi %s9574_s19, %s10041_s19   ;;  %s9516_s18 = sphi %s9572_s18, %s10040_s18  }
   0x8   : > { %s176_s23 = sshll.u32 %s9530_s22, 4  ;;  %p6957_p0 = scmp.ge.s32.totalorder %s9528_s21, 1  ;;  %s9598_s23 = int_to_ptr.vmem [resolvable:$true] %s176_s23 }
   0x9   : > { %p10021_p1 = scmp.eq.s32.totalorder %s9593_s24, 0  ;;  %p164_p2 = scmp.lt.s32.totalorder %s9528_s21, 3 }
   0xa   : > { %s9531_s26 = smov [#allocation8]   ;;  %s9532_s29 = smov [#allocation7]  }
   0xb   : > { %p9600_p3 = pnand %p6957_p0, %p164_p2  ;;  %s202_s27 = sshll.u32 %s9531_s26, 4  ;;  %s9613_s27 = int_to_ptr.vmem [resolvable:$true] %s202_s27 }
   0xc   : > { %s9615_s30 = sshll.u32 %s9532_s29, 4  ;;  %s9312_s8 = scalar_lea.hbm %s10016_s1, 98304  ;;  %s190_s30 = int_to_ptr.vmem [resolvable:$true] %s9615_s30 }
   0xd   : > { %s10024_s25 = scalar_select %p9600_p3, 1, 0 }
   0xe   : > { %p7963_p5 = pneg %p9600_p3  ;;  %p9313_p7 = scmp.ne.s32.totalorder %s10016_s1, %s9312_s8 }
   0xf   : > { %p9319_p11 = scmp.lt.u32.totalorder %s9312_s8, %s10016_s1 }
  0x10   : > { %p9609_p6 = pnand %p7963_p5, %p10021_p1 }
  0x12   : > { %p9625_p8 = pneg %p9609_p6 }
  0x14   : > { %p9315_p9 = pnand %p9625_p8, %p9313_p7 }
  0x16   : > { %p9316_p10 = pneg %p9315_p9 }
  0x18   : > { %p9321_p12 = pnand %p9319_p11, %p9316_p10 }
  0x1a   : > { %9324 = shalt.err (!%p9321_p12)
}
  0x1b   : > { %s9325_s14 = scalar_lea.vmem %s9598_s23, 98304  ;;  %p9333_p5 = scmp.lt.s32.totalorder %s9598_s23, %s9598_s23 }
  0x1c   : > { %p9326_p13 = scmp.ne.s32.totalorder %s9598_s23, %s9325_s14  ;;  %p9334_p4 = scmp.lt.s32.totalorder %s9325_s14, %s9325_s14 }
  0x1e   : > { %p9328_p0 = pnand %p9326_p13, %p9625_p8  ;;  %p9335_p7 = por %p9334_p4, %p9333_p5 }
  0x20   : > { %p9329_p2 = pneg %p9328_p0 }
  0x22   : > { %p9336_p9 = pnand %p9335_p7, %p9329_p2 }
  0x24   : > { %9339 = shalt.err (!%p9336_p9)
}
  0x25   : > { %s9533_s15 = smov 256   ;;  %s9534_s16 = smov 16  }
  0x26   : > { %7966 = dma.hbm_to_vmem [thread:$0]  (!%p9609_p6), %s10016_s1, 98304, %s9598_s23, [#allocation6], %s9533_s15, %s9533_s15, %s9534_s16  }
  0x27   : > { %s9340_s6 = scalar_lea.hbm %s10018_s3, 2048 }
  0x28   : > { %p9341_p4 = scmp.ne.s32.totalorder %s10018_s3, %s9340_s6  ;;  %p9347_p12 = scmp.lt.u32.totalorder %s9340_s6, %s10018_s3 }
  0x2a   : > { %p9343_p10 = pnand %p9341_p4, %p9625_p8 }
  0x2c   : > { %p9344_p11 = pneg %p9343_p10 }
  0x2e   : > { %p9349_p13 = pnand %p9347_p12, %p9344_p11 }
  0x30   : > { %9352 = shalt.err (!%p9349_p13)
}
  0x31   : > { %s9353_s23 = scalar_lea.vmem %s9613_s27, 2048  ;;  %p9361_p7 = scmp.lt.s32.totalorder %s9613_s27, %s9613_s27 }
  0x32   : > { %p9354_p0 = scmp.ne.s32.totalorder %s9613_s27, %s9353_s23  ;;  %p9362_p9 = scmp.lt.s32.totalorder %s9353_s23, %s9353_s23 }
  0x34   : > { %p9356_p2 = pnand %p9354_p0, %p9625_p8  ;;  %p9363_p4 = por %p9362_p9, %p9361_p7 }
  0x36   : > { %p9357_p5 = pneg %p9356_p2 }
  0x38   : > { %p9364_p10 = pnand %p9363_p4, %p9357_p5 }
  0x3a   : > { %9367 = shalt.err (!%p9364_p10)
}
  0x3b   : > { %s9535_s12 = smov 64   ;;  %s9536_s13 = smov 4  }
  0x3c   : > { %7972 = dma.hbm_to_vmem [thread:$0]  (!%p9609_p6), %s10018_s3, 2048, %s9613_s27, [#allocation9], %s9535_s12, %s9535_s12, %s9536_s13  }
  0x3d   : > { %s9368_s22 = scalar_lea.hbm %s10017_s2, 8192 }
  0x3e   : > { %p9369_p11 = scmp.ne.s32.totalorder %s10017_s2, %s9368_s22  ;;  %p9375_p0 = scmp.lt.u32.totalorder %s9368_s22, %s10017_s2 }
  0x40   : > { %p9371_p12 = pnand %p9369_p11, %p9625_p8 }
  0x42   : > { %p9372_p13 = pneg %p9371_p12 }
  0x44   : > { %p9377_p2 = pnand %p9375_p0, %p9372_p13 }
  0x46   : > { %9380 = shalt.err (!%p9377_p2)
}
  0x47   : > { %s9381_s8 = scalar_lea.vmem %s190_s30, 8192  ;;  %p9389_p4 = scmp.lt.s32.totalorder %s190_s30, %s190_s30 }
  0x48   : > { %p9382_p5 = scmp.ne.s32.totalorder %s190_s30, %s9381_s8  ;;  %p9390_p10 = scmp.lt.s32.totalorder %s9381_s8, %s9381_s8 }
  0x4a   : > { %p9384_p7 = pnand %p9382_p5, %p9625_p8  ;;  %p9391_p1 = por %p9390_p10, %p9389_p4 }
  0x4c   : > { %p9385_p9 = pneg %p9384_p7 }
  0x4e   : > { %p9392_p3 = pnand %p9391_p1, %p9385_p9 }
  0x50   : > { %9395 = shalt.err (!%p9392_p3)
}
  0x51   : > { %s9537_s27 = smov 128   ;;  %s9538_s9 = smov 8  }
  0x52   : > { %7969 = dma.hbm_to_vmem [thread:$0]  (!%p9609_p6), %s10017_s2, 8192, %s190_s30, [#allocation6], %s9537_s27, %s9537_s27, %s9538_s9  }
  0x53   : > { %s9539_s12 = smov [#allocation10]   ;;  %s9396_s16 = scalar_lea.hbm %s10019_s4, 512 }
  0x54   : > { %s216_s13 = sshll.u32 %s9539_s12, 4  ;;  %p9397_p1 = scmp.ne.s32.totalorder %s10019_s4, %s9396_s16  ;;  %s217_s13 = int_to_ptr.vmem [resolvable:$true] %s216_s13 }
  0x55   : > { %p9403_p12 = scmp.lt.u32.totalorder %s9396_s16, %s10019_s4 }
  0x56   : > { %p9399_p3 = pnand %p9397_p1, %p9625_p8 }
  0x58   : > { %p9400_p11 = pneg %p9399_p3 }
  0x5a   : > { %p9405_p13 = pnand %p9403_p12, %p9400_p11 }
  0x5c   : > { %9408 = shalt.err (!%p9405_p13)
}
  0x5d   : > { %s9409_s30 = scalar_lea.vmem %s217_s13, 512  ;;  %p9417_p7 = scmp.lt.s32.totalorder %s217_s13, %s217_s13 }
  0x5e   : > { %p9410_p0 = scmp.ne.s32.totalorder %s217_s13, %s9409_s30  ;;  %p9418_p9 = scmp.lt.s32.totalorder %s9409_s30, %s9409_s30 }
  0x60   : > { %p9412_p2 = pnand %p9410_p0, %p9625_p8  ;;  %p9419_p4 = por %p9418_p9, %p9417_p7 }
  0x62   : > { %p9413_p5 = pneg %p9412_p2 }
  0x64   : > { %p9420_p10 = pnand %p9419_p4, %p9413_p5 }
  0x66   : > { %9423 = shalt.err (!%p9420_p10)
}
  0x67   : > { %7975 = dma.hbm_to_vmem [thread:$0]  (!%p9609_p6), %s10019_s4, 512, %s217_s13, [#allocation9]  }
  0x68   : > { %s6956_s11 = sadd.s32 4294967294, %s9528_s21   ;;  %s9708_s28 = sadd.s32 1, %s9528_s21  }
  0x69   : > { %s27_s8 = ssub.s32 %s9528_s21, %s9708_s28  ;;  %s30_s27 = sadd.s32 1, %s9524_s20 }
  0x6a   : > { %p28_p8 = scmp.eq.s32.totalorder %s27_s8, 0  ;;  %p37_p1 = scmp.ne.s32.totalorder %s9524_s20, %s9520_s19 }
  0x6b   : > { %p38_p3 = scmp.eq.s32.totalorder %s9528_s21, 0  ;;  %p43_p11 = scmp.ne.s32.totalorder %s9520_s19, %s9516_s18 }
  0x6c   : > { %s9719_s9 = scalar_select %p28_p8, %s9524_s20, %s30_s27  }
  0x6d   : > { %p39_p12 = por %p38_p3, %p37_p1  ;;  %p10027_p13 = scmp.eq.s32.totalorder %s9593_s24, 0 }
  0x6e   : > { %p151_p6 = scmp.eq.s32.totalorder %s9593_s24, 1  ;;  %p157_p2 = scmp.eq.s32.totalorder %s6956_s11, 1 }
  0x6f   : > { %p9723_p0 = por %p10027_p13, %p43_p11  ;;  %p7988_p5 = scmp.lt.s32.totalorder %s9528_s21, 2 }
  0x70   : > { %s227_s23 = sand.u32 1, %s9524_s20   ;;  %p9730_p7 = por %p151_p6, %p37_p1 }
  0x71   : > { %p9734_p9 = por %p157_p2, %p43_p11  ;;  %s7940_s14 = smul.u32 192, %s227_s23 }
  0x72   : > { %s10029_s12 = scalar_select %p9730_p7, 1, 0 }
  0x73   : > { %s10030_s13 = scalar_select %p9734_p9, 1, 0 }
  0x74   : > { %s7941_s15 = smul.u32 3072, %s9528_s21  ;;  %p9739_p4 = pnand %p7988_p5, %p39_p12 }
  0x75   : > { %s231_s29 = scalar_lea.vmem [#allocation2], %s7940_s14  ;;  %s228_s6 = scalar_lea.sflag [#allocation3], %s227_s23 }
  0x76   : > { %s9746_s26 = scalar_lea.hbm %s10015_s0, %s7941_s15  ;;  %s239_s30 = sshll.u32 %s231_s29, 4  ;;  %s9748_s30 = int_to_ptr.vmem [resolvable:$true] %s239_s30 }
  0x77   : > { %s9424_s7 = scalar_lea.hbm %s9746_s26, 3072  ;;  %p9426_p8 = pneg %p9739_p4 }
  0x78   : > { %p9425_p10 = scmp.ne.s32.totalorder %s9746_s26, %s9424_s7  ;;  %s9429_s27 = scalar_lea.hbm %s10015_s0, 6144 }
  0x79   : > { %p9430_p11 = scmp.lt.u32.totalorder %s9746_s26, %s10015_s0  ;;  %p9431_p12 = scmp.lt.u32.totalorder %s9429_s27, %s9424_s7 }
  0x7a   : > { %p9427_p1 = pnand %p9426_p8, %p9425_p10  ;;  %p9433_p6 = scmp.lt.u32.totalorder %s9424_s7, %s9746_s26 }
  0x7b   : > { %p9432_p13 = por %p9431_p12, %p9430_p11 }
  0x7c   : > { %p9428_p3 = pneg %p9427_p1 }
  0x7d   : > { %p9434_p2 = por %p9433_p6, %p9432_p13 }
  0x7f   : > { %p9435_p5 = pnand %p9434_p2, %p9428_p3 }
  0x81   : > { %9438 = shalt.err (!%p9435_p5)
}
  0x82   : > { %s9439_s23 = scalar_lea.vmem %s9748_s30, 3072  ;;  %s9540_s14 = smov [#allocation2]  }
  0x83   : > { %p9440_p10 = scmp.ne.s32.totalorder %s9748_s30, %s9439_s23  ;;  %s9444_s22 = sshll.u32 %s9540_s14, 4  ;;  %s9445_s22 = int_to_ptr.vmem [resolvable:$false] %s9444_s22 }
  0x84   : > { %s9446_s29 = scalar_lea.vmem %s9445_s22, 6144  ;;  %p9447_p7 = scmp.lt.s32.totalorder %s9748_s30, %s9445_s22 }
  0x85   : > { %p9442_p1 = pnand %p9440_p10, %p9426_p8  ;;  %p9448_p11 = scmp.lt.s32.totalorder %s9446_s29, %s9439_s23 }
  0x87   : > { %p9443_p9 = pneg %p9442_p1  ;;  %p9449_p12 = por %p9448_p11, %p9447_p7 }
  0x89   : > { %p9450_p13 = pnand %p9449_p12, %p9443_p9 }
  0x8b   : > { %9453 = shalt.err (!%p9450_p13)
}
  0x8c   : > { %7979 = dma.hbm_to_vmem [thread:$0]  (!%p9739_p4), %s9746_s26, 3072, %s9748_s30, %s228_s6  }
  0x8d   : > { %p10032_p3 = scmp.ne.s32.totalorder %s10024_s25, 0 }
  0x8e   : > { %s9778_s7 = sand.u32 (!%p10032_p3), 1, %s9520_s19  }
  0x8f   : > { %248 = sbr.rel (%p10032_p3) target bundleno = 1751 (0x6d7), region = 40  ;;  %s251_s8 = scalar_lea.sflag (!%p10032_p3), [#allocation3], %s9778_s7 }
  0x90   : > { %s7942_s11 = smul.u32 (!%p10032_p3), 192, %s9778_s7 }
  0x92   : > { %s9782_s27 = scalar_lea.vmem (!%p10032_p3), [#allocation2], %s7942_s11 }
  0x96   : > { %9499 = dma.done.wait (%p9723_p0), %s251_s8, 3072  }
  0x97   : > { %9501 = vsyncadd (%p9723_p0), %s251_s8, 4294964224  ;;  %p10033_p7 = scmp.eq.s32.totalorder %s9593_s24, 0 }
  0x99   : > { %9503 = dma.done.wait (%p10033_p7), [#allocation6], 106496   ;;  %p10034_p9 = pmov %p10033_p7 }
  0x9a   : > { %p10035_p4 = pmov %p10033_p7 }
  0x9b   : > { %9505 = vsyncadd (%p10034_p9), [#allocation6], 4294860800 }
  0x9c   : > { %9507 = dma.done.wait (%p10035_p4), [#allocation9], 2560   ;;  %p10036_p8 = pmov %p10035_p4 }
  0x9d   : > { %v8036_v0 = vld [vmem:[#allocation5 + $0x4] ss:$16 sps:$4 sm:$0xff]   ;;  %v8040_v2 = vld [vmem:[#allocation5] ss:$16 sps:$4 sm:$0xff]   ;;  %v299_v46 = vld [vmem:[%s9782_s27 + $0x8] sm:$0xff]  ;;  %s6969_s25 = sshll.u32 %s9778_s7, 3 }
  0x9e   : > { %9509 = vsyncadd (%p10036_p8), [#allocation9], 4294964736  ;;  %v8038_v1 = vld [vmem:[#allocation5 + $0x204] ss:$16 sps:$4 sm:$0xff]   ;;  %4974 = vmatprep.subr.bf16.mxu1 %v8036_v0  ;;  %v8041_v3 = vld [vmem:[#allocation5 + $0x200] ss:$16 sps:$4 sm:$0xff]   ;;  %v9797_v48 = vpack.c.bf16 %v299_v46, %v299_v46 }
  0x9f   : > { %5015 = vmatprep.subr.bf16.mxu0 %v8038_v1  ;;  %v8042_v4 = vld [vmem:[#allocation5 + $0x24] ss:$16 sps:$4 sm:$0xff]   ;;  %4975 = vmatpush1.bf16.msra.mxu1 %v8040_v2  ;;  %v8046_v6 = vld [vmem:[#allocation5 + $0x20] ss:$16 sps:$4 sm:$0xff]   ;;  %v301_v49 = vld [vmem:[%s9782_s27 + $0x18] sm:$0xff]  ;;  %s7819_s10 = sshll.u32 %s9593_s24, 7 }
  0xa0   : > { %5016 = vmatpush1.bf16.msra.mxu0 %v8041_v3  ;;  %v8044_v5 = vld [vmem:[#allocation5 + $0x224] ss:$16 sps:$4 sm:$0xff]   ;;  %4976 = vmatprep.subr.bf16.mxu1 %v8042_v4  ;;  %v8047_v7 = vld [vmem:[#allocation5 + $0x220] ss:$16 sps:$4 sm:$0xff]   ;;  %v9800_v52 = vpack.c.bf16 %v301_v49, %v301_v49  ;;  %v8189_v49 = vld [vmem:[#allocation5 + $0x128] ss:$16 sps:$4 sm:$0xff]   ;;  %s9971_s15 = scalar_lea.hbm %s10020_s5, %s7819_s10 }
  0xa1   : > { %5017 = vmatprep.subr.bf16.mxu0 %v8044_v5  ;;  %v8048_v8 = vld [vmem:[#allocation5 + $0x44] ss:$16 sps:$4 sm:$0xff]   ;;  %v8052_v10 = vld [vmem:[#allocation5 + $0x40] ss:$16 sps:$4 sm:$0xff]   ;;  %5006 = vmatprep.mubr.bf16.mxu1 %v9797_v48  ;;  %s296_s16 = scalar_lea.vmem [#allocation11], %s6969_s25  ;;  %s6835_s17 = scalar_lea.sflag [#allocation4], %s9778_s7 }
  0xa2   : > { %v8050_v9 = vld [vmem:[#allocation5 + $0x244] ss:$16 sps:$4 sm:$0xff]   ;;  %v8053_v11 = vld [vmem:[#allocation5 + $0x240] ss:$16 sps:$4 sm:$0xff]   ;;  %5047 = vmatprep.mubr.bf16.mxu0 %v9800_v52  ;;  %s6848_s26 = sshll.u32 %s296_s16, 4  ;;  %p10037_p6 = scmp.ne.s32.totalorder %s10029_s12, 0  ;;  %s9973_s26 = int_to_ptr.vmem [resolvable:$true] %s6848_s26 }
  0xa3   : > { %4977 = vmatpush1.bf16.msra.mxu1 %v8046_v6  ;;  %v8054_v12 = vld [vmem:[#allocation5 + $0x64] ss:$16 sps:$4 sm:$0xff]   ;;  %v8058_v14 = vld [vmem:[#allocation5 + $0x60] ss:$16 sps:$4 sm:$0xff]   ;;  %s9454_s23 = scalar_lea.vmem %s9973_s26, 128  ;;  %s9541_s24 = smov [#allocation11]  }
  0xa4   : > { %5018 = vmatpush1.bf16.msra.mxu0 %v8047_v7  ;;  %4978 = vmatprep.subr.bf16.mxu1 %v8048_v8  ;;  %v8056_v13 = vld [vmem:[#allocation5 + $0x264] ss:$16 sps:$4 sm:$0xff]   ;;  %v8059_v15 = vld [vmem:[#allocation5 + $0x260] ss:$16 sps:$4 sm:$0xff]   ;;  %v8137_v7 = vld [vmem:[#allocation5 + $0xc] ss:$16 sps:$4 sm:$0xff]   ;;  %p9455_p0 = scmp.ne.s32.totalorder %s9973_s26, %s9454_s23 }
  0xa5   : > { %5019 = vmatprep.subr.bf16.mxu0 %v8050_v9  ;;  %v8060_v16 = vld [vmem:[#allocation5 + $0x84] ss:$16 sps:$4 sm:$0xff]   ;;  %v8064_v18 = vld [vmem:[#allocation5 + $0x80] ss:$16 sps:$4 sm:$0xff]   ;;  %s9458_s14 = sshll.u32 %s9541_s24, 4  ;;  %s9459_s14 = int_to_ptr.vmem [resolvable:$false] %s9458_s14 }
  0xa6   : > { %v8062_v17 = vld [vmem:[#allocation5 + $0x284] ss:$16 sps:$4 sm:$0xff]   ;;  %v8065_v19 = vld [vmem:[#allocation5 + $0x280] ss:$16 sps:$4 sm:$0xff]   ;;  %p9456_p2 = pnand %p9455_p0, %p10037_p6  ;;  %s9460_s22 = scalar_lea.vmem %s9459_s14, 256 }
  0xa7   : > { %4979 = vmatpush1.bf16.msra.mxu1 %v8052_v10  ;;  %v8066_v20 = vld [vmem:[#allocation5 + $0xa4] ss:$16 sps:$4 sm:$0xff]   ;;  %v8070_v22 = vld [vmem:[#allocation5 + $0xa0] ss:$16 sps:$4 sm:$0xff]   ;;  %v8135_v10 = vld [vmem:[#allocation5 + $0x8] ss:$16 sps:$4 sm:$0xff]   ;;  %p9461_p10 = scmp.lt.s32.totalorder %s9973_s26, %s9459_s14  ;;  %p9462_p1 = scmp.lt.s32.totalorder %s9460_s22, %s9454_s23 }
  0xa8   : > { %5020 = vmatpush1.bf16.msra.mxu0 %v8053_v11  ;;  %4980 = vmatprep.subr.bf16.mxu1 %v8054_v12  ;;  %v8068_v21 = vld [vmem:[#allocation5 + $0x2a4] ss:$16 sps:$4 sm:$0xff]   ;;  %v8071_v23 = vld [vmem:[#allocation5 + $0x2a0] ss:$16 sps:$4 sm:$0xff]   ;;  %p9457_p5 = pneg %p9456_p2 }
  0xa9   : > { %5021 = vmatprep.subr.bf16.mxu0 %v8056_v13  ;;  %v8072_v24 = vld [vmem:[#allocation5 + $0xc4] ss:$16 sps:$4 sm:$0xff]   ;;  %v8076_v26 = vld [vmem:[#allocation5 + $0xc0] ss:$16 sps:$4 sm:$0xff]   ;;  %v8143_v13 = vld [vmem:[#allocation5 + $0x2c] ss:$16 sps:$4 sm:$0xff]   ;;  %p9463_p11 = por %p9462_p1, %p9461_p10 }
  0xaa   : > { %v8074_v25 = vld [vmem:[#allocation5 + $0x2c4] ss:$16 sps:$4 sm:$0xff]   ;;  %v8077_v27 = vld [vmem:[#allocation5 + $0x2c0] ss:$16 sps:$4 sm:$0xff]  }
  0xab   : > { %4981 = vmatpush1.bf16.msra.mxu1 %v8058_v14  ;;  %v8078_v28 = vld [vmem:[#allocation5 + $0xe4] ss:$16 sps:$4 sm:$0xff]   ;;  %v8082_v30 = vld [vmem:[#allocation5 + $0xe0] ss:$16 sps:$4 sm:$0xff]   ;;  %p9464_p12 = pnand %p9463_p11, %p9457_p5 }
  0xac   : > { %5022 = vmatpush1.bf16.msra.mxu0 %v8059_v15  ;;  %4982 = vmatprep.subr.bf16.mxu1 %v8060_v16  ;;  %v8080_v29 = vld [vmem:[#allocation5 + $0x2e4] ss:$16 sps:$4 sm:$0xff]   ;;  %v8083_v31 = vld [vmem:[#allocation5 + $0x2e0] ss:$16 sps:$4 sm:$0xff]   ;;  %v8141_v15 = vld [vmem:[#allocation5 + $0x28] ss:$16 sps:$4 sm:$0xff]  }
  0xad   : > { %5023 = vmatprep.subr.bf16.mxu0 %v8062_v17  ;;  %v8084_v32 = vld [vmem:[#allocation5 + $0x104] ss:$16 sps:$4 sm:$0xff]   ;;  %v8088_v34 = vld [vmem:[#allocation5 + $0x100] ss:$16 sps:$4 sm:$0xff]   ;;  %v8149_v17 = vld [vmem:[#allocation5 + $0x4c] ss:$16 sps:$4 sm:$0xff]  }
  0xae   : > { %v8086_v33 = vld [vmem:[#allocation5 + $0x304] ss:$16 sps:$4 sm:$0xff]   ;;  %v8089_v35 = vld [vmem:[#allocation5 + $0x300] ss:$16 sps:$4 sm:$0xff]  }
  0xaf   : > { %4983 = vmatpush1.bf16.msra.mxu1 %v8064_v18  ;;  %v8090_v36 = vld [vmem:[#allocation5 + $0x124] ss:$16 sps:$4 sm:$0xff]   ;;  %v8094_v38 = vld [vmem:[#allocation5 + $0x120] ss:$16 sps:$4 sm:$0xff]  }
  0xb0   : > { %5024 = vmatpush1.bf16.msra.mxu0 %v8065_v19  ;;  %4984 = vmatprep.subr.bf16.mxu1 %v8066_v20  ;;  %v8092_v37 = vld [vmem:[#allocation5 + $0x324] ss:$16 sps:$4 sm:$0xff]   ;;  %v8095_v39 = vld [vmem:[#allocation5 + $0x320] ss:$16 sps:$4 sm:$0xff]   ;;  %v8147_v19 = vld [vmem:[#allocation5 + $0x48] ss:$16 sps:$4 sm:$0xff]  }
  0xb1   : > { %5025 = vmatprep.subr.bf16.mxu0 %v8068_v21  ;;  %v8096_v40 = vld [vmem:[#allocation5 + $0x144] ss:$16 sps:$4 sm:$0xff]   ;;  %v8100_v42 = vld [vmem:[#allocation5 + $0x140] ss:$16 sps:$4 sm:$0xff]   ;;  %v8155_v21 = vld [vmem:[#allocation5 + $0x6c] ss:$16 sps:$4 sm:$0xff]  }
  0xb2   : > { %v8098_v41 = vld [vmem:[#allocation5 + $0x344] ss:$16 sps:$4 sm:$0xff]   ;;  %v8101_v43 = vld [vmem:[#allocation5 + $0x340] ss:$16 sps:$4 sm:$0xff]  }
  0xb3   : > { %4985 = vmatpush1.bf16.msra.mxu1 %v8070_v22  ;;  %v8102_v44 = vld [vmem:[#allocation5 + $0x164] ss:$16 sps:$4 sm:$0xff]   ;;  %v8106_v47 = vld [vmem:[#allocation5 + $0x160] ss:$16 sps:$4 sm:$0xff]  }
  0xb4   : > { %5026 = vmatpush1.bf16.msra.mxu0 %v8071_v23  ;;  %4986 = vmatprep.subr.bf16.mxu1 %v8072_v24  ;;  %v8104_v45 = vld [vmem:[#allocation5 + $0x364] ss:$16 sps:$4 sm:$0xff]   ;;  %v8107_v50 = vld [vmem:[#allocation5 + $0x360] ss:$16 sps:$4 sm:$0xff]   ;;  %v8153_v23 = vld [vmem:[#allocation5 + $0x68] ss:$16 sps:$4 sm:$0xff]  }
  0xb5   : > { %5027 = vmatprep.subr.bf16.mxu0 %v8074_v25  ;;  %v8108_v51 = vld [vmem:[#allocation5 + $0x184] ss:$16 sps:$4 sm:$0xff]   ;;  %v8112_v54 = vld [vmem:[#allocation5 + $0x180] ss:$16 sps:$4 sm:$0xff]   ;;  %v8161_v25 = vld [vmem:[#allocation5 + $0x8c] ss:$16 sps:$4 sm:$0xff]  }
  0xb6   : > { %v8110_v53 = vld [vmem:[#allocation5 + $0x384] ss:$16 sps:$4 sm:$0xff]   ;;  %v8113_v55 = vld [vmem:[#allocation5 + $0x380] ss:$16 sps:$4 sm:$0xff]  }
  0xb7   : > { %4987 = vmatpush1.bf16.msra.mxu1 %v8076_v26  ;;  %v8114_v56 = vld [vmem:[#allocation5 + $0x1a4] ss:$16 sps:$4 sm:$0xff]   ;;  %v8118_v58 = vld [vmem:[#allocation5 + $0x1a0] ss:$16 sps:$4 sm:$0xff]  }
  0xb8   : > { %5028 = vmatpush1.bf16.msra.mxu0 %v8077_v27  ;;  %4988 = vmatprep.subr.bf16.mxu1 %v8078_v28  ;;  %v8116_v57 = vld [vmem:[#allocation5 + $0x3a4] ss:$16 sps:$4 sm:$0xff]   ;;  %v8119_v59 = vld [vmem:[#allocation5 + $0x3a0] ss:$16 sps:$4 sm:$0xff]   ;;  %v8159_v27 = vld [vmem:[#allocation5 + $0x88] ss:$16 sps:$4 sm:$0xff]  }
  0xb9   : > { %5029 = vmatprep.subr.bf16.mxu0 %v8080_v29  ;;  %v8120_v60 = vld [vmem:[#allocation5 + $0x1c4] ss:$16 sps:$4 sm:$0xff]   ;;  %v8124_v62 = vld [vmem:[#allocation5 + $0x1c0] ss:$16 sps:$4 sm:$0xff]   ;;  %v8167_v29 = vld [vmem:[#allocation5 + $0xac] ss:$16 sps:$4 sm:$0xff]  }
  0xba   : > { %v8122_v61 = vld [vmem:[#allocation5 + $0x3c4] ss:$16 sps:$4 sm:$0xff]   ;;  %v8125_v63 = vld [vmem:[#allocation5 + $0x3c0] ss:$16 sps:$4 sm:$0xff]  }
  0xbb   : > { %4989 = vmatpush1.bf16.msra.mxu1 %v8082_v30  ;;  %v8126_v0 = vld [vmem:[#allocation5 + $0x1e4] ss:$16 sps:$4 sm:$0xff]   ;;  %v8130_v2 = vld [vmem:[#allocation5 + $0x1e0] ss:$16 sps:$4 sm:$0xff]  }
  0xbc   : > { %5030 = vmatpush1.bf16.msra.mxu0 %v8083_v31  ;;  %4990 = vmatprep.subr.bf16.mxu1 %v8084_v32  ;;  %v8128_v1 = vld [vmem:[#allocation5 + $0x3e4] ss:$16 sps:$4 sm:$0xff]   ;;  %v8131_v3 = vld [vmem:[#allocation5 + $0x3e0] ss:$16 sps:$4 sm:$0xff]   ;;  %v8165_v31 = vld [vmem:[#allocation5 + $0xa8] ss:$16 sps:$4 sm:$0xff]  }
  0xbd   : > { %5031 = vmatprep.subr.bf16.mxu0 %v8086_v33  ;;  %v298_v4 = vld [vmem:[%s9782_s27] sm:$0xff]  ;;  %v300_v6 = vld [vmem:[%s9782_s27 + $0x10] sm:$0xff]  ;;  %v8173_v33 = vld [vmem:[#allocation5 + $0xcc] ss:$16 sps:$4 sm:$0xff]  }
  0xbe   : > { %v8134_v5 = vld [vmem:[#allocation5 + $0x404] ss:$16 sps:$4 sm:$0xff]   ;;  %v9806_v8 = vpack.c.bf16 %v298_v4, %v298_v4  ;;  %v8132_v9 = vld [vmem:[#allocation5 + $0x400] ss:$16 sps:$4 sm:$0xff]   ;;  %v9808_v11 = vpack.c.bf16 %v300_v6, %v300_v6  ;;  %v8221_v4 = vld [vmem:[#allocation5 + $0x1cc] ss:$16 sps:$4 sm:$0xff]  }
  0xbf   : > { %4991 = vmatpush1.bf16.msra.mxu1 %v8088_v34  ;;  %v8140_v12 = vld [vmem:[#allocation5 + $0x424] ss:$16 sps:$4 sm:$0xff]   ;;  %v8138_v14 = vld [vmem:[#allocation5 + $0x420] ss:$16 sps:$4 sm:$0xff]   ;;  %v303_v34 = vld [vmem:[%s9782_s27 + $0x28] sm:$0xff] }
  0xc0   : > { %5032 = vmatpush1.bf16.msra.mxu0 %v8089_v35  ;;  %4992 = vmatprep.subr.bf16.mxu1 %v8090_v36  ;;  %v8146_v16 = vld [vmem:[#allocation5 + $0x444] ss:$16 sps:$4 sm:$0xff]   ;;  %v8144_v18 = vld [vmem:[#allocation5 + $0x440] ss:$16 sps:$4 sm:$0xff]   ;;  %v9814_v36 = vpack.c.bf16 %v303_v34, %v303_v34  ;;  %v8219_v6 = vld [vmem:[#allocation5 + $0x1c8] ss:$16 sps:$4 sm:$0xff]  }
  0xc1   : > { %5033 = vmatprep.subr.bf16.mxu0 %v8092_v37  ;;  %v8152_v20 = vld [vmem:[#allocation5 + $0x464] ss:$16 sps:$4 sm:$0xff]   ;;  %v8150_v22 = vld [vmem:[#allocation5 + $0x460] ss:$16 sps:$4 sm:$0xff]   ;;  %v8171_v37 = vld [vmem:[#allocation5 + $0xc8] ss:$16 sps:$4 sm:$0xff]  }
  0xc2   : > { %v8158_v24 = vld [vmem:[#allocation5 + $0x484] ss:$16 sps:$4 sm:$0xff]   ;;  %v8156_v26 = vld [vmem:[#allocation5 + $0x480] ss:$16 sps:$4 sm:$0xff]  }
  0xc3   : > { %4993 = vmatpush1.bf16.msra.mxu1 %v8094_v38  ;;  %v8164_v28 = vld [vmem:[#allocation5 + $0x4a4] ss:$16 sps:$4 sm:$0xff]   ;;  %v8162_v30 = vld [vmem:[#allocation5 + $0x4a0] ss:$16 sps:$4 sm:$0xff]  }
  0xc4   : > { %5034 = vmatpush1.bf16.msra.mxu0 %v8095_v39  ;;  %4994 = vmatprep.subr.bf16.mxu1 %v8096_v40  ;;  %v8170_v32 = vld [vmem:[#allocation5 + $0x4c4] ss:$16 sps:$4 sm:$0xff]   ;;  %v8168_v35 = vld [vmem:[#allocation5 + $0x4c0] ss:$16 sps:$4 sm:$0xff]   ;;  %v8179_v39 = vld [vmem:[#allocation5 + $0xec] ss:$16 sps:$4 sm:$0xff]  }
  0xc5   : > { %5035 = vmatprep.subr.bf16.mxu0 %v8098_v41  ;;  %v8176_v38 = vld [vmem:[#allocation5 + $0x4e4] ss:$16 sps:$4 sm:$0xff]   ;;  %v8174_v40 = vld [vmem:[#allocation5 + $0x4e0] ss:$16 sps:$4 sm:$0xff]   ;;  %v8177_v41 = vld [vmem:[#allocation5 + $0xe8] ss:$16 sps:$4 sm:$0xff]  }
  0xc6   : > { %v8188_v46 = vld [vmem:[#allocation5 + $0x524] ss:$16 sps:$4 sm:$0xff]   ;;  %v8252_v34 = vld [vmem:[#allocation5 + $0x680] ss:$16 sps:$4 sm:$0xff]  }
  0xc7   : > { %4995 = vmatpush1.bf16.msra.mxu1 %v8100_v42  ;;  %v8182_v42 = vld [vmem:[#allocation5 + $0x504] ss:$16 sps:$4 sm:$0xff]  }
  0xc8   : > { %5036 = vmatpush1.bf16.msra.mxu0 %v8101_v43  ;;  %4996 = vmatprep.subr.bf16.mxu1 %v8102_v44  ;;  %v8185_v43 = vld [vmem:[#allocation5 + $0x10c] ss:$16 sps:$4 sm:$0xff]   ;;  %v8180_v44 = vld [vmem:[#allocation5 + $0x500] ss:$16 sps:$4 sm:$0xff]  }
  0xc9   : > { %5037 = vmatprep.subr.bf16.mxu0 %v8104_v45  ;;  %v8183_v45 = vld [vmem:[#allocation5 + $0x108] ss:$16 sps:$4 sm:$0xff]  }
  0xcb   : > { %4997 = vmatpush1.bf16.msra.mxu1 %v8106_v47  ;;  %v8191_v47 = vld [vmem:[#allocation5 + $0x12c] ss:$16 sps:$4 sm:$0xff]  }
  0xcc   : > { %5038 = vmatpush1.bf16.msra.mxu0 %v8107_v50  ;;  %4998 = vmatprep.subr.bf16.mxu1 %v8108_v51  ;;  %v8194_v50 = vld [vmem:[#allocation5 + $0x544] ss:$16 sps:$4 sm:$0xff]   ;;  %v8197_v51 = vld [vmem:[#allocation5 + $0x14c] ss:$16 sps:$4 sm:$0xff]  }
  0xcd   : > { %5039 = vmatprep.subr.bf16.mxu0 %v8110_v53  ;;  %v8192_v53 = vld [vmem:[#allocation5 + $0x540] ss:$16 sps:$4 sm:$0xff]  }
  0xcf   : > { %4999 = vmatpush1.bf16.msra.mxu1 %v8112_v54  ;;  %v8195_v54 = vld [vmem:[#allocation5 + $0x148] ss:$16 sps:$4 sm:$0xff]  }
  0xd0   : > { %5040 = vmatpush1.bf16.msra.mxu0 %v8113_v55  ;;  %5000 = vmatprep.subr.bf16.mxu1 %v8114_v56  ;;  %v8200_v55 = vld [vmem:[#allocation5 + $0x564] ss:$16 sps:$4 sm:$0xff]   ;;  %v8203_v56 = vld [vmem:[#allocation5 + $0x16c] ss:$16 sps:$4 sm:$0xff]  }
  0xd1   : > { %5041 = vmatprep.subr.bf16.mxu0 %v8116_v57  ;;  %v8198_v57 = vld [vmem:[#allocation5 + $0x560] ss:$16 sps:$4 sm:$0xff]  }
  0xd3   : > { %5001 = vmatpush1.bf16.msra.mxu1 %v8118_v58  ;;  %v8201_v58 = vld [vmem:[#allocation5 + $0x168] ss:$16 sps:$4 sm:$0xff]  }
  0xd4   : > { %5042 = vmatpush1.bf16.msra.mxu0 %v8119_v59  ;;  %5002 = vmatprep.subr.bf16.mxu1 %v8120_v60  ;;  %v8206_v59 = vld [vmem:[#allocation5 + $0x584] ss:$16 sps:$4 sm:$0xff]   ;;  %v8209_v60 = vld [vmem:[#allocation5 + $0x18c] ss:$16 sps:$4 sm:$0xff]  }
  0xd5   : > { %5043 = vmatprep.subr.bf16.mxu0 %v8122_v61  ;;  %v8204_v61 = vld [vmem:[#allocation5 + $0x580] ss:$16 sps:$4 sm:$0xff]  }
  0xd7   : > { %5003 = vmatpush1.bf16.msra.mxu1 %v8124_v62  ;;  %v8207_v62 = vld [vmem:[#allocation5 + $0x188] ss:$16 sps:$4 sm:$0xff]  }
  0xd8   : > { %5044 = vmatpush1.bf16.msra.mxu0 %v8125_v63  ;;  %5004 = vmatprep.subr.bf16.mxu1 %v8126_v0  ;;  %v8212_v63 = vld [vmem:[#allocation5 + $0x5a4] ss:$16 sps:$4 sm:$0xff]   ;;  %v8215_v0 = vld [vmem:[#allocation5 + $0x1ac] ss:$16 sps:$4 sm:$0xff]  }
  0xd9   : > { %5045 = vmatprep.subr.bf16.mxu0 %v8128_v1  ;;  %v8210_v1 = vld [vmem:[#allocation5 + $0x5a0] ss:$16 sps:$4 sm:$0xff]  }
  0xdb   : > { %5005 = vmatpush1.bf16.msra.mxu1 %v8130_v2  ;;  %v8213_v2 = vld [vmem:[#allocation5 + $0x1a8] ss:$16 sps:$4 sm:$0xff]  }
  0xdc   : > { %5046 = vmatpush1.bf16.msra.mxu0 %v8131_v3  ;;  %5466 = vmatprep.subr.bf16.mxu1 %v8137_v7  ;;  %v8218_v3 = vld [vmem:[#allocation5 + $0x5c4] ss:$16 sps:$4 sm:$0xff]  }
  0xdd   : > { %5056 = vmatprep.subr.bf16.mxu0 %v8134_v5  ;;  %v8216_v5 = vld [vmem:[#allocation5 + $0x5c0] ss:$16 sps:$4 sm:$0xff]   ;;  %v8224_v7 = vld [vmem:[#allocation5 + $0x5e4] ss:$16 sps:$4 sm:$0xff]  }
  0xde   : > { %5007 = vmatmul.mubr.bf16.vlgmr.msra.gmra.mrb[0].mxu1 %v9806_v8 }
  0xdf   : > { %5048 = vmatmul.mubr.bf16.vlgmr.msra.gmra.mrb[0].mxu0 %v9808_v11  ;;  %5467 = vmatpush1.bf16.msra.mxu1 %v8135_v10  ;;  %v8222_v10 = vld [vmem:[#allocation5 + $0x5e0] ss:$16 sps:$4 sm:$0xff]  }
  0xe0   : > { %5057 = vmatpush1.bf16.msra.mxu0 %v8132_v9  ;;  %5468 = vmatprep.subr.bf16.mxu1 %v8143_v13  ;;  %v8227_v9 = vld [vmem:[#allocation5 + $0x1ec] ss:$16 sps:$4 sm:$0xff]   ;;  %v302_v13 = vld [vmem:[%s9782_s27 + $0x20] sm:$0xff] }
  0xe1   : > { %5058 = vmatprep.subr.bf16.mxu0 %v8140_v12  ;;  %5498 = vmatprep.mubr.bf16.mxu1 %v9797_v48  ;;  %v8186_v48 = vld [vmem:[#allocation5 + $0x520] ss:$16 sps:$4 sm:$0xff]   ;;  %v8225_v12 = vld [vmem:[#allocation5 + $0x1e8] ss:$16 sps:$4 sm:$0xff]  }
  0xe2   : > { %5088 = vmatprep.mubr.bf16.mxu0 %v9814_v36 }
  0xe3   : > { %5469 = vmatpush1.bf16.msra.mxu1 %v8141_v15  ;;  %v8233_v15 = vld [vmem:[#allocation5 + $0x20c] ss:$16 sps:$4 sm:$0xff]  }
  0xe4   : > { %5059 = vmatpush1.bf16.msra.mxu0 %v8138_v14  ;;  %5470 = vmatprep.subr.bf16.mxu1 %v8149_v17  ;;  %v8230_v14 = vld [vmem:[#allocation5 + $0x604] ss:$16 sps:$4 sm:$0xff]   ;;  %v8228_v17 = vld [vmem:[#allocation5 + $0x600] ss:$16 sps:$4 sm:$0xff]  }
  0xe5   : > { %5060 = vmatprep.subr.bf16.mxu0 %v8146_v16  ;;  %v9818_v16 = vpack.c.bf16 %v302_v13, %v302_v13  ;;  %v8312_v13 = vld [vmem:[#allocation5 + $0x7c0] ss:$16 sps:$4 sm:$0xff]  }
  0xe7   : > { %5471 = vmatpush1.bf16.msra.mxu1 %v8147_v19  ;;  %v8236_v19 = vld [vmem:[#allocation5 + $0x624] ss:$16 sps:$4 sm:$0xff]  }
  0xe8   : > { %5061 = vmatpush1.bf16.msra.mxu0 %v8144_v18  ;;  %5472 = vmatprep.subr.bf16.mxu1 %v8155_v21  ;;  %v8231_v18 = vld [vmem:[#allocation5 + $0x208] ss:$16 sps:$4 sm:$0xff]  }
  0xe9   : > { %5062 = vmatprep.subr.bf16.mxu0 %v8152_v20  ;;  %v8239_v20 = vld [vmem:[#allocation5 + $0x22c] ss:$16 sps:$4 sm:$0xff]  }
  0xea   : > { %v305_v21 = vld [vmem:[%s9782_s27 + $0x38] sm:$0xff] }
  0xeb   : > { %5473 = vmatpush1.bf16.msra.mxu1 %v8153_v23  ;;  %v9823_v23 = vpack.c.bf16 %v305_v21, %v305_v21  ;;  %v304_v21 = vld [vmem:[%s9782_s27 + $0x30] sm:$0xff] }
  0xec   : > { %5063 = vmatpush1.bf16.msra.mxu0 %v8150_v22  ;;  %5474 = vmatprep.subr.bf16.mxu1 %v8161_v25  ;;  %v8234_v22 = vld [vmem:[#allocation5 + $0x620] ss:$16 sps:$4 sm:$0xff]   ;;  %v8242_v25 = vld [vmem:[#allocation5 + $0x644] ss:$16 sps:$4 sm:$0xff]  }
  0xed   : > { %5064 = vmatprep.subr.bf16.mxu0 %v8158_v24  ;;  %v8237_v24 = vld [vmem:[#allocation5 + $0x228] ss:$16 sps:$4 sm:$0xff]  }
  0xef   : > { %5475 = vmatpush1.bf16.msra.mxu1 %v8159_v27  ;;  %v8240_v27 = vld [vmem:[#allocation5 + $0x640] ss:$16 sps:$4 sm:$0xff]  }
  0xf0   : > { %5065 = vmatpush1.bf16.msra.mxu0 %v8156_v26  ;;  %5476 = vmatprep.subr.bf16.mxu1 %v8167_v29  ;;  %v8245_v26 = vld [vmem:[#allocation5 + $0x24c] ss:$16 sps:$4 sm:$0xff]   ;;  %v8248_v29 = vld [vmem:[#allocation5 + $0x664] ss:$16 sps:$4 sm:$0xff]  }
  0xf1   : > { %5066 = vmatprep.subr.bf16.mxu0 %v8164_v28  ;;  %v8243_v28 = vld [vmem:[#allocation5 + $0x248] ss:$16 sps:$4 sm:$0xff]  }
  0xf3   : > { %5477 = vmatpush1.bf16.msra.mxu1 %v8165_v31  ;;  %v8249_v31 = vld [vmem:[#allocation5 + $0x268] ss:$16 sps:$4 sm:$0xff]  }
  0xf4   : > { %5067 = vmatpush1.bf16.msra.mxu0 %v8162_v30  ;;  %5478 = vmatprep.subr.bf16.mxu1 %v8173_v33  ;;  %v8246_v30 = vld [vmem:[#allocation5 + $0x660] ss:$16 sps:$4 sm:$0xff]   ;;  %v8257_v33 = vld [vmem:[#allocation5 + $0x28c] ss:$16 sps:$4 sm:$0xff]  }
  0xf5   : > { %5068 = vmatprep.subr.bf16.mxu0 %v8170_v32  ;;  %v8254_v32 = vld [vmem:[#allocation5 + $0x684] ss:$16 sps:$4 sm:$0xff]  }
  0xf7   : > { %5479 = vmatpush1.bf16.msra.mxu1 %v8171_v37  ;;  %v8263_v37 = vld [vmem:[#allocation5 + $0x2ac] ss:$16 sps:$4 sm:$0xff]  }
  0xf8   : > { %5069 = vmatpush1.bf16.msra.mxu0 %v8168_v35  ;;  %5480 = vmatprep.subr.bf16.mxu1 %v8179_v39  ;;  %v8255_v35 = vld [vmem:[#allocation5 + $0x288] ss:$16 sps:$4 sm:$0xff]  }
  0xf9   : > { %5070 = vmatprep.subr.bf16.mxu0 %v8176_v38  ;;  %v8258_v38 = vld [vmem:[#allocation5 + $0x6a0] ss:$16 sps:$4 sm:$0xff]   ;;  %v8261_v39 = vld [vmem:[#allocation5 + $0x2a8] ss:$16 sps:$4 sm:$0xff]  }
  0xfb   : > { %5481 = vmatpush1.bf16.msra.mxu1 %v8177_v41  ;;  %v8269_v41 = vld [vmem:[#allocation5 + $0x2cc] ss:$16 sps:$4 sm:$0xff]  }
  0xfc   : > { %5071 = vmatpush1.bf16.msra.mxu0 %v8174_v40  ;;  %5482 = vmatprep.subr.bf16.mxu1 %v8185_v43  ;;  %v8266_v40 = vld [vmem:[#allocation5 + $0x6c4] ss:$16 sps:$4 sm:$0xff]   ;;  %v8267_v43 = vld [vmem:[#allocation5 + $0x2c8] ss:$16 sps:$4 sm:$0xff]  }
  0xfd   : > { %5072 = vmatprep.subr.bf16.mxu0 %v8182_v42  ;;  %v8264_v42 = vld [vmem:[#allocation5 + $0x6c0] ss:$16 sps:$4 sm:$0xff]  }
  0xff   : > { %5483 = vmatpush1.bf16.msra.mxu1 %v8183_v45  ;;  %v8275_v45 = vld [vmem:[#allocation5 + $0x2ec] ss:$16 sps:$4 sm:$0xff]  }
 0x100   : > { %5073 = vmatpush1.bf16.msra.mxu0 %v8180_v44  ;;  %5484 = vmatprep.subr.bf16.mxu1 %v8191_v47  ;;  %v8272_v44 = vld [vmem:[#allocation5 + $0x6e4] ss:$16 sps:$4 sm:$0xff]   ;;  %v8273_v47 = vld [vmem:[#allocation5 + $0x2e8] ss:$16 sps:$4 sm:$0xff]  }
 0x101   : > { %5074 = vmatprep.subr.bf16.mxu0 %v8188_v46  ;;  %v8270_v46 = vld [vmem:[#allocation5 + $0x6e0] ss:$16 sps:$4 sm:$0xff]  }
 0x103   : > { %5485 = vmatpush1.bf16.msra.mxu1 %v8189_v49  ;;  %v8281_v49 = vld [vmem:[#allocation5 + $0x30c] ss:$16 sps:$4 sm:$0xff]  }
 0x104   : > { %5075 = vmatpush1.bf16.msra.mxu0 %v8186_v48  ;;  %5486 = vmatprep.subr.bf16.mxu1 %v8197_v51  ;;  %v8278_v48 = vld [vmem:[#allocation5 + $0x704] ss:$16 sps:$4 sm:$0xff]   ;;  %v8279_v51 = vld [vmem:[#allocation5 + $0x308] ss:$16 sps:$4 sm:$0xff]  }
 0x105   : > { %5076 = vmatprep.subr.bf16.mxu0 %v8194_v50  ;;  %v8276_v50 = vld [vmem:[#allocation5 + $0x700] ss:$16 sps:$4 sm:$0xff]  }
 0x107   : > { %5487 = vmatpush1.bf16.msra.mxu1 %v8195_v54  ;;  %v8287_v54 = vld [vmem:[#allocation5 + $0x32c] ss:$16 sps:$4 sm:$0xff]  }
 0x108   : > { %5077 = vmatpush1.bf16.msra.mxu0 %v8192_v53  ;;  %5488 = vmatprep.subr.bf16.mxu1 %v8203_v56  ;;  %v8284_v53 = vld [vmem:[#allocation5 + $0x724] ss:$16 sps:$4 sm:$0xff]   ;;  %v8285_v56 = vld [vmem:[#allocation5 + $0x328] ss:$16 sps:$4 sm:$0xff]  }
 0x109   : > { %5078 = vmatprep.subr.bf16.mxu0 %v8200_v55  ;;  %v8282_v55 = vld [vmem:[#allocation5 + $0x720] ss:$16 sps:$4 sm:$0xff]  }
 0x10b   : > { %5489 = vmatpush1.bf16.msra.mxu1 %v8201_v58  ;;  %v8293_v58 = vld [vmem:[#allocation5 + $0x34c] ss:$16 sps:$4 sm:$0xff]  }
 0x10c   : > { %5079 = vmatpush1.bf16.msra.mxu0 %v8198_v57  ;;  %5490 = vmatprep.subr.bf16.mxu1 %v8209_v60  ;;  %v8290_v57 = vld [vmem:[#allocation5 + $0x744] ss:$16 sps:$4 sm:$0xff]   ;;  %v8291_v60 = vld [vmem:[#allocation5 + $0x348] ss:$16 sps:$4 sm:$0xff]  }
 0x10d   : > { %5080 = vmatprep.subr.bf16.mxu0 %v8206_v59  ;;  %v8288_v59 = vld [vmem:[#allocation5 + $0x740] ss:$16 sps:$4 sm:$0xff]  }
 0x10f   : > { %5491 = vmatpush1.bf16.msra.mxu1 %v8207_v62  ;;  %v8299_v62 = vld [vmem:[#allocation5 + $0x36c] ss:$16 sps:$4 sm:$0xff]  }
 0x110   : > { %5081 = vmatpush1.bf16.msra.mxu0 %v8204_v61  ;;  %5492 = vmatprep.subr.bf16.mxu1 %v8215_v0  ;;  %v8296_v61 = vld [vmem:[#allocation5 + $0x764] ss:$16 sps:$4 sm:$0xff]   ;;  %v8297_v0 = vld [vmem:[#allocation5 + $0x368] ss:$16 sps:$4 sm:$0xff]  }
 0x111   : > { %5082 = vmatprep.subr.bf16.mxu0 %v8212_v63  ;;  %v8294_v63 = vld [vmem:[#allocation5 + $0x760] ss:$16 sps:$4 sm:$0xff]  }
 0x113   : > { %5493 = vmatpush1.bf16.msra.mxu1 %v8213_v2  ;;  %v8305_v2 = vld [vmem:[#allocation5 + $0x38c] ss:$16 sps:$4 sm:$0xff]  }
 0x114   : > { %5083 = vmatpush1.bf16.msra.mxu0 %v8210_v1  ;;  %5494 = vmatprep.subr.bf16.mxu1 %v8221_v4  ;;  %v8302_v1 = vld [vmem:[#allocation5 + $0x784] ss:$16 sps:$4 sm:$0xff]   ;;  %v8303_v4 = vld [vmem:[#allocation5 + $0x388] ss:$16 sps:$4 sm:$0xff]  }
 0x115   : > { %5084 = vmatprep.subr.bf16.mxu0 %v8218_v3  ;;  %v8300_v3 = vld [vmem:[#allocation5 + $0x780] ss:$16 sps:$4 sm:$0xff]  }
 0x117   : > { %5495 = vmatpush1.bf16.msra.mxu1 %v8219_v6  ;;  %v8311_v6 = vld [vmem:[#allocation5 + $0x3ac] ss:$16 sps:$4 sm:$0xff]  }
 0x118   : > { %5085 = vmatpush1.bf16.msra.mxu0 %v8216_v5  ;;  %5496 = vmatprep.subr.bf16.mxu1 %v8227_v9  ;;  %v8308_v5 = vld [vmem:[#allocation5 + $0x7a4] ss:$16 sps:$4 sm:$0xff]   ;;  %v8309_v9 = vld [vmem:[#allocation5 + $0x3a8] ss:$16 sps:$4 sm:$0xff]  }
 0x119   : > { %5086 = vmatprep.subr.bf16.mxu0 %v8224_v7  ;;  %v8306_v7 = vld [vmem:[#allocation5 + $0x7a0] ss:$16 sps:$4 sm:$0xff]  }
 0x11b   : > { %5497 = vmatpush1.bf16.msra.mxu1 %v8225_v12  ;;  %v8317_v12 = vld [vmem:[#allocation5 + $0x3cc] ss:$16 sps:$4 sm:$0xff]  }
 0x11c   : > { %5087 = vmatpush1.bf16.msra.mxu0 %v8222_v10  ;;  %5507 = vmatprep.subr.bf16.mxu1 %v8233_v15  ;;  %v8314_v10 = vld [vmem:[#allocation5 + $0x7c4] ss:$16 sps:$4 sm:$0xff]  }
 0x11d   : > { %5097 = vmatprep.subr.bf16.mxu0 %v8230_v14  ;;  %v8315_v14 = vld [vmem:[#allocation5 + $0x3c8] ss:$16 sps:$4 sm:$0xff]   ;;  %v8320_v15 = vld [vmem:[#allocation5 + $0x7e4] ss:$16 sps:$4 sm:$0xff]  }
 0x11e   : > { %5499 = vmatmul.mubr.bf16.vlgmr.msra.gmra.mrb[4].mxu1 %v9806_v8  ;;  %v8251_v8 = vld [vmem:[#allocation5 + $0x26c] ss:$16 sps:$4 sm:$0xff]  }
 0x11f   : > { %5089 = vmatmul.mubr.bf16.vlgmr.msra.gmra.mrb[0].mxu0 %v9818_v16  ;;  %5508 = vmatpush1.bf16.msra.mxu1 %v8231_v18  ;;  %v8318_v18 = vld [vmem:[#allocation5 + $0x7e0] ss:$16 sps:$4 sm:$0xff]  }
 0x120   : > { %5098 = vmatpush1.bf16.msra.mxu0 %v8228_v17  ;;  %5509 = vmatprep.subr.bf16.mxu1 %v8239_v20  ;;  %v8323_v17 = vld [vmem:[#allocation5 + $0x3ec] ss:$16 sps:$4 sm:$0xff]   ;;  %v8326_v20 = vld [vmem:[#allocation5 + $0x804] ss:$16 sps:$4 sm:$0xff]  }
 0x121   : > { %5099 = vmatprep.subr.bf16.mxu0 %v8236_v19  ;;  %5129 = vmatprep.mubr.bf16.mxu0 %v9823_v23  ;;  %v8321_v19 = vld [vmem:[#allocation5 + $0x3e8] ss:$16 sps:$4 sm:$0xff]  }
 0x122   : > { %5539 = vmatprep.mubr.bf16.mxu1 %v9800_v52  ;;  %v8260_v52 = vld [vmem:[#allocation5 + $0x6a4] ss:$16 sps:$4 sm:$0xff]  }
 0x123   : > { %5510 = vmatpush1.bf16.msra.mxu1 %v8237_v24  ;;  %v8324_v24 = vld [vmem:[#allocation5 + $0x800] ss:$16 sps:$4 sm:$0xff]  }
 0x124   : > { %5100 = vmatpush1.bf16.msra.mxu0 %v8234_v22  ;;  %5511 = vmatprep.subr.bf16.mxu1 %v8245_v26  ;;  %v8329_v22 = vld [vmem:[#allocation5 + $0x40c] ss:$16 sps:$4 sm:$0xff]   ;;  %v9828_v26 = vpack.c.bf16 %v304_v21, %v304_v21  ;;  %v8411_v21 = vld [vmem:[#allocation5 + $0x5c8] ss:$16 sps:$4 sm:$0xff]  }
 0x125   : > { %5101 = vmatprep.subr.bf16.mxu0 %v8242_v25  ;;  %v8327_v25 = vld [vmem:[#allocation5 + $0x408] ss:$16 sps:$4 sm:$0xff]  }
 0x127   : > { %5512 = vmatpush1.bf16.msra.mxu1 %v8243_v28  ;;  %v8332_v28 = vld [vmem:[#allocation5 + $0x824] ss:$16 sps:$4 sm:$0xff]  }
 0x128   : > { %5102 = vmatpush1.bf16.msra.mxu0 %v8240_v27  ;;  %5513 = vmatprep.subr.bf16.mxu1 %v8251_v8  ;;  %v307_v27 = vld [vmem:[%s9782_s27 + $0x48] sm:$0xff] }
 0x129   : > { %5103 = vmatprep.subr.bf16.mxu0 %v8248_v29  ;;  %v8335_v29 = vld [vmem:[#allocation5 + $0x42c] ss:$16 sps:$4 sm:$0xff]   ;;  %v9831_v8 = vpack.c.bf16 %v307_v27, %v307_v27  ;;  %v8417_v27 = vld [vmem:[#allocation5 + $0x5e8] ss:$16 sps:$4 sm:$0xff]  }
 0x12b   : > { %5514 = vmatpush1.bf16.msra.mxu1 %v8249_v31  ;;  %v8333_v31 = vld [vmem:[#allocation5 + $0x428] ss:$16 sps:$4 sm:$0xff]  }
 0x12c   : > { %5104 = vmatpush1.bf16.msra.mxu0 %v8246_v30  ;;  %5515 = vmatprep.subr.bf16.mxu1 %v8257_v33  ;;  %v8330_v30 = vld [vmem:[#allocation5 + $0x820] ss:$16 sps:$4 sm:$0xff]   ;;  %v8341_v33 = vld [vmem:[#allocation5 + $0x44c] ss:$16 sps:$4 sm:$0xff]  }
 0x12d   : > { %5105 = vmatprep.subr.bf16.mxu0 %v8254_v32  ;;  %v8338_v32 = vld [vmem:[#allocation5 + $0x844] ss:$16 sps:$4 sm:$0xff]  }
 0x12f   : > { %5516 = vmatpush1.bf16.msra.mxu1 %v8255_v35  ;;  %v8339_v35 = vld [vmem:[#allocation5 + $0x448] ss:$16 sps:$4 sm:$0xff]  }
 0x130   : > { %5106 = vmatpush1.bf16.msra.mxu0 %v8252_v34  ;;  %5517 = vmatprep.subr.bf16.mxu1 %v8263_v37  ;;  %v8336_v34 = vld [vmem:[#allocation5 + $0x840] ss:$16 sps:$4 sm:$0xff]  }
 0x131   : > { %5107 = vmatprep.subr.bf16.mxu0 %v8260_v52  ;;  %v8344_v52 = vld [vmem:[#allocation5 + $0x864] ss:$16 sps:$4 sm:$0xff]   ;;  %v8342_v37 = vld [vmem:[#allocation5 + $0x860] ss:$16 sps:$4 sm:$0xff]  }
 0x133   : > { %5518 = vmatpush1.bf16.msra.mxu1 %v8261_v39  ;;  %v8350_v39 = vld [vmem:[#allocation5 + $0x884] ss:$16 sps:$4 sm:$0xff]  }
 0x134   : > { %5108 = vmatpush1.bf16.msra.mxu0 %v8258_v38  ;;  %5519 = vmatprep.subr.bf16.mxu1 %v8269_v41  ;;  %v8345_v38 = vld [vmem:[#allocation5 + $0x468] ss:$16 sps:$4 sm:$0xff]   ;;  %v8348_v41 = vld [vmem:[#allocation5 + $0x880] ss:$16 sps:$4 sm:$0xff]  }
 0x135   : > { %5109 = vmatprep.subr.bf16.mxu0 %v8266_v40  ;;  %v8353_v40 = vld [vmem:[#allocation5 + $0x48c] ss:$16 sps:$4 sm:$0xff]  }
 0x137   : > { %5520 = vmatpush1.bf16.msra.mxu1 %v8267_v43  ;;  %v8359_v43 = vld [vmem:[#allocation5 + $0x4ac] ss:$16 sps:$4 sm:$0xff]  }
 0x138   : > { %5110 = vmatpush1.bf16.msra.mxu0 %v8264_v42  ;;  %5521 = vmatprep.subr.bf16.mxu1 %v8275_v45  ;;  %v8351_v42 = vld [vmem:[#allocation5 + $0x488] ss:$16 sps:$4 sm:$0xff]  }
 0x139   : > { %5111 = vmatprep.subr.bf16.mxu0 %v8272_v44  ;;  %v8354_v44 = vld [vmem:[#allocation5 + $0x8a0] ss:$16 sps:$4 sm:$0xff]   ;;  %v8357_v45 = vld [vmem:[#allocation5 + $0x4a8] ss:$16 sps:$4 sm:$0xff]  }
 0x13b   : > { %5522 = vmatpush1.bf16.msra.mxu1 %v8273_v47  ;;  %v8365_v47 = vld [vmem:[#allocation5 + $0x4cc] ss:$16 sps:$4 sm:$0xff]  }
 0x13c   : > { %5112 = vmatpush1.bf16.msra.mxu0 %v8270_v46  ;;  %5523 = vmatprep.subr.bf16.mxu1 %v8281_v49  ;;  %v8362_v46 = vld [vmem:[#allocation5 + $0x8c4] ss:$16 sps:$4 sm:$0xff]   ;;  %v8363_v49 = vld [vmem:[#allocation5 + $0x4c8] ss:$16 sps:$4 sm:$0xff]  }
 0x13d   : > { %5113 = vmatprep.subr.bf16.mxu0 %v8278_v48  ;;  %v8360_v48 = vld [vmem:[#allocation5 + $0x8c0] ss:$16 sps:$4 sm:$0xff]  }
 0x13f   : > { %5524 = vmatpush1.bf16.msra.mxu1 %v8279_v51  ;;  %v8371_v51 = vld [vmem:[#allocation5 + $0x4ec] ss:$16 sps:$4 sm:$0xff]  }
 0x140   : > { %5114 = vmatpush1.bf16.msra.mxu0 %v8276_v50  ;;  %5525 = vmatprep.subr.bf16.mxu1 %v8287_v54  ;;  %v8368_v50 = vld [vmem:[#allocation5 + $0x8e4] ss:$16 sps:$4 sm:$0xff]   ;;  %v8369_v54 = vld [vmem:[#allocation5 + $0x4e8] ss:$16 sps:$4 sm:$0xff]  }
 0x141   : > { %5115 = vmatprep.subr.bf16.mxu0 %v8284_v53  ;;  %v8366_v53 = vld [vmem:[#allocation5 + $0x8e0] ss:$16 sps:$4 sm:$0xff]  }
 0x143   : > { %5526 = vmatpush1.bf16.msra.mxu1 %v8285_v56  ;;  %v8377_v56 = vld [vmem:[#allocation5 + $0x50c] ss:$16 sps:$4 sm:$0xff]  }
 0x144   : > { %5116 = vmatpush1.bf16.msra.mxu0 %v8282_v55  ;;  %5527 = vmatprep.subr.bf16.mxu1 %v8293_v58  ;;  %v8374_v55 = vld [vmem:[#allocation5 + $0x904] ss:$16 sps:$4 sm:$0xff]   ;;  %v8375_v58 = vld [vmem:[#allocation5 + $0x508] ss:$16 sps:$4 sm:$0xff]  }
 0x145   : > { %5117 = vmatprep.subr.bf16.mxu0 %v8290_v57  ;;  %v8372_v57 = vld [vmem:[#allocation5 + $0x900] ss:$16 sps:$4 sm:$0xff]  }
 0x147   : > { %5528 = vmatpush1.bf16.msra.mxu1 %v8291_v60  ;;  %v8383_v60 = vld [vmem:[#allocation5 + $0x52c] ss:$16 sps:$4 sm:$0xff]  }
 0x148   : > { %5118 = vmatpush1.bf16.msra.mxu0 %v8288_v59  ;;  %5529 = vmatprep.subr.bf16.mxu1 %v8299_v62  ;;  %v8380_v59 = vld [vmem:[#allocation5 + $0x924] ss:$16 sps:$4 sm:$0xff]   ;;  %v8381_v62 = vld [vmem:[#allocation5 + $0x528] ss:$16 sps:$4 sm:$0xff]  }
 0x149   : > { %5119 = vmatprep.subr.bf16.mxu0 %v8296_v61  ;;  %v8378_v61 = vld [vmem:[#allocation5 + $0x920] ss:$16 sps:$4 sm:$0xff]  }
 0x14b   : > { %5530 = vmatpush1.bf16.msra.mxu1 %v8297_v0  ;;  %v8389_v0 = vld [vmem:[#allocation5 + $0x54c] ss:$16 sps:$4 sm:$0xff]  }
 0x14c   : > { %5120 = vmatpush1.bf16.msra.mxu0 %v8294_v63  ;;  %5531 = vmatprep.subr.bf16.mxu1 %v8305_v2  ;;  %v8386_v63 = vld [vmem:[#allocation5 + $0x944] ss:$16 sps:$4 sm:$0xff]   ;;  %v8387_v2 = vld [vmem:[#allocation5 + $0x548] ss:$16 sps:$4 sm:$0xff]  }
 0x14d   : > { %5121 = vmatprep.subr.bf16.mxu0 %v8302_v1  ;;  %v8384_v1 = vld [vmem:[#allocation5 + $0x940] ss:$16 sps:$4 sm:$0xff]  }
 0x14f   : > { %5532 = vmatpush1.bf16.msra.mxu1 %v8303_v4  ;;  %v8395_v4 = vld [vmem:[#allocation5 + $0x56c] ss:$16 sps:$4 sm:$0xff]  }
 0x150   : > { %5122 = vmatpush1.bf16.msra.mxu0 %v8300_v3  ;;  %5533 = vmatprep.subr.bf16.mxu1 %v8311_v6  ;;  %v8392_v3 = vld [vmem:[#allocation5 + $0x964] ss:$16 sps:$4 sm:$0xff]   ;;  %v8393_v6 = vld [vmem:[#allocation5 + $0x568] ss:$16 sps:$4 sm:$0xff]  }
 0x151   : > { %5123 = vmatprep.subr.bf16.mxu0 %v8308_v5  ;;  %v8390_v5 = vld [vmem:[#allocation5 + $0x960] ss:$16 sps:$4 sm:$0xff]  }
 0x153   : > { %5534 = vmatpush1.bf16.msra.mxu1 %v8309_v9  ;;  %v8401_v9 = vld [vmem:[#allocation5 + $0x58c] ss:$16 sps:$4 sm:$0xff]  }
 0x154   : > { %5124 = vmatpush1.bf16.msra.mxu0 %v8306_v7  ;;  %5535 = vmatprep.subr.bf16.mxu1 %v8317_v12  ;;  %v8398_v7 = vld [vmem:[#allocation5 + $0x984] ss:$16 sps:$4 sm:$0xff]   ;;  %v8399_v12 = vld [vmem:[#allocation5 + $0x588] ss:$16 sps:$4 sm:$0xff]  }
 0x155   : > { %5125 = vmatprep.subr.bf16.mxu0 %v8314_v10  ;;  %v8396_v10 = vld [vmem:[#allocation5 + $0x980] ss:$16 sps:$4 sm:$0xff]  }
 0x157   : > { %5536 = vmatpush1.bf16.msra.mxu1 %v8315_v14  ;;  %v8407_v14 = vld [vmem:[#allocation5 + $0x5ac] ss:$16 sps:$4 sm:$0xff]  }
 0x158   : > { %5126 = vmatpush1.bf16.msra.mxu0 %v8312_v13  ;;  %5537 = vmatprep.subr.bf16.mxu1 %v8323_v17  ;;  %v8404_v13 = vld [vmem:[#allocation5 + $0x9a4] ss:$16 sps:$4 sm:$0xff]   ;;  %v8405_v17 = vld [vmem:[#allocation5 + $0x5a8] ss:$16 sps:$4 sm:$0xff]  }
 0x159   : > { %5127 = vmatprep.subr.bf16.mxu0 %v8320_v15  ;;  %v8402_v15 = vld [vmem:[#allocation5 + $0x9a0] ss:$16 sps:$4 sm:$0xff]  }
 0x15b   : > { %5538 = vmatpush1.bf16.msra.mxu1 %v8321_v19  ;;  %v8413_v19 = vld [vmem:[#allocation5 + $0x5cc] ss:$16 sps:$4 sm:$0xff]  }
 0x15c   : > { %5128 = vmatpush1.bf16.msra.mxu0 %v8318_v18  ;;  %5548 = vmatprep.subr.bf16.mxu1 %v8329_v22  ;;  %v8410_v18 = vld [vmem:[#allocation5 + $0x9c4] ss:$16 sps:$4 sm:$0xff]  }
 0x15d   : > { %5138 = vmatprep.subr.bf16.mxu0 %v8326_v20  ;;  %v8408_v20 = vld [vmem:[#allocation5 + $0x9c0] ss:$16 sps:$4 sm:$0xff]   ;;  %v8416_v22 = vld [vmem:[#allocation5 + $0x9e4] ss:$16 sps:$4 sm:$0xff]  }
 0x15e   : > { %5540 = vmatmul.mubr.bf16.vlgmr.msra.gmra.mrb[4].mxu1 %v9808_v11  ;;  %v8347_v11 = vld [vmem:[#allocation5 + $0x46c] ss:$16 sps:$4 sm:$0xff]  }
 0x15f   : > { %5130 = vmatmul.mubr.bf16.vlgmr.msra.gmra.mrb[0].mxu0 %v9828_v26  ;;  %5549 = vmatpush1.bf16.msra.mxu1 %v8327_v25  ;;  %v8414_v25 = vld [vmem:[#allocation5 + $0x9e0] ss:$16 sps:$4 sm:$0xff]  }
 0x160   : > { %5139 = vmatpush1.bf16.msra.mxu0 %v8324_v24  ;;  %5550 = vmatprep.subr.bf16.mxu1 %v8335_v29  ;;  %v8419_v24 = vld [vmem:[#allocation5 + $0x5ec] ss:$16 sps:$4 sm:$0xff]   ;;  %v8422_v29 = vld [vmem:[#allocation5 + $0xa04] ss:$16 sps:$4 sm:$0xff]  }
 0x161   : > { %5140 = vmatprep.subr.bf16.mxu0 %v8332_v28  ;;  %5170 = vmatprep.mubr.bf16.mxu0 %v9831_v8  ;;  %v306_v28 = vld [vmem:[%s9782_s27 + $0x40] sm:$0xff] }
 0x162   : > { %5580 = vmatprep.mubr.bf16.mxu1 %v9814_v36  ;;  %v8356_v36 = vld [vmem:[#allocation5 + $0x8a4] ss:$16 sps:$4 sm:$0xff]  }
 0x163   : > { %5551 = vmatpush1.bf16.msra.mxu1 %v8333_v31  ;;  %v9838_v31 = vpack.c.bf16 %v306_v28, %v306_v28  ;;  %v8498_v28 = vld [vmem:[#allocation5 + $0xba0] ss:$16 sps:$4 sm:$0xff]  }
 0x164   : > { %5141 = vmatpush1.bf16.msra.mxu0 %v8330_v30  ;;  %5552 = vmatprep.subr.bf16.mxu1 %v8341_v33  ;;  %v8425_v30 = vld [vmem:[#allocation5 + $0x60c] ss:$16 sps:$4 sm:$0xff]   ;;  %v8420_v33 = vld [vmem:[#allocation5 + $0xa00] ss:$16 sps:$4 sm:$0xff]  }
 0x165   : > { %5142 = vmatprep.subr.bf16.mxu0 %v8338_v32  ;;  %v309_v32 = vld [vmem:[%s9782_s27 + $0x58] sm:$0xff] }
 0x167   : > { %5553 = vmatpush1.bf16.msra.mxu1 %v8339_v35  ;;  %v8428_v35 = vld [vmem:[#allocation5 + $0xa24] ss:$16 sps:$4 sm:$0xff]  }
 0x168   : > { %5143 = vmatpush1.bf16.msra.mxu0 %v8336_v34  ;;  %5554 = vmatprep.subr.bf16.mxu1 %v8347_v11  ;;  %v8423_v34 = vld [vmem:[#allocation5 + $0x608] ss:$16 sps:$4 sm:$0xff]   ;;  %v9841_v11 = vpack.c.bf16 %v309_v32, %v309_v32  ;;  %v8509_v32 = vld [vmem:[#allocation5 + $0x7cc] ss:$16 sps:$4 sm:$0xff]  }
 0x169   : > { %5144 = vmatprep.subr.bf16.mxu0 %v8344_v52  ;;  %v8431_v52 = vld [vmem:[#allocation5 + $0x62c] ss:$16 sps:$4 sm:$0xff]  }
 0x16b   : > { %5555 = vmatpush1.bf16.msra.mxu1 %v8345_v38  ;;  %v8429_v38 = vld [vmem:[#allocation5 + $0x628] ss:$16 sps:$4 sm:$0xff]  }
 0x16c   : > { %5145 = vmatpush1.bf16.msra.mxu0 %v8342_v37  ;;  %5556 = vmatprep.subr.bf16.mxu1 %v8353_v40  ;;  %v8426_v37 = vld [vmem:[#allocation5 + $0xa20] ss:$16 sps:$4 sm:$0xff]   ;;  %v8437_v40 = vld [vmem:[#allocation5 + $0x64c] ss:$16 sps:$4 sm:$0xff]  }
 0x16d   : > { %5146 = vmatprep.subr.bf16.mxu0 %v8350_v39  ;;  %v8434_v39 = vld [vmem:[#allocation5 + $0xa44] ss:$16 sps:$4 sm:$0xff]  }
 0x16f   : > { %5557 = vmatpush1.bf16.msra.mxu1 %v8351_v42  ;;  %v8435_v42 = vld [vmem:[#allocation5 + $0x648] ss:$16 sps:$4 sm:$0xff]  }
 0x170   : > { %5147 = vmatpush1.bf16.msra.mxu0 %v8348_v41  ;;  %5558 = vmatprep.subr.bf16.mxu1 %v8359_v43  ;;  %v8432_v41 = vld [vmem:[#allocation5 + $0xa40] ss:$16 sps:$4 sm:$0xff]  }
 0x171   : > { %5148 = vmatprep.subr.bf16.mxu0 %v8356_v36  ;;  %v8440_v36 = vld [vmem:[#allocation5 + $0xa64] ss:$16 sps:$4 sm:$0xff]   ;;  %v8438_v43 = vld [vmem:[#allocation5 + $0xa60] ss:$16 sps:$4 sm:$0xff]  }
 0x173   : > { %5559 = vmatpush1.bf16.msra.mxu1 %v8357_v45  ;;  %v8446_v45 = vld [vmem:[#allocation5 + $0xa84] ss:$16 sps:$4 sm:$0xff]  }
 0x174   : > { %5149 = vmatpush1.bf16.msra.mxu0 %v8354_v44  ;;  %5560 = vmatprep.subr.bf16.mxu1 %v8365_v47  ;;  %v8441_v44 = vld [vmem:[#allocation5 + $0x668] ss:$16 sps:$4 sm:$0xff]   ;;  %v8444_v47 = vld [vmem:[#allocation5 + $0xa80] ss:$16 sps:$4 sm:$0xff]  }
 0x175   : > { %5150 = vmatprep.subr.bf16.mxu0 %v8362_v46  ;;  %v8449_v46 = vld [vmem:[#allocation5 + $0x68c] ss:$16 sps:$4 sm:$0xff]  }
 0x177   : > { %5561 = vmatpush1.bf16.msra.mxu1 %v8363_v49  ;;  %v8455_v49 = vld [vmem:[#allocation5 + $0x6ac] ss:$16 sps:$4 sm:$0xff]  }
 0x178   : > { %5151 = vmatpush1.bf16.msra.mxu0 %v8360_v48  ;;  %5562 = vmatprep.subr.bf16.mxu1 %v8371_v51  ;;  %v8447_v48 = vld [vmem:[#allocation5 + $0x688] ss:$16 sps:$4 sm:$0xff]  }
 0x179   : > { %5152 = vmatprep.subr.bf16.mxu0 %v8368_v50  ;;  %v8450_v50 = vld [vmem:[#allocation5 + $0xaa0] ss:$16 sps:$4 sm:$0xff]   ;;  %v8453_v51 = vld [vmem:[#allocation5 + $0x6a8] ss:$16 sps:$4 sm:$0xff]  }
 0x17b   : > { %5563 = vmatpush1.bf16.msra.mxu1 %v8369_v54  ;;  %v8461_v54 = vld [vmem:[#allocation5 + $0x6cc] ss:$16 sps:$4 sm:$0xff]  }
 0x17c   : > { %5153 = vmatpush1.bf16.msra.mxu0 %v8366_v53  ;;  %5564 = vmatprep.subr.bf16.mxu1 %v8377_v56  ;;  %v8458_v53 = vld [vmem:[#allocation5 + $0xac4] ss:$16 sps:$4 sm:$0xff]  }
 0x17d   : > { %5154 = vmatprep.subr.bf16.mxu0 %v8374_v55 }
 0x17f   : > { %5565 = vmatpush1.bf16.msra.mxu1 %v8375_v58  ;;  %v8456_v58 = vld [vmem:[#allocation5 + $0xac0] ss:$16 sps:$4 sm:$0xff]  }
 0x180   : > { %5155 = vmatpush1.bf16.msra.mxu0 %v8372_v57  ;;  %5566 = vmatprep.subr.bf16.mxu1 %v8383_v60 }
 0x181   : > { %5156 = vmatprep.subr.bf16.mxu0 %v8380_v59  ;;  %v8459_v59 = vld [vmem:[#allocation5 + $0x6c8] ss:$16 sps:$4 sm:$0xff]  }
 0x183   : > { %5567 = vmatpush1.bf16.msra.mxu1 %v8381_v62  ;;  %v8467_v62 = vld [vmem:[#allocation5 + $0x6ec] ss:$16 sps:$4 sm:$0xff]  }
 0x184   : > { %5157 = vmatpush1.bf16.msra.mxu0 %v8378_v61  ;;  %5568 = vmatprep.subr.bf16.mxu1 %v8389_v0  ;;  %v8464_v61 = vld [vmem:[#allocation5 + $0xae4] ss:$16 sps:$4 sm:$0xff]   ;;  %v8465_v0 = vld [vmem:[#allocation5 + $0x6e8] ss:$16 sps:$4 sm:$0xff]  }
 0x185   : > { %5158 = vmatprep.subr.bf16.mxu0 %v8386_v63  ;;  %v8462_v63 = vld [vmem:[#allocation5 + $0xae0] ss:$16 sps:$4 sm:$0xff]  }
 0x187   : > { %5569 = vmatpush1.bf16.msra.mxu1 %v8387_v2  ;;  %v8473_v2 = vld [vmem:[#allocation5 + $0x70c] ss:$16 sps:$4 sm:$0xff]  }
 0x188   : > { %5159 = vmatpush1.bf16.msra.mxu0 %v8384_v1  ;;  %5570 = vmatprep.subr.bf16.mxu1 %v8395_v4  ;;  %v8470_v1 = vld [vmem:[#allocation5 + $0xb04] ss:$16 sps:$4 sm:$0xff]   ;;  %v8471_v4 = vld [vmem:[#allocation5 + $0x708] ss:$16 sps:$4 sm:$0xff]  }
 0x189   : > { %5160 = vmatprep.subr.bf16.mxu0 %v8392_v3  ;;  %v8468_v3 = vld [vmem:[#allocation5 + $0xb00] ss:$16 sps:$4 sm:$0xff]  }
 0x18b   : > { %5571 = vmatpush1.bf16.msra.mxu1 %v8393_v6  ;;  %v8479_v6 = vld [vmem:[#allocation5 + $0x72c] ss:$16 sps:$4 sm:$0xff]  }
 0x18c   : > { %5161 = vmatpush1.bf16.msra.mxu0 %v8390_v5  ;;  %5572 = vmatprep.subr.bf16.mxu1 %v8401_v9  ;;  %v8476_v5 = vld [vmem:[#allocation5 + $0xb24] ss:$16 sps:$4 sm:$0xff]   ;;  %v8477_v9 = vld [vmem:[#allocation5 + $0x728] ss:$16 sps:$4 sm:$0xff]  }
 0x18d   : > { %5162 = vmatprep.subr.bf16.mxu0 %v8398_v7  ;;  %v8474_v7 = vld [vmem:[#allocation5 + $0xb20] ss:$16 sps:$4 sm:$0xff]  }
 0x18f   : > { %5573 = vmatpush1.bf16.msra.mxu1 %v8399_v12  ;;  %v8485_v12 = vld [vmem:[#allocation5 + $0x74c] ss:$16 sps:$4 sm:$0xff]  }
 0x190   : > { %5163 = vmatpush1.bf16.msra.mxu0 %v8396_v10  ;;  %5574 = vmatprep.subr.bf16.mxu1 %v8407_v14  ;;  %v8482_v10 = vld [vmem:[#allocation5 + $0xb44] ss:$16 sps:$4 sm:$0xff]   ;;  %v8483_v14 = vld [vmem:[#allocation5 + $0x748] ss:$16 sps:$4 sm:$0xff]  }
 0x191   : > { %5164 = vmatprep.subr.bf16.mxu0 %v8404_v13  ;;  %v8480_v13 = vld [vmem:[#allocation5 + $0xb40] ss:$16 sps:$4 sm:$0xff]  }
 0x193   : > { %5575 = vmatpush1.bf16.msra.mxu1 %v8405_v17  ;;  %v8491_v17 = vld [vmem:[#allocation5 + $0x76c] ss:$16 sps:$4 sm:$0xff]  }
 0x194   : > { %5165 = vmatpush1.bf16.msra.mxu0 %v8402_v15  ;;  %5576 = vmatprep.subr.bf16.mxu1 %v8413_v19  ;;  %v8488_v15 = vld [vmem:[#allocation5 + $0xb64] ss:$16 sps:$4 sm:$0xff]   ;;  %v8489_v19 = vld [vmem:[#allocation5 + $0x768] ss:$16 sps:$4 sm:$0xff]  }
 0x195   : > { %5166 = vmatprep.subr.bf16.mxu0 %v8410_v18  ;;  %v8486_v18 = vld [vmem:[#allocation5 + $0xb60] ss:$16 sps:$4 sm:$0xff]  }
 0x197   : > { %5577 = vmatpush1.bf16.msra.mxu1 %v8411_v21  ;;  %v8497_v21 = vld [vmem:[#allocation5 + $0x78c] ss:$16 sps:$4 sm:$0xff]  }
 0x198   : > { %5167 = vmatpush1.bf16.msra.mxu0 %v8408_v20  ;;  %5578 = vmatprep.subr.bf16.mxu1 %v8419_v24  ;;  %v8494_v20 = vld [vmem:[#allocation5 + $0xb84] ss:$16 sps:$4 sm:$0xff]   ;;  %v8495_v24 = vld [vmem:[#allocation5 + $0x788] ss:$16 sps:$4 sm:$0xff]  }
 0x199   : > { %5168 = vmatprep.subr.bf16.mxu0 %v8416_v22  ;;  %v8492_v22 = vld [vmem:[#allocation5 + $0xb80] ss:$16 sps:$4 sm:$0xff]  }
 0x19b   : > { %5579 = vmatpush1.bf16.msra.mxu1 %v8417_v27  ;;  %v8503_v27 = vld [vmem:[#allocation5 + $0x7ac] ss:$16 sps:$4 sm:$0xff]  }
 0x19c   : > { %5169 = vmatpush1.bf16.msra.mxu0 %v8414_v25  ;;  %5589 = vmatprep.subr.bf16.mxu1 %v8425_v30  ;;  %v8500_v25 = vld [vmem:[#allocation5 + $0xba4] ss:$16 sps:$4 sm:$0xff]  }
 0x19d   : > { %5179 = vmatprep.subr.bf16.mxu0 %v8422_v29  ;;  %v8501_v29 = vld [vmem:[#allocation5 + $0x7a8] ss:$16 sps:$4 sm:$0xff]   ;;  %v8506_v30 = vld [vmem:[#allocation5 + $0xbc4] ss:$16 sps:$4 sm:$0xff]  }
 0x19e   : > { %5581 = vmatmul.mubr.bf16.vlgmr.msra.gmra.mrb[4].mxu1 %v9818_v16  ;;  %v8443_v16 = vld [vmem:[#allocation5 + $0x66c] ss:$16 sps:$4 sm:$0xff]  }
 0x19f   : > { %5171 = vmatmul.mubr.bf16.vlgmr.msra.gmra.mrb[0].mxu0 %v9838_v31  ;;  %5590 = vmatpush1.bf16.msra.mxu1 %v8423_v34  ;;  %v8507_v34 = vld [vmem:[#allocation5 + $0x7c8] ss:$16 sps:$4 sm:$0xff]  }
 0x1a0   : > { %5180 = vmatpush1.bf16.msra.mxu0 %v8420_v33  ;;  %5591 = vmatprep.subr.bf16.mxu1 %v8431_v52  ;;  %v8504_v33 = vld [vmem:[#allocation5 + $0xbc0] ss:$16 sps:$4 sm:$0xff]   ;;  %v8515_v52 = vld [vmem:[#allocation5 + $0x7ec] ss:$16 sps:$4 sm:$0xff]  }
 0x1a1   : > { %5181 = vmatprep.subr.bf16.mxu0 %v8428_v35  ;;  %5211 = vmatprep.mubr.bf16.mxu0 %v9841_v11  ;;  %v8512_v35 = vld [vmem:[#allocation5 + $0xbe4] ss:$16 sps:$4 sm:$0xff]  }
 0x1a2   : > { %5621 = vmatprep.mubr.bf16.mxu1 %v9823_v23  ;;  %v8452_v23 = vld [vmem:[#allocation5 + $0xaa4] ss:$16 sps:$4 sm:$0xff]  }
 0x1a3   : > { %5592 = vmatpush1.bf16.msra.mxu1 %v8429_v38  ;;  %v8513_v38 = vld [vmem:[#allocation5 + $0x7e8] ss:$16 sps:$4 sm:$0xff]  }
 0x1a4   : > { %5182 = vmatpush1.bf16.msra.mxu0 %v8426_v37  ;;  %5593 = vmatprep.subr.bf16.mxu1 %v8437_v40  ;;  %v8510_v37 = vld [vmem:[#allocation5 + $0xbe0] ss:$16 sps:$4 sm:$0xff]  }
 0x1a5   : > { %5183 = vmatprep.subr.bf16.mxu0 %v8434_v39  ;;  %v8518_v39 = vld [vmem:[#allocation5 + $0xc04] ss:$16 sps:$4 sm:$0xff]  }
 0x1a6   : > { %v308_v40 = vld [vmem:[%s9782_s27 + $0x50] sm:$0xff] }
 0x1a7   : > { %5594 = vmatpush1.bf16.msra.mxu1 %v8435_v42  ;;  %v311_v42 = vld [vmem:[%s9782_s27 + $0x68] sm:$0xff] }
 0x1a8   : > { %5184 = vmatpush1.bf16.msra.mxu0 %v8432_v41  ;;  %5595 = vmatprep.subr.bf16.mxu1 %v8443_v16  ;;  %v8521_v41 = vld [vmem:[#allocation5 + $0x80c] ss:$16 sps:$4 sm:$0xff]   ;;  %v8516_v16 = vld [vmem:[#allocation5 + $0xc00] ss:$16 sps:$4 sm:$0xff]  }
 0x1a9   : > { %5185 = vmatprep.subr.bf16.mxu0 %v8440_v36  ;;  %v9853_v36 = vpack.c.bf16 %v308_v40, %v308_v40  ;;  %v8605_v40 = vld [vmem:[#allocation5 + $0x9cc] ss:$16 sps:$4 sm:$0xff]  }
 0x1ab   : > { %5596 = vmatpush1.bf16.msra.mxu1 %v8441_v44  ;;  %v8524_v44 = vld [vmem:[#allocation5 + $0xc24] ss:$16 sps:$4 sm:$0xff]  }
 0x1ac   : > { %5186 = vmatpush1.bf16.msra.mxu0 %v8438_v43  ;;  %5597 = vmatprep.subr.bf16.mxu1 %v8449_v46  ;;  %v8519_v43 = vld [vmem:[#allocation5 + $0x808] ss:$16 sps:$4 sm:$0xff]   ;;  %v9855_v46 = vpack.c.bf16 %v311_v42, %v311_v42 }
 0x1ad   : > { %5187 = vmatprep.subr.bf16.mxu0 %v8446_v45  ;;  %v8527_v45 = vld [vmem:[#allocation5 + $0x82c] ss:$16 sps:$4 sm:$0xff]   ;;  %v8603_v42 = vld [vmem:[#allocation5 + $0x9c8] ss:$16 sps:$4 sm:$0xff]  }
 0x1af   : > { %5598 = vmatpush1.bf16.msra.mxu1 %v8447_v48  ;;  %v8525_v48 = vld [vmem:[#allocation5 + $0x828] ss:$16 sps:$4 sm:$0xff]  }
 0x1b0   : > { %5188 = vmatpush1.bf16.msra.mxu0 %v8444_v47  ;;  %5599 = vmatprep.subr.bf16.mxu1 %v8455_v49  ;;  %v8522_v47 = vld [vmem:[#allocation5 + $0xc20] ss:$16 sps:$4 sm:$0xff]   ;;  %v8533_v49 = vld [vmem:[#allocation5 + $0x84c] ss:$16 sps:$4 sm:$0xff]  }
 0x1b1   : > { %5189 = vmatprep.subr.bf16.mxu0 %v8452_v23  ;;  %v9847_v55 = vpop.f32.mrb[0].mxu1  ;;  %v8530_v23 = vld [vmem:[#allocation5 + $0xc44] ss:$16 sps:$4 sm:$0xff]  }
 0x1b2   : > { %v9849_v56 = vpop.f32.mrb[1].mxu1 }
 0x1b3   : > { %v5012_v57 = vpop.f32.mrb[2].mxu1  ;;  %5600 = vmatpush1.bf16.msra.mxu1 %v8453_v51  ;;  %v8531_v51 = vld [vmem:[#allocation5 + $0x848] ss:$16 sps:$4 sm:$0xff]  }
 0x1b4   : > { %5190 = vmatpush1.bf16.msra.mxu0 %v8450_v50  ;;  %v5013_v60 = vpop.f32.mrb[3].mxu1  ;;  %5601 = vmatprep.subr.bf16.mxu1 %v8461_v54  ;;  %v8528_v50 = vld [vmem:[#allocation5 + $0xc40] ss:$16 sps:$4 sm:$0xff]   ;;  %v8537_v57 = vld [vmem:[#allocation5 + $0x868] ss:$16 sps:$4 sm:$0xff]  }
 0x1b5   : > { %5191 = vmatprep.subr.bf16.mxu0 %v8458_v53  ;;  %v8536_v53 = vld [vmem:[#allocation5 + $0xc64] ss:$16 sps:$4 sm:$0xff]   ;;  %v8534_v54 = vld [vmem:[#allocation5 + $0xc60] ss:$16 sps:$4 sm:$0xff]  }
 0x1b6   : > { %v8540_v60 = vld [vmem:[#allocation5 + $0xc80] ss:$16 sps:$4 sm:$0xff]  }
 0x1b7   : > { %5602 = vmatpush1.bf16.msra.mxu1 %v8459_v59  ;;  %v8545_v59 = vld [vmem:[#allocation5 + $0x88c] ss:$16 sps:$4 sm:$0xff]  }
 0x1b8   : > { %5192 = vmatpush1.bf16.msra.mxu0 %v8456_v58  ;;  %5603 = vmatprep.subr.bf16.mxu1 %v8467_v62  ;;  %v8542_v58 = vld [vmem:[#allocation5 + $0xc84] ss:$16 sps:$4 sm:$0xff]   ;;  %v8551_v62 = vld [vmem:[#allocation5 + $0x8ac] ss:$16 sps:$4 sm:$0xff]  }
 0x1b9   : > { %5193 = vmatprep.subr.bf16.mxu0 %v8464_v61  ;;  %v8548_v61 = vld [vmem:[#allocation5 + $0xca4] ss:$16 sps:$4 sm:$0xff]  }
 0x1bb   : > { %5604 = vmatpush1.bf16.msra.mxu1 %v8465_v0  ;;  %v8549_v0 = vld [vmem:[#allocation5 + $0x8a8] ss:$16 sps:$4 sm:$0xff]  }
 0x1bc   : > { %5194 = vmatpush1.bf16.msra.mxu0 %v8462_v63  ;;  %5605 = vmatprep.subr.bf16.mxu1 %v8473_v2  ;;  %v8546_v63 = vld [vmem:[#allocation5 + $0xca0] ss:$16 sps:$4 sm:$0xff]   ;;  %v8557_v2 = vld [vmem:[#allocation5 + $0x8cc] ss:$16 sps:$4 sm:$0xff]  }
 0x1bd   : > { %5195 = vmatprep.subr.bf16.mxu0 %v8470_v1  ;;  %v8554_v1 = vld [vmem:[#allocation5 + $0xcc4] ss:$16 sps:$4 sm:$0xff]  }
 0x1bf   : > { %5606 = vmatpush1.bf16.msra.mxu1 %v8471_v4  ;;  %v8555_v4 = vld [vmem:[#allocation5 + $0x8c8] ss:$16 sps:$4 sm:$0xff]  }
 0x1c0   : > { %5196 = vmatpush1.bf16.msra.mxu0 %v8468_v3  ;;  %5607 = vmatprep.subr.bf16.mxu1 %v8479_v6  ;;  %v8552_v3 = vld [vmem:[#allocation5 + $0xcc0] ss:$16 sps:$4 sm:$0xff]   ;;  %v8563_v6 = vld [vmem:[#allocation5 + $0x8ec] ss:$16 sps:$4 sm:$0xff]  }
 0x1c1   : > { %5197 = vmatprep.subr.bf16.mxu0 %v8476_v5  ;;  %v8560_v5 = vld [vmem:[#allocation5 + $0xce4] ss:$16 sps:$4 sm:$0xff]  }
 0x1c3   : > { %5608 = vmatpush1.bf16.msra.mxu1 %v8477_v9  ;;  %v8561_v9 = vld [vmem:[#allocation5 + $0x8e8] ss:$16 sps:$4 sm:$0xff]  }
 0x1c4   : > { %5198 = vmatpush1.bf16.msra.mxu0 %v8474_v7  ;;  %5609 = vmatprep.subr.bf16.mxu1 %v8485_v12  ;;  %v8558_v7 = vld [vmem:[#allocation5 + $0xce0] ss:$16 sps:$4 sm:$0xff]   ;;  %v8569_v12 = vld [vmem:[#allocation5 + $0x90c] ss:$16 sps:$4 sm:$0xff]  }
 0x1c5   : > { %5199 = vmatprep.subr.bf16.mxu0 %v8482_v10  ;;  %v8566_v10 = vld [vmem:[#allocation5 + $0xd04] ss:$16 sps:$4 sm:$0xff]  }
 0x1c7   : > { %5610 = vmatpush1.bf16.msra.mxu1 %v8483_v14  ;;  %v8567_v14 = vld [vmem:[#allocation5 + $0x908] ss:$16 sps:$4 sm:$0xff]  }
 0x1c8   : > { %5200 = vmatpush1.bf16.msra.mxu0 %v8480_v13  ;;  %5611 = vmatprep.subr.bf16.mxu1 %v8491_v17  ;;  %v8564_v13 = vld [vmem:[#allocation5 + $0xd00] ss:$16 sps:$4 sm:$0xff]   ;;  %v8575_v17 = vld [vmem:[#allocation5 + $0x92c] ss:$16 sps:$4 sm:$0xff]  }
 0x1c9   : > { %5201 = vmatprep.subr.bf16.mxu0 %v8488_v15  ;;  %v8572_v15 = vld [vmem:[#allocation5 + $0xd24] ss:$16 sps:$4 sm:$0xff]  }
 0x1cb   : > { %5612 = vmatpush1.bf16.msra.mxu1 %v8489_v19  ;;  %v8573_v19 = vld [vmem:[#allocation5 + $0x928] ss:$16 sps:$4 sm:$0xff]  }
 0x1cc   : > { %5202 = vmatpush1.bf16.msra.mxu0 %v8486_v18  ;;  %5613 = vmatprep.subr.bf16.mxu1 %v8497_v21  ;;  %v8570_v18 = vld [vmem:[#allocation5 + $0xd20] ss:$16 sps:$4 sm:$0xff]   ;;  %v8581_v21 = vld [vmem:[#allocation5 + $0x94c] ss:$16 sps:$4 sm:$0xff]  }
 0x1cd   : > { %5203 = vmatprep.subr.bf16.mxu0 %v8494_v20  ;;  %v8578_v20 = vld [vmem:[#allocation5 + $0xd44] ss:$16 sps:$4 sm:$0xff]  }
 0x1cf   : > { %5614 = vmatpush1.bf16.msra.mxu1 %v8495_v24  ;;  %v8579_v24 = vld [vmem:[#allocation5 + $0x948] ss:$16 sps:$4 sm:$0xff]  }
 0x1d0   : > { %5204 = vmatpush1.bf16.msra.mxu0 %v8492_v22  ;;  %5615 = vmatprep.subr.bf16.mxu1 %v8503_v27  ;;  %v8576_v22 = vld [vmem:[#allocation5 + $0xd40] ss:$16 sps:$4 sm:$0xff]   ;;  %v8587_v27 = vld [vmem:[#allocation5 + $0x96c] ss:$16 sps:$4 sm:$0xff]  }
 0x1d1   : > { %5205 = vmatprep.subr.bf16.mxu0 %v8500_v25  ;;  %v8584_v25 = vld [vmem:[#allocation5 + $0xd64] ss:$16 sps:$4 sm:$0xff]  }
 0x1d3   : > { %5616 = vmatpush1.bf16.msra.mxu1 %v8501_v29  ;;  %v8585_v29 = vld [vmem:[#allocation5 + $0x968] ss:$16 sps:$4 sm:$0xff]  }
 0x1d4   : > { %5206 = vmatpush1.bf16.msra.mxu0 %v8498_v28  ;;  %5617 = vmatprep.subr.bf16.mxu1 %v8509_v32  ;;  %v8582_v28 = vld [vmem:[#allocation5 + $0xd60] ss:$16 sps:$4 sm:$0xff]   ;;  %v8593_v32 = vld [vmem:[#allocation5 + $0x98c] ss:$16 sps:$4 sm:$0xff]  }
 0x1d5   : > { %5207 = vmatprep.subr.bf16.mxu0 %v8506_v30  ;;  %v8590_v30 = vld [vmem:[#allocation5 + $0xd84] ss:$16 sps:$4 sm:$0xff]  }
 0x1d7   : > { %5618 = vmatpush1.bf16.msra.mxu1 %v8507_v34  ;;  %v8591_v34 = vld [vmem:[#allocation5 + $0x988] ss:$16 sps:$4 sm:$0xff]  }
 0x1d8   : > { %5208 = vmatpush1.bf16.msra.mxu0 %v8504_v33  ;;  %5619 = vmatprep.subr.bf16.mxu1 %v8515_v52  ;;  %v8588_v33 = vld [vmem:[#allocation5 + $0xd80] ss:$16 sps:$4 sm:$0xff]   ;;  %v8599_v52 = vld [vmem:[#allocation5 + $0x9ac] ss:$16 sps:$4 sm:$0xff]  }
 0x1d9   : > { %5209 = vmatprep.subr.bf16.mxu0 %v8512_v35  ;;  %v8596_v35 = vld [vmem:[#allocation5 + $0xda4] ss:$16 sps:$4 sm:$0xff]  }
 0x1db   : > { %5620 = vmatpush1.bf16.msra.mxu1 %v8513_v38  ;;  %v8597_v38 = vld [vmem:[#allocation5 + $0x9a8] ss:$16 sps:$4 sm:$0xff]  }
 0x1dc   : > { %5210 = vmatpush1.bf16.msra.mxu0 %v8510_v37  ;;  %5630 = vmatprep.subr.bf16.mxu1 %v8521_v41  ;;  %v8594_v37 = vld [vmem:[#allocation5 + $0xda0] ss:$16 sps:$4 sm:$0xff]  }
 0x1dd   : > { %5220 = vmatprep.subr.bf16.mxu0 %v8518_v39  ;;  %v8602_v39 = vld [vmem:[#allocation5 + $0xdc4] ss:$16 sps:$4 sm:$0xff]   ;;  %v8600_v41 = vld [vmem:[#allocation5 + $0xdc0] ss:$16 sps:$4 sm:$0xff]  }
 0x1de   : > { %5622 = vmatmul.mubr.bf16.vlgmr.msra.gmra.mrb[4].mxu1 %v9828_v26  ;;  %v8539_v26 = vld [vmem:[#allocation5 + $0x86c] ss:$16 sps:$4 sm:$0xff]  }
 0x1df   : > { %5212 = vmatmul.mubr.bf16.vlgmr.msra.gmra.mrb[0].mxu0 %v9853_v36  ;;  %5631 = vmatpush1.bf16.msra.mxu1 %v8519_v43  ;;  %v8611_v43 = vld [vmem:[#allocation5 + $0x9ec] ss:$16 sps:$4 sm:$0xff]  }
 0x1e0   : > { %5221 = vmatpush1.bf16.msra.mxu0 %v8516_v16  ;;  %5632 = vmatprep.subr.bf16.mxu1 %v8527_v45  ;;  %v8608_v16 = vld [vmem:[#allocation5 + $0xde4] ss:$16 sps:$4 sm:$0xff]   ;;  %v8609_v45 = vld [vmem:[#allocation5 + $0x9e8] ss:$16 sps:$4 sm:$0xff]  }
 0x1e1   : > { %5222 = vmatprep.subr.bf16.mxu0 %v8524_v44  ;;  %5252 = vmatprep.mubr.bf16.mxu0 %v9855_v46  ;;  %v8606_v44 = vld [vmem:[#allocation5 + $0xde0] ss:$16 sps:$4 sm:$0xff]  }
 0x1e2   : > { %5662 = vmatprep.mubr.bf16.mxu1 %v9831_v8  ;;  %v8543_v8 = vld [vmem:[#allocation5 + $0x888] ss:$16 sps:$4 sm:$0xff]  }
 0x1e3   : > { %5633 = vmatpush1.bf16.msra.mxu1 %v8525_v48  ;;  %v310_v48 = vld [vmem:[%s9782_s27 + $0x60] sm:$0xff] }
 0x1e4   : > { %5223 = vmatpush1.bf16.msra.mxu0 %v8522_v47  ;;  %5634 = vmatprep.subr.bf16.mxu1 %v8533_v49  ;;  %v8614_v47 = vld [vmem:[#allocation5 + $0xe04] ss:$16 sps:$4 sm:$0xff]   ;;  %v313_v49 = vld [vmem:[%s9782_s27 + $0x78] sm:$0xff] }
 0x1e5   : > { %5224 = vmatprep.subr.bf16.mxu0 %v8530_v23  ;;  %v8617_v23 = vld [vmem:[#allocation5 + $0xa0c] ss:$16 sps:$4 sm:$0xff]  }
 0x1e7   : > { %5635 = vmatpush1.bf16.msra.mxu1 %v8531_v51  ;;  %v8612_v51 = vld [vmem:[#allocation5 + $0xe00] ss:$16 sps:$4 sm:$0xff]  }
 0x1e8   : > { %5225 = vmatpush1.bf16.msra.mxu0 %v8528_v50  ;;  %5636 = vmatprep.subr.bf16.mxu1 %v8539_v26  ;;  %v9863_v50 = vpack.c.bf16 %v310_v48, %v310_v48  ;;  %v8620_v26 = vld [vmem:[#allocation5 + $0xe24] ss:$16 sps:$4 sm:$0xff]   ;;  %v8701_v48 = vld [vmem:[#allocation5 + $0xbcc] ss:$16 sps:$4 sm:$0xff]  }
 0x1e9   : > { %5226 = vmatprep.subr.bf16.mxu0 %v8536_v53  ;;  %v8615_v53 = vld [vmem:[#allocation5 + $0xa08] ss:$16 sps:$4 sm:$0xff]  }
 0x1eb   : > { %5637 = vmatpush1.bf16.msra.mxu1 %v8537_v57  ;;  %v9865_v57 = vpack.c.bf16 %v313_v49, %v313_v49  ;;  %v8699_v49 = vld [vmem:[#allocation5 + $0xbc8] ss:$16 sps:$4 sm:$0xff]  }
 0x1ec   : > { %5227 = vmatpush1.bf16.msra.mxu0 %v8534_v54  ;;  %5638 = vmatprep.subr.bf16.mxu1 %v8545_v59  ;;  %v8623_v54 = vld [vmem:[#allocation5 + $0xa2c] ss:$16 sps:$4 sm:$0xff]   ;;  %v8621_v59 = vld [vmem:[#allocation5 + $0xa28] ss:$16 sps:$4 sm:$0xff]  }
 0x1ed   : > { %5228 = vmatprep.subr.bf16.mxu0 %v8542_v58  ;;  %v8618_v58 = vld [vmem:[#allocation5 + $0xe20] ss:$16 sps:$4 sm:$0xff]  }
 0x1ef   : > { %5639 = vmatpush1.bf16.msra.mxu1 %v8543_v8  ;;  %v8629_v8 = vld [vmem:[#allocation5 + $0xa4c] ss:$16 sps:$4 sm:$0xff]  }
 0x1f0   : > { %5229 = vmatpush1.bf16.msra.mxu0 %v8540_v60  ;;  %5640 = vmatprep.subr.bf16.mxu1 %v8551_v62  ;;  %v8626_v60 = vld [vmem:[#allocation5 + $0xe44] ss:$16 sps:$4 sm:$0xff]   ;;  %v8627_v62 = vld [vmem:[#allocation5 + $0xa48] ss:$16 sps:$4 sm:$0xff]  }
 0x1f1   : > { %5230 = vmatprep.subr.bf16.mxu0 %v8548_v61  ;;  %v8624_v61 = vld [vmem:[#allocation5 + $0xe40] ss:$16 sps:$4 sm:$0xff]  }
 0x1f3   : > { %5641 = vmatpush1.bf16.msra.mxu1 %v8549_v0  ;;  %v8630_v0 = vld [vmem:[#allocation5 + $0xe60] ss:$16 sps:$4 sm:$0xff]  }
 0x1f4   : > { %5231 = vmatpush1.bf16.msra.mxu0 %v8546_v63  ;;  %5642 = vmatprep.subr.bf16.mxu1 %v8557_v2  ;;  %v8632_v63 = vld [vmem:[#allocation5 + $0xe64] ss:$16 sps:$4 sm:$0xff]  }
 0x1f5   : > { %5232 = vmatprep.subr.bf16.mxu0 %v8554_v1  ;;  %v8633_v1 = vld [vmem:[#allocation5 + $0xa68] ss:$16 sps:$4 sm:$0xff]   ;;  %v8638_v2 = vld [vmem:[#allocation5 + $0xe84] ss:$16 sps:$4 sm:$0xff]  }
 0x1f7   : > { %5643 = vmatpush1.bf16.msra.mxu1 %v8555_v4  ;;  %v8636_v4 = vld [vmem:[#allocation5 + $0xe80] ss:$16 sps:$4 sm:$0xff]  }
 0x1f8   : > { %5233 = vmatpush1.bf16.msra.mxu0 %v8552_v3  ;;  %5644 = vmatprep.subr.bf16.mxu1 %v8563_v6  ;;  %v8641_v3 = vld [vmem:[#allocation5 + $0xa8c] ss:$16 sps:$4 sm:$0xff]  }
 0x1f9   : > { %5234 = vmatprep.subr.bf16.mxu0 %v8560_v5  ;;  %v8644_v5 = vld [vmem:[#allocation5 + $0xea4] ss:$16 sps:$4 sm:$0xff]   ;;  %v8647_v6 = vld [vmem:[#allocation5 + $0xaac] ss:$16 sps:$4 sm:$0xff]  }
 0x1fb   : > { %5645 = vmatpush1.bf16.msra.mxu1 %v8561_v9  ;;  %v8645_v9 = vld [vmem:[#allocation5 + $0xaa8] ss:$16 sps:$4 sm:$0xff]  }
 0x1fc   : > { %5235 = vmatpush1.bf16.msra.mxu0 %v8558_v7  ;;  %5646 = vmatprep.subr.bf16.mxu1 %v8569_v12  ;;  %v8642_v7 = vld [vmem:[#allocation5 + $0xea0] ss:$16 sps:$4 sm:$0xff]   ;;  %v8653_v12 = vld [vmem:[#allocation5 + $0xacc] ss:$16 sps:$4 sm:$0xff]  }
 0x1fd   : > { %5236 = vmatprep.subr.bf16.mxu0 %v8566_v10  ;;  %v8650_v10 = vld [vmem:[#allocation5 + $0xec4] ss:$16 sps:$4 sm:$0xff]  }
 0x1ff   : > { %5647 = vmatpush1.bf16.msra.mxu1 %v8567_v14  ;;  %v8651_v14 = vld [vmem:[#allocation5 + $0xac8] ss:$16 sps:$4 sm:$0xff]  }
 0x200   : > { %5237 = vmatpush1.bf16.msra.mxu0 %v8564_v13  ;;  %5648 = vmatprep.subr.bf16.mxu1 %v8575_v17  ;;  %v8648_v13 = vld [vmem:[#allocation5 + $0xec0] ss:$16 sps:$4 sm:$0xff]   ;;  %v8659_v17 = vld [vmem:[#allocation5 + $0xaec] ss:$16 sps:$4 sm:$0xff]  }
 0x201   : > { %5238 = vmatprep.subr.bf16.mxu0 %v8572_v15  ;;  %v8656_v15 = vld [vmem:[#allocation5 + $0xee4] ss:$16 sps:$4 sm:$0xff]  }
 0x203   : > { %5649 = vmatpush1.bf16.msra.mxu1 %v8573_v19  ;;  %v8657_v19 = vld [vmem:[#allocation5 + $0xae8] ss:$16 sps:$4 sm:$0xff]  }
 0x204   : > { %5239 = vmatpush1.bf16.msra.mxu0 %v8570_v18  ;;  %5650 = vmatprep.subr.bf16.mxu1 %v8581_v21  ;;  %v8654_v18 = vld [vmem:[#allocation5 + $0xee0] ss:$16 sps:$4 sm:$0xff]   ;;  %v8665_v21 = vld [vmem:[#allocation5 + $0xb0c] ss:$16 sps:$4 sm:$0xff]  }
 0x205   : > { %5240 = vmatprep.subr.bf16.mxu0 %v8578_v20  ;;  %v8662_v20 = vld [vmem:[#allocation5 + $0xf04] ss:$16 sps:$4 sm:$0xff]  }
 0x207   : > { %5651 = vmatpush1.bf16.msra.mxu1 %v8579_v24  ;;  %v8663_v24 = vld [vmem:[#allocation5 + $0xb08] ss:$16 sps:$4 sm:$0xff]  }
 0x208   : > { %5241 = vmatpush1.bf16.msra.mxu0 %v8576_v22  ;;  %5652 = vmatprep.subr.bf16.mxu1 %v8587_v27  ;;  %v8660_v22 = vld [vmem:[#allocation5 + $0xf00] ss:$16 sps:$4 sm:$0xff]   ;;  %v8671_v27 = vld [vmem:[#allocation5 + $0xb2c] ss:$16 sps:$4 sm:$0xff]  }
 0x209   : > { %5242 = vmatprep.subr.bf16.mxu0 %v8584_v25  ;;  %v8668_v25 = vld [vmem:[#allocation5 + $0xf24] ss:$16 sps:$4 sm:$0xff]  }
 0x20b   : > { %5653 = vmatpush1.bf16.msra.mxu1 %v8585_v29  ;;  %v8669_v29 = vld [vmem:[#allocation5 + $0xb28] ss:$16 sps:$4 sm:$0xff]  }
 0x20c   : > { %5243 = vmatpush1.bf16.msra.mxu0 %v8582_v28  ;;  %5654 = vmatprep.subr.bf16.mxu1 %v8593_v32  ;;  %v8666_v28 = vld [vmem:[#allocation5 + $0xf20] ss:$16 sps:$4 sm:$0xff]   ;;  %v8677_v32 = vld [vmem:[#allocation5 + $0xb4c] ss:$16 sps:$4 sm:$0xff]  }
 0x20d   : > { %5244 = vmatprep.subr.bf16.mxu0 %v8590_v30  ;;  %v8674_v30 = vld [vmem:[#allocation5 + $0xf44] ss:$16 sps:$4 sm:$0xff]  }
 0x20f   : > { %5655 = vmatpush1.bf16.msra.mxu1 %v8591_v34  ;;  %v8675_v34 = vld [vmem:[#allocation5 + $0xb48] ss:$16 sps:$4 sm:$0xff]  }
 0x210   : > { %5245 = vmatpush1.bf16.msra.mxu0 %v8588_v33  ;;  %5656 = vmatprep.subr.bf16.mxu1 %v8599_v52  ;;  %v8672_v33 = vld [vmem:[#allocation5 + $0xf40] ss:$16 sps:$4 sm:$0xff]   ;;  %v8683_v52 = vld [vmem:[#allocation5 + $0xb6c] ss:$16 sps:$4 sm:$0xff]  }
 0x211   : > { %5246 = vmatprep.subr.bf16.mxu0 %v8596_v35  ;;  %v8680_v35 = vld [vmem:[#allocation5 + $0xf64] ss:$16 sps:$4 sm:$0xff]  }
 0x213   : > { %5657 = vmatpush1.bf16.msra.mxu1 %v8597_v38  ;;  %v8681_v38 = vld [vmem:[#allocation5 + $0xb68] ss:$16 sps:$4 sm:$0xff]  }
 0x214   : > { %5247 = vmatpush1.bf16.msra.mxu0 %v8594_v37  ;;  %5658 = vmatprep.subr.bf16.mxu1 %v8605_v40  ;;  %v8678_v37 = vld [vmem:[#allocation5 + $0xf60] ss:$16 sps:$4 sm:$0xff]   ;;  %v8689_v40 = vld [vmem:[#allocation5 + $0xb8c] ss:$16 sps:$4 sm:$0xff]  }
 0x215   : > { %5248 = vmatprep.subr.bf16.mxu0 %v8602_v39  ;;  %v8686_v39 = vld [vmem:[#allocation5 + $0xf84] ss:$16 sps:$4 sm:$0xff]  }
 0x217   : > { %5659 = vmatpush1.bf16.msra.mxu1 %v8603_v42  ;;  %v8687_v42 = vld [vmem:[#allocation5 + $0xb88] ss:$16 sps:$4 sm:$0xff]  }
 0x218   : > { %5249 = vmatpush1.bf16.msra.mxu0 %v8600_v41  ;;  %5660 = vmatprep.subr.bf16.mxu1 %v8611_v43  ;;  %v8684_v41 = vld [vmem:[#allocation5 + $0xf80] ss:$16 sps:$4 sm:$0xff]   ;;  %v8695_v43 = vld [vmem:[#allocation5 + $0xbac] ss:$16 sps:$4 sm:$0xff]  }
 0x219   : > { %5250 = vmatprep.subr.bf16.mxu0 %v8608_v16  ;;  %v8692_v16 = vld [vmem:[#allocation5 + $0xfa4] ss:$16 sps:$4 sm:$0xff]  }
 0x21b   : > { %5661 = vmatpush1.bf16.msra.mxu1 %v8609_v45  ;;  %v8693_v45 = vld [vmem:[#allocation5 + $0xba8] ss:$16 sps:$4 sm:$0xff]  }
 0x21c   : > { %5251 = vmatpush1.bf16.msra.mxu0 %v8606_v44  ;;  %5671 = vmatprep.subr.bf16.mxu1 %v8617_v23  ;;  %v8690_v44 = vld [vmem:[#allocation5 + $0xfa0] ss:$16 sps:$4 sm:$0xff]  }
 0x21d   : > { %5261 = vmatprep.subr.bf16.mxu0 %v8614_v47  ;;  %v8698_v47 = vld [vmem:[#allocation5 + $0xfc4] ss:$16 sps:$4 sm:$0xff]   ;;  %v8696_v23 = vld [vmem:[#allocation5 + $0xfc0] ss:$16 sps:$4 sm:$0xff]  }
 0x21e   : > { %5663 = vmatmul.mubr.bf16.vlgmr.msra.gmra.mrb[4].mxu1 %v9838_v31  ;;  %v8635_v31 = vld [vmem:[#allocation5 + $0xa6c] ss:$16 sps:$4 sm:$0xff]  }
 0x21f   : > { %5253 = vmatmul.mubr.bf16.vlgmr.msra.gmra.mrb[0].mxu0 %v9863_v50  ;;  %5672 = vmatpush1.bf16.msra.mxu1 %v8615_v53  ;;  %v8707_v53 = vld [vmem:[#allocation5 + $0xbec] ss:$16 sps:$4 sm:$0xff]  }
 0x220   : > { %5262 = vmatpush1.bf16.msra.mxu0 %v8612_v51  ;;  %5673 = vmatprep.subr.bf16.mxu1 %v8623_v54  ;;  %v8704_v51 = vld [vmem:[#allocation5 + $0xfe4] ss:$16 sps:$4 sm:$0xff]   ;;  %v8705_v54 = vld [vmem:[#allocation5 + $0xbe8] ss:$16 sps:$4 sm:$0xff]  }
 0x221   : > { %5263 = vmatprep.subr.bf16.mxu0 %v8620_v26  ;;  %5293 = vmatprep.mubr.bf16.mxu0 %v9865_v57  ;;  %v8702_v26 = vld [vmem:[#allocation5 + $0xfe0] ss:$16 sps:$4 sm:$0xff]  }
 0x222   : > { %5703 = vmatprep.mubr.bf16.mxu1 %v9841_v11  ;;  %v8639_v11 = vld [vmem:[#allocation5 + $0xa88] ss:$16 sps:$4 sm:$0xff]  }
 0x223   : > { %5674 = vmatpush1.bf16.msra.mxu1 %v8621_v59  ;;  %v312_v59 = vld [vmem:[%s9782_s27 + $0x70] sm:$0xff] }
 0x224   : > { %5264 = vmatpush1.bf16.msra.mxu0 %v8618_v58  ;;  %5675 = vmatprep.subr.bf16.mxu1 %v8629_v8  ;;  %v8710_v58 = vld [vmem:[#allocation5 + $0x1004] ss:$16 sps:$4 sm:$0xff]   ;;  %v315_v8 = vld [vmem:[%s9782_s27 + $0x88] sm:$0xff] }
 0x225   : > { %5265 = vmatprep.subr.bf16.mxu0 %v8626_v60  ;;  %v8713_v60 = vld [vmem:[#allocation5 + $0xc0c] ss:$16 sps:$4 sm:$0xff]  }
 0x227   : > { %5676 = vmatpush1.bf16.msra.mxu1 %v8627_v62  ;;  %v8708_v62 = vld [vmem:[#allocation5 + $0x1000] ss:$16 sps:$4 sm:$0xff]  }
 0x228   : > { %5266 = vmatpush1.bf16.msra.mxu0 %v8624_v61  ;;  %5677 = vmatprep.subr.bf16.mxu1 %v8635_v31  ;;  %v9873_v61 = vpack.c.bf16 %v312_v59, %v312_v59  ;;  %v8716_v31 = vld [vmem:[#allocation5 + $0x1024] ss:$16 sps:$4 sm:$0xff]   ;;  %v8797_v59 = vld [vmem:[#allocation5 + $0xdcc] ss:$16 sps:$4 sm:$0xff]  }
 0x229   : > { %5267 = vmatprep.subr.bf16.mxu0 %v8632_v63  ;;  %v8711_v63 = vld [vmem:[#allocation5 + $0xc08] ss:$16 sps:$4 sm:$0xff]  }
 0x22b   : > { %5678 = vmatpush1.bf16.msra.mxu1 %v8633_v1  ;;  %v9875_v1 = vpack.c.bf16 %v315_v8, %v315_v8  ;;  %v8795_v8 = vld [vmem:[#allocation5 + $0xdc8] ss:$16 sps:$4 sm:$0xff]  }
 0x22c   : > { %5268 = vmatpush1.bf16.msra.mxu0 %v8630_v0  ;;  %5679 = vmatprep.subr.bf16.mxu1 %v8641_v3  ;;  %v8719_v0 = vld [vmem:[#allocation5 + $0xc2c] ss:$16 sps:$4 sm:$0xff]   ;;  %v8717_v3 = vld [vmem:[#allocation5 + $0xc28] ss:$16 sps:$4 sm:$0xff]  }
 0x22d   : > { %5269 = vmatprep.subr.bf16.mxu0 %v8638_v2  ;;  %v8714_v2 = vld [vmem:[#allocation5 + $0x1020] ss:$16 sps:$4 sm:$0xff]  }
 0x22f   : > { %5680 = vmatpush1.bf16.msra.mxu1 %v8639_v11  ;;  %v8725_v11 = vld [vmem:[#allocation5 + $0xc4c] ss:$16 sps:$4 sm:$0xff]  }
 0x230   : > { %5270 = vmatpush1.bf16.msra.mxu0 %v8636_v4  ;;  %5681 = vmatprep.subr.bf16.mxu1 %v8647_v6  ;;  %v8722_v4 = vld [vmem:[#allocation5 + $0x1044] ss:$16 sps:$4 sm:$0xff]   ;;  %v8723_v6 = vld [vmem:[#allocation5 + $0xc48] ss:$16 sps:$4 sm:$0xff]  }
 0x231   : > { %5271 = vmatprep.subr.bf16.mxu0 %v8644_v5  ;;  %v8720_v5 = vld [vmem:[#allocation5 + $0x1040] ss:$16 sps:$4 sm:$0xff]  }
 0x233   : > { %5682 = vmatpush1.bf16.msra.mxu1 %v8645_v9  ;;  %v8726_v9 = vld [vmem:[#allocation5 + $0x1060] ss:$16 sps:$4 sm:$0xff]  }
 0x234   : > { %5272 = vmatpush1.bf16.msra.mxu0 %v8642_v7  ;;  %5683 = vmatprep.subr.bf16.mxu1 %v8653_v12  ;;  %v8728_v7 = vld [vmem:[#allocation5 + $0x1064] ss:$16 sps:$4 sm:$0xff]  }
 0x235   : > { %5273 = vmatprep.subr.bf16.mxu0 %v8650_v10  ;;  %v8729_v10 = vld [vmem:[#allocation5 + $0xc68] ss:$16 sps:$4 sm:$0xff]   ;;  %v8734_v12 = vld [vmem:[#allocation5 + $0x1084] ss:$16 sps:$4 sm:$0xff]  }
 0x237   : > { %5684 = vmatpush1.bf16.msra.mxu1 %v8651_v14  ;;  %v8732_v14 = vld [vmem:[#allocation5 + $0x1080] ss:$16 sps:$4 sm:$0xff]  }
 0x238   : > { %5274 = vmatpush1.bf16.msra.mxu0 %v8648_v13  ;;  %5685 = vmatprep.subr.bf16.mxu1 %v8659_v17  ;;  %v8737_v13 = vld [vmem:[#allocation5 + $0xc8c] ss:$16 sps:$4 sm:$0xff]  }
 0x239   : > { %5275 = vmatprep.subr.bf16.mxu0 %v8656_v15  ;;  %v8740_v15 = vld [vmem:[#allocation5 + $0x10a4] ss:$16 sps:$4 sm:$0xff]   ;;  %v8743_v17 = vld [vmem:[#allocation5 + $0xcac] ss:$16 sps:$4 sm:$0xff]  }
 0x23b   : > { %5686 = vmatpush1.bf16.msra.mxu1 %v8657_v19  ;;  %v8741_v19 = vld [vmem:[#allocation5 + $0xca8] ss:$16 sps:$4 sm:$0xff]  }
 0x23c   : > { %5276 = vmatpush1.bf16.msra.mxu0 %v8654_v18  ;;  %5687 = vmatprep.subr.bf16.mxu1 %v8665_v21  ;;  %v8738_v18 = vld [vmem:[#allocation5 + $0x10a0] ss:$16 sps:$4 sm:$0xff]   ;;  %v8749_v21 = vld [vmem:[#allocation5 + $0xccc] ss:$16 sps:$4 sm:$0xff]  }
 0x23d   : > { %5277 = vmatprep.subr.bf16.mxu0 %v8662_v20  ;;  %v8746_v20 = vld [vmem:[#allocation5 + $0x10c4] ss:$16 sps:$4 sm:$0xff]  }
 0x23f   : > { %5688 = vmatpush1.bf16.msra.mxu1 %v8663_v24  ;;  %v8747_v24 = vld [vmem:[#allocation5 + $0xcc8] ss:$16 sps:$4 sm:$0xff]  }
 0x240   : > { %5278 = vmatpush1.bf16.msra.mxu0 %v8660_v22  ;;  %5689 = vmatprep.subr.bf16.mxu1 %v8671_v27  ;;  %v8744_v22 = vld [vmem:[#allocation5 + $0x10c0] ss:$16 sps:$4 sm:$0xff]   ;;  %v8755_v27 = vld [vmem:[#allocation5 + $0xcec] ss:$16 sps:$4 sm:$0xff]  }
 0x241   : > { %5279 = vmatprep.subr.bf16.mxu0 %v8668_v25  ;;  %v8752_v25 = vld [vmem:[#allocation5 + $0x10e4] ss:$16 sps:$4 sm:$0xff]  }
 0x243   : > { %5690 = vmatpush1.bf16.msra.mxu1 %v8669_v29  ;;  %v8753_v29 = vld [vmem:[#allocation5 + $0xce8] ss:$16 sps:$4 sm:$0xff]  }
 0x244   : > { %5280 = vmatpush1.bf16.msra.mxu0 %v8666_v28  ;;  %5691 = vmatprep.subr.bf16.mxu1 %v8677_v32  ;;  %v8750_v28 = vld [vmem:[#allocation5 + $0x10e0] ss:$16 sps:$4 sm:$0xff]   ;;  %v8761_v32 = vld [vmem:[#allocation5 + $0xd0c] ss:$16 sps:$4 sm:$0xff]  }
 0x245   : > { %5281 = vmatprep.subr.bf16.mxu0 %v8674_v30  ;;  %v8758_v30 = vld [vmem:[#allocation5 + $0x1104] ss:$16 sps:$4 sm:$0xff]  }
 0x247   : > { %5692 = vmatpush1.bf16.msra.mxu1 %v8675_v34  ;;  %v8759_v34 = vld [vmem:[#allocation5 + $0xd08] ss:$16 sps:$4 sm:$0xff]  }
 0x248   : > { %5282 = vmatpush1.bf16.msra.mxu0 %v8672_v33  ;;  %5693 = vmatprep.subr.bf16.mxu1 %v8683_v52  ;;  %v8756_v33 = vld [vmem:[#allocation5 + $0x1100] ss:$16 sps:$4 sm:$0xff]   ;;  %v8767_v52 = vld [vmem:[#allocation5 + $0xd2c] ss:$16 sps:$4 sm:$0xff]  }
 0x249   : > { %5283 = vmatprep.subr.bf16.mxu0 %v8680_v35  ;;  %v8764_v35 = vld [vmem:[#allocation5 + $0x1124] ss:$16 sps:$4 sm:$0xff]  }
 0x24b   : > { %5694 = vmatpush1.bf16.msra.mxu1 %v8681_v38  ;;  %v8765_v38 = vld [vmem:[#allocation5 + $0xd28] ss:$16 sps:$4 sm:$0xff]  }
 0x24c   : > { %5284 = vmatpush1.bf16.msra.mxu0 %v8678_v37  ;;  %5695 = vmatprep.subr.bf16.mxu1 %v8689_v40  ;;  %v8762_v37 = vld [vmem:[#allocation5 + $0x1120] ss:$16 sps:$4 sm:$0xff]   ;;  %v8773_v40 = vld [vmem:[#allocation5 + $0xd4c] ss:$16 sps:$4 sm:$0xff]  }
 0x24d   : > { %5285 = vmatprep.subr.bf16.mxu0 %v8686_v39  ;;  %v8770_v39 = vld [vmem:[#allocation5 + $0x1144] ss:$16 sps:$4 sm:$0xff]  }
 0x24f   : > { %5696 = vmatpush1.bf16.msra.mxu1 %v8687_v42  ;;  %v8771_v42 = vld [vmem:[#allocation5 + $0xd48] ss:$16 sps:$4 sm:$0xff]  }
 0x250   : > { %5286 = vmatpush1.bf16.msra.mxu0 %v8684_v41  ;;  %5697 = vmatprep.subr.bf16.mxu1 %v8695_v43  ;;  %v8768_v41 = vld [vmem:[#allocation5 + $0x1140] ss:$16 sps:$4 sm:$0xff]   ;;  %v8779_v43 = vld [vmem:[#allocation5 + $0xd6c] ss:$16 sps:$4 sm:$0xff]  }
 0x251   : > { %5287 = vmatprep.subr.bf16.mxu0 %v8692_v16  ;;  %v8776_v16 = vld [vmem:[#allocation5 + $0x1164] ss:$16 sps:$4 sm:$0xff]  }
 0x253   : > { %5698 = vmatpush1.bf16.msra.mxu1 %v8693_v45  ;;  %v8777_v45 = vld [vmem:[#allocation5 + $0xd68] ss:$16 sps:$4 sm:$0xff]  }
 0x254   : > { %5288 = vmatpush1.bf16.msra.mxu0 %v8690_v44  ;;  %5699 = vmatprep.subr.bf16.mxu1 %v8701_v48  ;;  %v8774_v44 = vld [vmem:[#allocation5 + $0x1160] ss:$16 sps:$4 sm:$0xff]   ;;  %v8785_v48 = vld [vmem:[#allocation5 + $0xd8c] ss:$16 sps:$4 sm:$0xff]  }
 0x255   : > { %5289 = vmatprep.subr.bf16.mxu0 %v8698_v47  ;;  %v8782_v47 = vld [vmem:[#allocation5 + $0x1184] ss:$16 sps:$4 sm:$0xff]  }
 0x257   : > { %5700 = vmatpush1.bf16.msra.mxu1 %v8699_v49  ;;  %v8783_v49 = vld [vmem:[#allocation5 + $0xd88] ss:$16 sps:$4 sm:$0xff]  }
 0x258   : > { %5290 = vmatpush1.bf16.msra.mxu0 %v8696_v23  ;;  %5701 = vmatprep.subr.bf16.mxu1 %v8707_v53  ;;  %v8780_v23 = vld [vmem:[#allocation5 + $0x1180] ss:$16 sps:$4 sm:$0xff]   ;;  %v8791_v53 = vld [vmem:[#allocation5 + $0xdac] ss:$16 sps:$4 sm:$0xff]  }
 0x259   : > { %5291 = vmatprep.subr.bf16.mxu0 %v8704_v51  ;;  %v8788_v51 = vld [vmem:[#allocation5 + $0x11a4] ss:$16 sps:$4 sm:$0xff]  }
 0x25b   : > { %5702 = vmatpush1.bf16.msra.mxu1 %v8705_v54  ;;  %v8789_v54 = vld [vmem:[#allocation5 + $0xda8] ss:$16 sps:$4 sm:$0xff]  }
 0x25c   : > { %5292 = vmatpush1.bf16.msra.mxu0 %v8702_v26  ;;  %5712 = vmatprep.subr.bf16.mxu1 %v8713_v60  ;;  %v8786_v26 = vld [vmem:[#allocation5 + $0x11a0] ss:$16 sps:$4 sm:$0xff]  }
 0x25d   : > { %5302 = vmatprep.subr.bf16.mxu0 %v8710_v58  ;;  %v8794_v58 = vld [vmem:[#allocation5 + $0x11c4] ss:$16 sps:$4 sm:$0xff]   ;;  %v8792_v60 = vld [vmem:[#allocation5 + $0x11c0] ss:$16 sps:$4 sm:$0xff]  }
 0x25e   : > { %5704 = vmatmul.mubr.bf16.vlgmr.msra.gmra.mrb[4].mxu1 %v9853_v36  ;;  %v8731_v36 = vld [vmem:[#allocation5 + $0xc6c] ss:$16 sps:$4 sm:$0xff]  }
 0x25f   : > { %5294 = vmatmul.mubr.bf16.vlgmr.msra.gmra.mrb[0].mxu0 %v9873_v61  ;;  %5713 = vmatpush1.bf16.msra.mxu1 %v8711_v63  ;;  %v8803_v63 = vld [vmem:[#allocation5 + $0xdec] ss:$16 sps:$4 sm:$0xff]  }
 0x260   : > { %5303 = vmatpush1.bf16.msra.mxu0 %v8708_v62  ;;  %5714 = vmatprep.subr.bf16.mxu1 %v8719_v0  ;;  %v8800_v62 = vld [vmem:[#allocation5 + $0x11e4] ss:$16 sps:$4 sm:$0xff]   ;;  %v8801_v0 = vld [vmem:[#allocation5 + $0xde8] ss:$16 sps:$4 sm:$0xff]  }
 0x261   : > { %5304 = vmatprep.subr.bf16.mxu0 %v8716_v31  ;;  %5334 = vmatprep.mubr.bf16.mxu0 %v9875_v1  ;;  %v8798_v31 = vld [vmem:[#allocation5 + $0x11e0] ss:$16 sps:$4 sm:$0xff]  }
 0x262   : > { %5744 = vmatprep.mubr.bf16.mxu1 %v9855_v46  ;;  %v8735_v46 = vld [vmem:[#allocation5 + $0xc88] ss:$16 sps:$4 sm:$0xff]  }
 0x263   : > { %5715 = vmatpush1.bf16.msra.mxu1 %v8717_v3  ;;  %v8806_v3 = vld [vmem:[#allocation5 + $0x1204] ss:$16 sps:$4 sm:$0xff]  }
 0x264   : > { %5305 = vmatpush1.bf16.msra.mxu0 %v8714_v2  ;;  %5716 = vmatprep.subr.bf16.mxu1 %v8725_v11  ;;  %v314_v2 = vld [vmem:[%s9782_s27 + $0x80] sm:$0xff] }
 0x265   : > { %5306 = vmatprep.subr.bf16.mxu0 %v8722_v4  ;;  %v8809_v4 = vld [vmem:[#allocation5 + $0xe0c] ss:$16 sps:$4 sm:$0xff]   ;;  %v9882_v11 = vpack.c.bf16 %v314_v2, %v314_v2  ;;  %v8890_v2 = vld [vmem:[#allocation5 + $0x13c4] ss:$16 sps:$4 sm:$0xff]  }
 0x267   : > { %5717 = vmatpush1.bf16.msra.mxu1 %v8723_v6  ;;  %v8804_v6 = vld [vmem:[#allocation5 + $0x1200] ss:$16 sps:$4 sm:$0xff]  }
 0x268   : > { %5307 = vmatpush1.bf16.msra.mxu0 %v8720_v5  ;;  %5718 = vmatprep.subr.bf16.mxu1 %v8731_v36  ;;  %v317_v5 = vld [vmem:[%s9782_s27 + $0x98] sm:$0xff]  ;;  %v8812_v36 = vld [vmem:[#allocation5 + $0x1224] ss:$16 sps:$4 sm:$0xff]  }
 0x269   : > { %5308 = vmatprep.subr.bf16.mxu0 %v8728_v7  ;;  %v8807_v7 = vld [vmem:[#allocation5 + $0xe08] ss:$16 sps:$4 sm:$0xff]  }
 0x26b   : > { %5719 = vmatpush1.bf16.msra.mxu1 %v8729_v10  ;;  %v9885_v10 = vpack.c.bf16 %v317_v5, %v317_v5  ;;  %v8891_v5 = vld [vmem:[#allocation5 + $0xfc8] ss:$16 sps:$4 sm:$0xff]  }
 0x26c   : > { %5309 = vmatpush1.bf16.msra.mxu0 %v8726_v9  ;;  %5720 = vmatprep.subr.bf16.mxu1 %v8737_v13  ;;  %v8815_v9 = vld [vmem:[#allocation5 + $0xe2c] ss:$16 sps:$4 sm:$0xff]   ;;  %v8813_v13 = vld [vmem:[#allocation5 + $0xe28] ss:$16 sps:$4 sm:$0xff]  }
 0x26d   : > { %5310 = vmatprep.subr.bf16.mxu0 %v8734_v12  ;;  %v8810_v12 = vld [vmem:[#allocation5 + $0x1220] ss:$16 sps:$4 sm:$0xff]  }
 0x26f   : > { %5721 = vmatpush1.bf16.msra.mxu1 %v8735_v46  ;;  %v8821_v46 = vld [vmem:[#allocation5 + $0xe4c] ss:$16 sps:$4 sm:$0xff]  }
 0x270   : > { %5311 = vmatpush1.bf16.msra.mxu0 %v8732_v14  ;;  %5722 = vmatprep.subr.bf16.mxu1 %v8743_v17  ;;  %v8818_v14 = vld [vmem:[#allocation5 + $0x1244] ss:$16 sps:$4 sm:$0xff]   ;;  %v8819_v17 = vld [vmem:[#allocation5 + $0xe48] ss:$16 sps:$4 sm:$0xff]  }
 0x271   : > { %5312 = vmatprep.subr.bf16.mxu0 %v8740_v15  ;;  %v8816_v15 = vld [vmem:[#allocation5 + $0x1240] ss:$16 sps:$4 sm:$0xff]  }
 0x273   : > { %5723 = vmatpush1.bf16.msra.mxu1 %v8741_v19  ;;  %v8822_v19 = vld [vmem:[#allocation5 + $0x1260] ss:$16 sps:$4 sm:$0xff]  }
 0x274   : > { %5313 = vmatpush1.bf16.msra.mxu0 %v8738_v18  ;;  %5724 = vmatprep.subr.bf16.mxu1 %v8749_v21  ;;  %v8824_v18 = vld [vmem:[#allocation5 + $0x1264] ss:$16 sps:$4 sm:$0xff]  }
 0x275   : > { %5314 = vmatprep.subr.bf16.mxu0 %v8746_v20  ;;  %v8825_v20 = vld [vmem:[#allocation5 + $0xe68] ss:$16 sps:$4 sm:$0xff]   ;;  %v8830_v21 = vld [vmem:[#allocation5 + $0x1284] ss:$16 sps:$4 sm:$0xff]  }
 0x277   : > { %5725 = vmatpush1.bf16.msra.mxu1 %v8747_v24  ;;  %v8828_v24 = vld [vmem:[#allocation5 + $0x1280] ss:$16 sps:$4 sm:$0xff]  }
 0x278   : > { %5315 = vmatpush1.bf16.msra.mxu0 %v8744_v22  ;;  %5726 = vmatprep.subr.bf16.mxu1 %v8755_v27  ;;  %v8833_v22 = vld [vmem:[#allocation5 + $0xe8c] ss:$16 sps:$4 sm:$0xff]  }
 0x279   : > { %5316 = vmatprep.subr.bf16.mxu0 %v8752_v25  ;;  %v8836_v25 = vld [vmem:[#allocation5 + $0x12a4] ss:$16 sps:$4 sm:$0xff]   ;;  %v8839_v27 = vld [vmem:[#allocation5 + $0xeac] ss:$16 sps:$4 sm:$0xff]  }
 0x27b   : > { %5727 = vmatpush1.bf16.msra.mxu1 %v8753_v29  ;;  %v8837_v29 = vld [vmem:[#allocation5 + $0xea8] ss:$16 sps:$4 sm:$0xff]  }
 0x27c   : > { %5317 = vmatpush1.bf16.msra.mxu0 %v8750_v28  ;;  %5728 = vmatprep.subr.bf16.mxu1 %v8761_v32  ;;  %v8834_v28 = vld [vmem:[#allocation5 + $0x12a0] ss:$16 sps:$4 sm:$0xff]   ;;  %v8845_v32 = vld [vmem:[#allocation5 + $0xecc] ss:$16 sps:$4 sm:$0xff]  }
 0x27d   : > { %5318 = vmatprep.subr.bf16.mxu0 %v8758_v30  ;;  %v8842_v30 = vld [vmem:[#allocation5 + $0x12c4] ss:$16 sps:$4 sm:$0xff]  }
 0x27f   : > { %5729 = vmatpush1.bf16.msra.mxu1 %v8759_v34  ;;  %v8843_v34 = vld [vmem:[#allocation5 + $0xec8] ss:$16 sps:$4 sm:$0xff]  }
 0x280   : > { %5319 = vmatpush1.bf16.msra.mxu0 %v8756_v33  ;;  %5730 = vmatprep.subr.bf16.mxu1 %v8767_v52  ;;  %v8840_v33 = vld [vmem:[#allocation5 + $0x12c0] ss:$16 sps:$4 sm:$0xff]   ;;  %v8851_v52 = vld [vmem:[#allocation5 + $0xeec] ss:$16 sps:$4 sm:$0xff]  }
 0x281   : > { %5320 = vmatprep.subr.bf16.mxu0 %v8764_v35  ;;  %v8848_v35 = vld [vmem:[#allocation5 + $0x12e4] ss:$16 sps:$4 sm:$0xff]  }
 0x283   : > { %5731 = vmatpush1.bf16.msra.mxu1 %v8765_v38  ;;  %v8849_v38 = vld [vmem:[#allocation5 + $0xee8] ss:$16 sps:$4 sm:$0xff]  }
 0x284   : > { %5321 = vmatpush1.bf16.msra.mxu0 %v8762_v37  ;;  %5732 = vmatprep.subr.bf16.mxu1 %v8773_v40  ;;  %v8846_v37 = vld [vmem:[#allocation5 + $0x12e0] ss:$16 sps:$4 sm:$0xff]   ;;  %v8857_v40 = vld [vmem:[#allocation5 + $0xf0c] ss:$16 sps:$4 sm:$0xff]  }
 0x285   : > { %5322 = vmatprep.subr.bf16.mxu0 %v8770_v39  ;;  %v8854_v39 = vld [vmem:[#allocation5 + $0x1304] ss:$16 sps:$4 sm:$0xff]  }
 0x287   : > { %5733 = vmatpush1.bf16.msra.mxu1 %v8771_v42  ;;  %v8855_v42 = vld [vmem:[#allocation5 + $0xf08] ss:$16 sps:$4 sm:$0xff]  }
 0x288   : > { %5323 = vmatpush1.bf16.msra.mxu0 %v8768_v41  ;;  %5734 = vmatprep.subr.bf16.mxu1 %v8779_v43  ;;  %v8852_v41 = vld [vmem:[#allocation5 + $0x1300] ss:$16 sps:$4 sm:$0xff]   ;;  %v8863_v43 = vld [vmem:[#allocation5 + $0xf2c] ss:$16 sps:$4 sm:$0xff]  }
 0x289   : > { %5324 = vmatprep.subr.bf16.mxu0 %v8776_v16  ;;  %v8860_v16 = vld [vmem:[#allocation5 + $0x1324] ss:$16 sps:$4 sm:$0xff]  }
 0x28b   : > { %5735 = vmatpush1.bf16.msra.mxu1 %v8777_v45  ;;  %v8861_v45 = vld [vmem:[#allocation5 + $0xf28] ss:$16 sps:$4 sm:$0xff]  }
 0x28c   : > { %5325 = vmatpush1.bf16.msra.mxu0 %v8774_v44  ;;  %5736 = vmatprep.subr.bf16.mxu1 %v8785_v48  ;;  %v8858_v44 = vld [vmem:[#allocation5 + $0x1320] ss:$16 sps:$4 sm:$0xff]   ;;  %v8869_v48 = vld [vmem:[#allocation5 + $0xf4c] ss:$16 sps:$4 sm:$0xff]  }
 0x28d   : > { %5326 = vmatprep.subr.bf16.mxu0 %v8782_v47  ;;  %v8866_v47 = vld [vmem:[#allocation5 + $0x1344] ss:$16 sps:$4 sm:$0xff]  }
 0x28f   : > { %5737 = vmatpush1.bf16.msra.mxu1 %v8783_v49  ;;  %v8867_v49 = vld [vmem:[#allocation5 + $0xf48] ss:$16 sps:$4 sm:$0xff]  }
 0x290   : > { %5327 = vmatpush1.bf16.msra.mxu0 %v8780_v23  ;;  %5738 = vmatprep.subr.bf16.mxu1 %v8791_v53  ;;  %v8864_v23 = vld [vmem:[#allocation5 + $0x1340] ss:$16 sps:$4 sm:$0xff]   ;;  %v8875_v53 = vld [vmem:[#allocation5 + $0xf6c] ss:$16 sps:$4 sm:$0xff]  }
 0x291   : > { %5328 = vmatprep.subr.bf16.mxu0 %v8788_v51  ;;  %v8872_v51 = vld [vmem:[#allocation5 + $0x1364] ss:$16 sps:$4 sm:$0xff]  }
 0x293   : > { %5739 = vmatpush1.bf16.msra.mxu1 %v8789_v54  ;;  %v8873_v54 = vld [vmem:[#allocation5 + $0xf68] ss:$16 sps:$4 sm:$0xff]  }
 0x294   : > { %5329 = vmatpush1.bf16.msra.mxu0 %v8786_v26  ;;  %5740 = vmatprep.subr.bf16.mxu1 %v8797_v59  ;;  %v8870_v26 = vld [vmem:[#allocation5 + $0x1360] ss:$16 sps:$4 sm:$0xff]   ;;  %v8881_v59 = vld [vmem:[#allocation5 + $0xf8c] ss:$16 sps:$4 sm:$0xff]  }
 0x295   : > { %5330 = vmatprep.subr.bf16.mxu0 %v8794_v58  ;;  %v8878_v58 = vld [vmem:[#allocation5 + $0x1384] ss:$16 sps:$4 sm:$0xff]  }
 0x297   : > { %5741 = vmatpush1.bf16.msra.mxu1 %v8795_v8  ;;  %v8879_v8 = vld [vmem:[#allocation5 + $0xf88] ss:$16 sps:$4 sm:$0xff]  }
 0x298   : > { %5331 = vmatpush1.bf16.msra.mxu0 %v8792_v60  ;;  %5742 = vmatprep.subr.bf16.mxu1 %v8803_v63  ;;  %v8876_v60 = vld [vmem:[#allocation5 + $0x1380] ss:$16 sps:$4 sm:$0xff]   ;;  %v8887_v63 = vld [vmem:[#allocation5 + $0xfac] ss:$16 sps:$4 sm:$0xff]  }
 0x299   : > { %5332 = vmatprep.subr.bf16.mxu0 %v8800_v62  ;;  %v8884_v62 = vld [vmem:[#allocation5 + $0x13a4] ss:$16 sps:$4 sm:$0xff]  }
 0x29b   : > { %5743 = vmatpush1.bf16.msra.mxu1 %v8801_v0  ;;  %v8885_v0 = vld [vmem:[#allocation5 + $0xfa8] ss:$16 sps:$4 sm:$0xff]  }
 0x29c   : > { %5333 = vmatpush1.bf16.msra.mxu0 %v8798_v31  ;;  %5753 = vmatprep.subr.bf16.mxu1 %v8809_v4  ;;  %v8882_v31 = vld [vmem:[#allocation5 + $0x13a0] ss:$16 sps:$4 sm:$0xff]  }
 0x29d   : > { %5343 = vmatprep.subr.bf16.mxu0 %v8806_v3  ;;  %v8893_v3 = vld [vmem:[#allocation5 + $0xfcc] ss:$16 sps:$4 sm:$0xff]   ;;  %v8888_v4 = vld [vmem:[#allocation5 + $0x13c0] ss:$16 sps:$4 sm:$0xff]  }
 0x29e   : > { %5745 = vmatmul.mubr.bf16.vlgmr.msra.gmra.mrb[4].mxu1 %v9863_v50  ;;  %v8827_v50 = vld [vmem:[#allocation5 + $0xe6c] ss:$16 sps:$4 sm:$0xff]  }
 0x29f   : > { %5335 = vmatmul.mubr.bf16.vlgmr.msra.gmra.mrb[0].mxu0 %v9882_v11  ;;  %5754 = vmatpush1.bf16.msra.mxu1 %v8807_v7  ;;  %v8899_v7 = vld [vmem:[#allocation5 + $0xfec] ss:$16 sps:$4 sm:$0xff]  }
 0x2a0   : > { %5344 = vmatpush1.bf16.msra.mxu0 %v8804_v6  ;;  %5755 = vmatprep.subr.bf16.mxu1 %v8815_v9  ;;  %v8896_v6 = vld [vmem:[#allocation5 + $0x13e4] ss:$16 sps:$4 sm:$0xff]   ;;  %v8897_v9 = vld [vmem:[#allocation5 + $0xfe8] ss:$16 sps:$4 sm:$0xff]  }
 0x2a1   : > { %5345 = vmatprep.subr.bf16.mxu0 %v8812_v36  ;;  %5375 = vmatprep.mubr.bf16.mxu0 %v9885_v10  ;;  %v8894_v36 = vld [vmem:[#allocation5 + $0x13e0] ss:$16 sps:$4 sm:$0xff]  }
 0x2a2   : > { %5785 = vmatprep.mubr.bf16.mxu1 %v9865_v57  ;;  %v8831_v57 = vld [vmem:[#allocation5 + $0xe88] ss:$16 sps:$4 sm:$0xff]  }
 0x2a3   : > { %5756 = vmatpush1.bf16.msra.mxu1 %v8813_v13  ;;  %v8902_v13 = vld [vmem:[#allocation5 + $0x1404] ss:$16 sps:$4 sm:$0xff]  }
 0x2a4   : > { %5346 = vmatpush1.bf16.msra.mxu0 %v8810_v12  ;;  %5757 = vmatprep.subr.bf16.mxu1 %v8821_v46  ;;  %v316_v12 = vld [vmem:[%s9782_s27 + $0x90] sm:$0xff] }
 0x2a5   : > { %5347 = vmatprep.subr.bf16.mxu0 %v8818_v14  ;;  %v8905_v14 = vld [vmem:[#allocation5 + $0x100c] ss:$16 sps:$4 sm:$0xff]   ;;  %v9892_v46 = vpack.c.bf16 %v316_v12, %v316_v12  ;;  %v8986_v12 = vld [vmem:[#allocation5 + $0x15c4] ss:$16 sps:$4 sm:$0xff]  }
 0x2a7   : > { %5758 = vmatpush1.bf16.msra.mxu1 %v8819_v17  ;;  %v8900_v17 = vld [vmem:[#allocation5 + $0x1400] ss:$16 sps:$4 sm:$0xff]  }
 0x2a8   : > { %5348 = vmatpush1.bf16.msra.mxu0 %v8816_v15  ;;  %5759 = vmatprep.subr.bf16.mxu1 %v8827_v50  ;;  %v319_v15 = vld [vmem:[%s9782_s27 + $0xa8] sm:$0xff]  ;;  %v8908_v50 = vld [vmem:[#allocation5 + $0x1424] ss:$16 sps:$4 sm:$0xff]  }
 0x2a9   : > { %5349 = vmatprep.subr.bf16.mxu0 %v8824_v18  ;;  %v8903_v18 = vld [vmem:[#allocation5 + $0x1008] ss:$16 sps:$4 sm:$0xff]  }
 0x2ab   : > { %5760 = vmatpush1.bf16.msra.mxu1 %v8825_v20  ;;  %v9895_v20 = vpack.c.bf16 %v319_v15, %v319_v15  ;;  %v8987_v15 = vld [vmem:[#allocation5 + $0x11c8] ss:$16 sps:$4 sm:$0xff]  }
 0x2ac   : > { %5350 = vmatpush1.bf16.msra.mxu0 %v8822_v19  ;;  %5761 = vmatprep.subr.bf16.mxu1 %v8833_v22  ;;  %v8911_v19 = vld [vmem:[#allocation5 + $0x102c] ss:$16 sps:$4 sm:$0xff]   ;;  %v8909_v22 = vld [vmem:[#allocation5 + $0x1028] ss:$16 sps:$4 sm:$0xff]  }
 0x2ad   : > { %5351 = vmatprep.subr.bf16.mxu0 %v8830_v21  ;;  %v8906_v21 = vld [vmem:[#allocation5 + $0x1420] ss:$16 sps:$4 sm:$0xff]  }
 0x2af   : > { %5762 = vmatpush1.bf16.msra.mxu1 %v8831_v57  ;;  %v8917_v57 = vld [vmem:[#allocation5 + $0x104c] ss:$16 sps:$4 sm:$0xff]  }
 0x2b0   : > { %5352 = vmatpush1.bf16.msra.mxu0 %v8828_v24  ;;  %5763 = vmatprep.subr.bf16.mxu1 %v8839_v27  ;;  %v8914_v24 = vld [vmem:[#allocation5 + $0x1444] ss:$16 sps:$4 sm:$0xff]   ;;  %v8915_v27 = vld [vmem:[#allocation5 + $0x1048] ss:$16 sps:$4 sm:$0xff]  }
 0x2b1   : > { %5353 = vmatprep.subr.bf16.mxu0 %v8836_v25  ;;  %v8912_v25 = vld [vmem:[#allocation5 + $0x1440] ss:$16 sps:$4 sm:$0xff]  }
 0x2b3   : > { %5764 = vmatpush1.bf16.msra.mxu1 %v8837_v29  ;;  %v8918_v29 = vld [vmem:[#allocation5 + $0x1460] ss:$16 sps:$4 sm:$0xff]  }
 0x2b4   : > { %5354 = vmatpush1.bf16.msra.mxu0 %v8834_v28  ;;  %5765 = vmatprep.subr.bf16.mxu1 %v8845_v32  ;;  %v8920_v28 = vld [vmem:[#allocation5 + $0x1464] ss:$16 sps:$4 sm:$0xff]  }
 0x2b5   : > { %5355 = vmatprep.subr.bf16.mxu0 %v8842_v30  ;;  %v8921_v30 = vld [vmem:[#allocation5 + $0x1068] ss:$16 sps:$4 sm:$0xff]   ;;  %v8926_v32 = vld [vmem:[#allocation5 + $0x1484] ss:$16 sps:$4 sm:$0xff]  }
 0x2b7   : > { %5766 = vmatpush1.bf16.msra.mxu1 %v8843_v34  ;;  %v8924_v34 = vld [vmem:[#allocation5 + $0x1480] ss:$16 sps:$4 sm:$0xff]  }
 0x2b8   : > { %5356 = vmatpush1.bf16.msra.mxu0 %v8840_v33  ;;  %5767 = vmatprep.subr.bf16.mxu1 %v8851_v52  ;;  %v8929_v33 = vld [vmem:[#allocation5 + $0x108c] ss:$16 sps:$4 sm:$0xff]  }
 0x2b9   : > { %5357 = vmatprep.subr.bf16.mxu0 %v8848_v35  ;;  %v8932_v35 = vld [vmem:[#allocation5 + $0x14a4] ss:$16 sps:$4 sm:$0xff]   ;;  %v8935_v52 = vld [vmem:[#allocation5 + $0x10ac] ss:$16 sps:$4 sm:$0xff]  }
 0x2bb   : > { %5768 = vmatpush1.bf16.msra.mxu1 %v8849_v38  ;;  %v8933_v38 = vld [vmem:[#allocation5 + $0x10a8] ss:$16 sps:$4 sm:$0xff]  }
 0x2bc   : > { %5358 = vmatpush1.bf16.msra.mxu0 %v8846_v37  ;;  %5769 = vmatprep.subr.bf16.mxu1 %v8857_v40  ;;  %v8930_v37 = vld [vmem:[#allocation5 + $0x14a0] ss:$16 sps:$4 sm:$0xff]   ;;  %v8941_v40 = vld [vmem:[#allocation5 + $0x10cc] ss:$16 sps:$4 sm:$0xff]  }
 0x2bd   : > { %5359 = vmatprep.subr.bf16.mxu0 %v8854_v39  ;;  %v8938_v39 = vld [vmem:[#allocation5 + $0x14c4] ss:$16 sps:$4 sm:$0xff]  }
 0x2bf   : > { %5770 = vmatpush1.bf16.msra.mxu1 %v8855_v42  ;;  %v8939_v42 = vld [vmem:[#allocation5 + $0x10c8] ss:$16 sps:$4 sm:$0xff]  }
 0x2c0   : > { %5360 = vmatpush1.bf16.msra.mxu0 %v8852_v41  ;;  %5771 = vmatprep.subr.bf16.mxu1 %v8863_v43  ;;  %v8936_v41 = vld [vmem:[#allocation5 + $0x14c0] ss:$16 sps:$4 sm:$0xff]   ;;  %v8947_v43 = vld [vmem:[#allocation5 + $0x10ec] ss:$16 sps:$4 sm:$0xff]  }
 0x2c1   : > { %5361 = vmatprep.subr.bf16.mxu0 %v8860_v16  ;;  %v8944_v16 = vld [vmem:[#allocation5 + $0x14e4] ss:$16 sps:$4 sm:$0xff]  }
 0x2c3   : > { %5772 = vmatpush1.bf16.msra.mxu1 %v8861_v45  ;;  %v8945_v45 = vld [vmem:[#allocation5 + $0x10e8] ss:$16 sps:$4 sm:$0xff]  }
 0x2c4   : > { %5362 = vmatpush1.bf16.msra.mxu0 %v8858_v44  ;;  %5773 = vmatprep.subr.bf16.mxu1 %v8869_v48  ;;  %v8942_v44 = vld [vmem:[#allocation5 + $0x14e0] ss:$16 sps:$4 sm:$0xff]   ;;  %v8953_v48 = vld [vmem:[#allocation5 + $0x110c] ss:$16 sps:$4 sm:$0xff]  }
 0x2c5   : > { %5363 = vmatprep.subr.bf16.mxu0 %v8866_v47  ;;  %v8950_v47 = vld [vmem:[#allocation5 + $0x1504] ss:$16 sps:$4 sm:$0xff]  }
 0x2c7   : > { %5774 = vmatpush1.bf16.msra.mxu1 %v8867_v49  ;;  %v8951_v49 = vld [vmem:[#allocation5 + $0x1108] ss:$16 sps:$4 sm:$0xff]  }
 0x2c8   : > { %5364 = vmatpush1.bf16.msra.mxu0 %v8864_v23  ;;  %5775 = vmatprep.subr.bf16.mxu1 %v8875_v53  ;;  %v8948_v23 = vld [vmem:[#allocation5 + $0x1500] ss:$16 sps:$4 sm:$0xff]   ;;  %v8959_v53 = vld [vmem:[#allocation5 + $0x112c] ss:$16 sps:$4 sm:$0xff]  }
 0x2c9   : > { %5365 = vmatprep.subr.bf16.mxu0 %v8872_v51  ;;  %v8956_v51 = vld [vmem:[#allocation5 + $0x1524] ss:$16 sps:$4 sm:$0xff]  }
 0x2cb   : > { %5776 = vmatpush1.bf16.msra.mxu1 %v8873_v54  ;;  %v8957_v54 = vld [vmem:[#allocation5 + $0x1128] ss:$16 sps:$4 sm:$0xff]  }
 0x2cc   : > { %5366 = vmatpush1.bf16.msra.mxu0 %v8870_v26  ;;  %5777 = vmatprep.subr.bf16.mxu1 %v8881_v59  ;;  %v8954_v26 = vld [vmem:[#allocation5 + $0x1520] ss:$16 sps:$4 sm:$0xff]   ;;  %v8965_v59 = vld [vmem:[#allocation5 + $0x114c] ss:$16 sps:$4 sm:$0xff]  }
 0x2cd   : > { %5367 = vmatprep.subr.bf16.mxu0 %v8878_v58  ;;  %v8962_v58 = vld [vmem:[#allocation5 + $0x1544] ss:$16 sps:$4 sm:$0xff]  }
 0x2cf   : > { %5778 = vmatpush1.bf16.msra.mxu1 %v8879_v8  ;;  %v8963_v8 = vld [vmem:[#allocation5 + $0x1148] ss:$16 sps:$4 sm:$0xff]  }
 0x2d0   : > { %5368 = vmatpush1.bf16.msra.mxu0 %v8876_v60  ;;  %5779 = vmatprep.subr.bf16.mxu1 %v8887_v63  ;;  %v8960_v60 = vld [vmem:[#allocation5 + $0x1540] ss:$16 sps:$4 sm:$0xff]   ;;  %v8971_v63 = vld [vmem:[#allocation5 + $0x116c] ss:$16 sps:$4 sm:$0xff]  }
 0x2d1   : > { %5369 = vmatprep.subr.bf16.mxu0 %v8884_v62  ;;  %v8968_v62 = vld [vmem:[#allocation5 + $0x1564] ss:$16 sps:$4 sm:$0xff]  }
 0x2d3   : > { %5780 = vmatpush1.bf16.msra.mxu1 %v8885_v0  ;;  %v8969_v0 = vld [vmem:[#allocation5 + $0x1168] ss:$16 sps:$4 sm:$0xff]  }
 0x2d4   : > { %5370 = vmatpush1.bf16.msra.mxu0 %v8882_v31  ;;  %5781 = vmatprep.subr.bf16.mxu1 %v8893_v3  ;;  %v8966_v31 = vld [vmem:[#allocation5 + $0x1560] ss:$16 sps:$4 sm:$0xff]   ;;  %v8977_v3 = vld [vmem:[#allocation5 + $0x118c] ss:$16 sps:$4 sm:$0xff]  }
 0x2d5   : > { %5371 = vmatprep.subr.bf16.mxu0 %v8890_v2  ;;  %v8974_v2 = vld [vmem:[#allocation5 + $0x1584] ss:$16 sps:$4 sm:$0xff]  }
 0x2d7   : > { %5782 = vmatpush1.bf16.msra.mxu1 %v8891_v5  ;;  %v8975_v5 = vld [vmem:[#allocation5 + $0x1188] ss:$16 sps:$4 sm:$0xff]  }
 0x2d8   : > { %5372 = vmatpush1.bf16.msra.mxu0 %v8888_v4  ;;  %5783 = vmatprep.subr.bf16.mxu1 %v8899_v7  ;;  %v8972_v4 = vld [vmem:[#allocation5 + $0x1580] ss:$16 sps:$4 sm:$0xff]   ;;  %v8983_v7 = vld [vmem:[#allocation5 + $0x11ac] ss:$16 sps:$4 sm:$0xff]  }
 0x2d9   : > { %5373 = vmatprep.subr.bf16.mxu0 %v8896_v6  ;;  %v8980_v6 = vld [vmem:[#allocation5 + $0x15a4] ss:$16 sps:$4 sm:$0xff]  }
 0x2db   : > { %5784 = vmatpush1.bf16.msra.mxu1 %v8897_v9  ;;  %v8981_v9 = vld [vmem:[#allocation5 + $0x11a8] ss:$16 sps:$4 sm:$0xff]  }
 0x2dc   : > { %5374 = vmatpush1.bf16.msra.mxu0 %v8894_v36  ;;  %5794 = vmatprep.subr.bf16.mxu1 %v8905_v14  ;;  %v8978_v36 = vld [vmem:[#allocation5 + $0x15a0] ss:$16 sps:$4 sm:$0xff]  }
 0x2dd   : > { %5384 = vmatprep.subr.bf16.mxu0 %v8902_v13  ;;  %v8989_v13 = vld [vmem:[#allocation5 + $0x11cc] ss:$16 sps:$4 sm:$0xff]   ;;  %v8984_v14 = vld [vmem:[#allocation5 + $0x15c0] ss:$16 sps:$4 sm:$0xff]  }
 0x2de   : > { %5786 = vmatmul.mubr.bf16.vlgmr.msra.gmra.mrb[4].mxu1 %v9873_v61  ;;  %v8923_v61 = vld [vmem:[#allocation5 + $0x106c] ss:$16 sps:$4 sm:$0xff]  }
 0x2df   : > { %5376 = vmatmul.mubr.bf16.vlgmr.msra.gmra.mrb[0].mxu0 %v9892_v46  ;;  %5795 = vmatpush1.bf16.msra.mxu1 %v8903_v18  ;;  %v8995_v18 = vld [vmem:[#allocation5 + $0x11ec] ss:$16 sps:$4 sm:$0xff]  }
 0x2e0   : > { %5385 = vmatpush1.bf16.msra.mxu0 %v8900_v17  ;;  %5796 = vmatprep.subr.bf16.mxu1 %v8911_v19  ;;  %v8992_v17 = vld [vmem:[#allocation5 + $0x15e4] ss:$16 sps:$4 sm:$0xff]   ;;  %v8993_v19 = vld [vmem:[#allocation5 + $0x11e8] ss:$16 sps:$4 sm:$0xff]  }
 0x2e1   : > { %5386 = vmatprep.subr.bf16.mxu0 %v8908_v50  ;;  %5416 = vmatprep.mubr.bf16.mxu0 %v9895_v20  ;;  %v8990_v50 = vld [vmem:[#allocation5 + $0x15e0] ss:$16 sps:$4 sm:$0xff]  }
 0x2e2   : > { %5826 = vmatprep.mubr.bf16.mxu1 %v9875_v1  ;;  %v8927_v1 = vld [vmem:[#allocation5 + $0x1088] ss:$16 sps:$4 sm:$0xff]  }
 0x2e3   : > { %5797 = vmatpush1.bf16.msra.mxu1 %v8909_v22  ;;  %v8998_v22 = vld [vmem:[#allocation5 + $0x1604] ss:$16 sps:$4 sm:$0xff]  }
 0x2e4   : > { %5387 = vmatpush1.bf16.msra.mxu0 %v8906_v21  ;;  %5798 = vmatprep.subr.bf16.mxu1 %v8917_v57  ;;  %v318_v21 = vld [vmem:[%s9782_s27 + $0xa0] sm:$0xff] }
 0x2e5   : > { %5388 = vmatprep.subr.bf16.mxu0 %v8914_v24  ;;  %v9001_v24 = vld [vmem:[#allocation5 + $0x120c] ss:$16 sps:$4 sm:$0xff]   ;;  %v9902_v57 = vpack.c.bf16 %v318_v21, %v318_v21  ;;  %v9082_v21 = vld [vmem:[#allocation5 + $0x17c4] ss:$16 sps:$4 sm:$0xff]  }
 0x2e7   : > { %5799 = vmatpush1.bf16.msra.mxu1 %v8915_v27  ;;  %v8996_v27 = vld [vmem:[#allocation5 + $0x1600] ss:$16 sps:$4 sm:$0xff]  }
 0x2e8   : > { %5389 = vmatpush1.bf16.msra.mxu0 %v8912_v25  ;;  %5800 = vmatprep.subr.bf16.mxu1 %v8923_v61  ;;  %v321_v25 = vld [vmem:[%s9782_s27 + $0xb8] sm:$0xff]  ;;  %v9004_v61 = vld [vmem:[#allocation5 + $0x1624] ss:$16 sps:$4 sm:$0xff]  }
 0x2e9   : > { %5390 = vmatprep.subr.bf16.mxu0 %v8920_v28  ;;  %v8999_v28 = vld [vmem:[#allocation5 + $0x1208] ss:$16 sps:$4 sm:$0xff]  }
 0x2eb   : > { %5801 = vmatpush1.bf16.msra.mxu1 %v8921_v30  ;;  %v9905_v30 = vpack.c.bf16 %v321_v25, %v321_v25  ;;  %v9083_v25 = vld [vmem:[#allocation5 + $0x13c8] ss:$16 sps:$4 sm:$0xff]  }
 0x2ec   : > { %5391 = vmatpush1.bf16.msra.mxu0 %v8918_v29  ;;  %5802 = vmatprep.subr.bf16.mxu1 %v8929_v33  ;;  %v9007_v29 = vld [vmem:[#allocation5 + $0x122c] ss:$16 sps:$4 sm:$0xff]   ;;  %v9005_v33 = vld [vmem:[#allocation5 + $0x1228] ss:$16 sps:$4 sm:$0xff]  }
 0x2ed   : > { %5392 = vmatprep.subr.bf16.mxu0 %v8926_v32  ;;  %v9002_v32 = vld [vmem:[#allocation5 + $0x1620] ss:$16 sps:$4 sm:$0xff]  }
 0x2ef   : > { %5803 = vmatpush1.bf16.msra.mxu1 %v8927_v1  ;;  %v9013_v1 = vld [vmem:[#allocation5 + $0x124c] ss:$16 sps:$4 sm:$0xff]  }
 0x2f0   : > { %5393 = vmatpush1.bf16.msra.mxu0 %v8924_v34  ;;  %5804 = vmatprep.subr.bf16.mxu1 %v8935_v52  ;;  %v9010_v34 = vld [vmem:[#allocation5 + $0x1644] ss:$16 sps:$4 sm:$0xff]   ;;  %v9011_v52 = vld [vmem:[#allocation5 + $0x1248] ss:$16 sps:$4 sm:$0xff]  }
 0x2f1   : > { %5394 = vmatprep.subr.bf16.mxu0 %v8932_v35  ;;  %v9008_v35 = vld [vmem:[#allocation5 + $0x1640] ss:$16 sps:$4 sm:$0xff]  }
 0x2f3   : > { %5805 = vmatpush1.bf16.msra.mxu1 %v8933_v38  ;;  %v9014_v38 = vld [vmem:[#allocation5 + $0x1660] ss:$16 sps:$4 sm:$0xff]  }
 0x2f4   : > { %5395 = vmatpush1.bf16.msra.mxu0 %v8930_v37  ;;  %5806 = vmatprep.subr.bf16.mxu1 %v8941_v40  ;;  %v9016_v37 = vld [vmem:[#allocation5 + $0x1664] ss:$16 sps:$4 sm:$0xff]  }
 0x2f5   : > { %5396 = vmatprep.subr.bf16.mxu0 %v8938_v39  ;;  %v9017_v39 = vld [vmem:[#allocation5 + $0x1268] ss:$16 sps:$4 sm:$0xff]   ;;  %v9022_v40 = vld [vmem:[#allocation5 + $0x1684] ss:$16 sps:$4 sm:$0xff]  }
 0x2f7   : > { %5807 = vmatpush1.bf16.msra.mxu1 %v8939_v42  ;;  %v9020_v42 = vld [vmem:[#allocation5 + $0x1680] ss:$16 sps:$4 sm:$0xff]  }
 0x2f8   : > { %5397 = vmatpush1.bf16.msra.mxu0 %v8936_v41  ;;  %5808 = vmatprep.subr.bf16.mxu1 %v8947_v43  ;;  %v9025_v41 = vld [vmem:[#allocation5 + $0x128c] ss:$16 sps:$4 sm:$0xff]  }
 0x2f9   : > { %5398 = vmatprep.subr.bf16.mxu0 %v8944_v16  ;;  %v9028_v16 = vld [vmem:[#allocation5 + $0x16a4] ss:$16 sps:$4 sm:$0xff]   ;;  %v9031_v43 = vld [vmem:[#allocation5 + $0x12ac] ss:$16 sps:$4 sm:$0xff]  }
 0x2fb   : > { %5809 = vmatpush1.bf16.msra.mxu1 %v8945_v45  ;;  %v9029_v45 = vld [vmem:[#allocation5 + $0x12a8] ss:$16 sps:$4 sm:$0xff]  }
 0x2fc   : > { %5399 = vmatpush1.bf16.msra.mxu0 %v8942_v44  ;;  %5810 = vmatprep.subr.bf16.mxu1 %v8953_v48  ;;  %v9026_v44 = vld [vmem:[#allocation5 + $0x16a0] ss:$16 sps:$4 sm:$0xff]   ;;  %v9037_v48 = vld [vmem:[#allocation5 + $0x12cc] ss:$16 sps:$4 sm:$0xff]  }
 0x2fd   : > { %5400 = vmatprep.subr.bf16.mxu0 %v8950_v47  ;;  %v9034_v47 = vld [vmem:[#allocation5 + $0x16c4] ss:$16 sps:$4 sm:$0xff]  }
 0x2ff   : > { %5811 = vmatpush1.bf16.msra.mxu1 %v8951_v49  ;;  %v9035_v49 = vld [vmem:[#allocation5 + $0x12c8] ss:$16 sps:$4 sm:$0xff]  }
 0x300   : > { %5401 = vmatpush1.bf16.msra.mxu0 %v8948_v23  ;;  %5812 = vmatprep.subr.bf16.mxu1 %v8959_v53  ;;  %v9032_v23 = vld [vmem:[#allocation5 + $0x16c0] ss:$16 sps:$4 sm:$0xff]   ;;  %v9043_v53 = vld [vmem:[#allocation5 + $0x12ec] ss:$16 sps:$4 sm:$0xff]  }
 0x301   : > { %5402 = vmatprep.subr.bf16.mxu0 %v8956_v51  ;;  %v9040_v51 = vld [vmem:[#allocation5 + $0x16e4] ss:$16 sps:$4 sm:$0xff]  }
 0x303   : > { %5813 = vmatpush1.bf16.msra.mxu1 %v8957_v54  ;;  %v9041_v54 = vld [vmem:[#allocation5 + $0x12e8] ss:$16 sps:$4 sm:$0xff]  }
 0x304   : > { %5403 = vmatpush1.bf16.msra.mxu0 %v8954_v26  ;;  %5814 = vmatprep.subr.bf16.mxu1 %v8965_v59  ;;  %v9038_v26 = vld [vmem:[#allocation5 + $0x16e0] ss:$16 sps:$4 sm:$0xff]   ;;  %v9049_v59 = vld [vmem:[#allocation5 + $0x130c] ss:$16 sps:$4 sm:$0xff]  }
 0x305   : > { %5404 = vmatprep.subr.bf16.mxu0 %v8962_v58  ;;  %v9046_v58 = vld [vmem:[#allocation5 + $0x1704] ss:$16 sps:$4 sm:$0xff]  }
 0x307   : > { %5815 = vmatpush1.bf16.msra.mxu1 %v8963_v8  ;;  %v9047_v8 = vld [vmem:[#allocation5 + $0x1308] ss:$16 sps:$4 sm:$0xff]  }
 0x308   : > { %5405 = vmatpush1.bf16.msra.mxu0 %v8960_v60  ;;  %5816 = vmatprep.subr.bf16.mxu1 %v8971_v63  ;;  %v9044_v60 = vld [vmem:[#allocation5 + $0x1700] ss:$16 sps:$4 sm:$0xff]   ;;  %v9055_v63 = vld [vmem:[#allocation5 + $0x132c] ss:$16 sps:$4 sm:$0xff]  }
 0x309   : > { %5406 = vmatprep.subr.bf16.mxu0 %v8968_v62  ;;  %v9052_v62 = vld [vmem:[#allocation5 + $0x1724] ss:$16 sps:$4 sm:$0xff]  }
 0x30b   : > { %5817 = vmatpush1.bf16.msra.mxu1 %v8969_v0  ;;  %v9053_v0 = vld [vmem:[#allocation5 + $0x1328] ss:$16 sps:$4 sm:$0xff]  }
 0x30c   : > { %5407 = vmatpush1.bf16.msra.mxu0 %v8966_v31  ;;  %5818 = vmatprep.subr.bf16.mxu1 %v8977_v3  ;;  %v9050_v31 = vld [vmem:[#allocation5 + $0x1720] ss:$16 sps:$4 sm:$0xff]   ;;  %v9061_v3 = vld [vmem:[#allocation5 + $0x134c] ss:$16 sps:$4 sm:$0xff]  }
 0x30d   : > { %5408 = vmatprep.subr.bf16.mxu0 %v8974_v2  ;;  %v9058_v2 = vld [vmem:[#allocation5 + $0x1744] ss:$16 sps:$4 sm:$0xff]  }
 0x30f   : > { %5819 = vmatpush1.bf16.msra.mxu1 %v8975_v5  ;;  %v9059_v5 = vld [vmem:[#allocation5 + $0x1348] ss:$16 sps:$4 sm:$0xff]  }
 0x310   : > { %5409 = vmatpush1.bf16.msra.mxu0 %v8972_v4  ;;  %5820 = vmatprep.subr.bf16.mxu1 %v8983_v7  ;;  %v9056_v4 = vld [vmem:[#allocation5 + $0x1740] ss:$16 sps:$4 sm:$0xff]   ;;  %v9067_v7 = vld [vmem:[#allocation5 + $0x136c] ss:$16 sps:$4 sm:$0xff]  }
 0x311   : > { %5410 = vmatprep.subr.bf16.mxu0 %v8980_v6  ;;  %v9064_v6 = vld [vmem:[#allocation5 + $0x1764] ss:$16 sps:$4 sm:$0xff]  }
 0x313   : > { %5821 = vmatpush1.bf16.msra.mxu1 %v8981_v9  ;;  %v9065_v9 = vld [vmem:[#allocation5 + $0x1368] ss:$16 sps:$4 sm:$0xff]  }
 0x314   : > { %5411 = vmatpush1.bf16.msra.mxu0 %v8978_v36  ;;  %5822 = vmatprep.subr.bf16.mxu1 %v8989_v13  ;;  %v9062_v36 = vld [vmem:[#allocation5 + $0x1760] ss:$16 sps:$4 sm:$0xff]   ;;  %v9073_v13 = vld [vmem:[#allocation5 + $0x138c] ss:$16 sps:$4 sm:$0xff]  }
 0x315   : > { %5412 = vmatprep.subr.bf16.mxu0 %v8986_v12  ;;  %v9070_v12 = vld [vmem:[#allocation5 + $0x1784] ss:$16 sps:$4 sm:$0xff]  }
 0x317   : > { %5823 = vmatpush1.bf16.msra.mxu1 %v8987_v15  ;;  %v9071_v15 = vld [vmem:[#allocation5 + $0x1388] ss:$16 sps:$4 sm:$0xff]  }
 0x318   : > { %5413 = vmatpush1.bf16.msra.mxu0 %v8984_v14  ;;  %5824 = vmatprep.subr.bf16.mxu1 %v8995_v18  ;;  %v9068_v14 = vld [vmem:[#allocation5 + $0x1780] ss:$16 sps:$4 sm:$0xff]   ;;  %v9079_v18 = vld [vmem:[#allocation5 + $0x13ac] ss:$16 sps:$4 sm:$0xff]  }
 0x319   : > { %5414 = vmatprep.subr.bf16.mxu0 %v8992_v17  ;;  %v9076_v17 = vld [vmem:[#allocation5 + $0x17a4] ss:$16 sps:$4 sm:$0xff]  }
 0x31b   : > { %5825 = vmatpush1.bf16.msra.mxu1 %v8993_v19  ;;  %v9077_v19 = vld [vmem:[#allocation5 + $0x13a8] ss:$16 sps:$4 sm:$0xff]  }
 0x31c   : > { %5415 = vmatpush1.bf16.msra.mxu0 %v8990_v50  ;;  %5835 = vmatprep.subr.bf16.mxu1 %v9001_v24  ;;  %v9074_v50 = vld [vmem:[#allocation5 + $0x17a0] ss:$16 sps:$4 sm:$0xff]  }
 0x31d   : > { %5425 = vmatprep.subr.bf16.mxu0 %v8998_v22  ;;  %v9085_v22 = vld [vmem:[#allocation5 + $0x13cc] ss:$16 sps:$4 sm:$0xff]   ;;  %v9080_v24 = vld [vmem:[#allocation5 + $0x17c0] ss:$16 sps:$4 sm:$0xff]  }
 0x31e   : > { %5827 = vmatmul.mubr.bf16.vlgmr.msra.gmra.mrb[4].mxu1 %v9882_v11  ;;  %v9019_v11 = vld [vmem:[#allocation5 + $0x126c] ss:$16 sps:$4 sm:$0xff]  }
 0x31f   : > { %5417 = vmatmul.mubr.bf16.vlgmr.msra.gmra.mrb[0].mxu0 %v9902_v57  ;;  %5836 = vmatpush1.bf16.msra.mxu1 %v8999_v28  ;;  %v9091_v28 = vld [vmem:[#allocation5 + $0x13ec] ss:$16 sps:$4 sm:$0xff]  }
 0x320   : > { %5426 = vmatpush1.bf16.msra.mxu0 %v8996_v27  ;;  %5837 = vmatprep.subr.bf16.mxu1 %v9007_v29  ;;  %v9088_v27 = vld [vmem:[#allocation5 + $0x17e4] ss:$16 sps:$4 sm:$0xff]   ;;  %v9089_v29 = vld [vmem:[#allocation5 + $0x13e8] ss:$16 sps:$4 sm:$0xff]  }
 0x321   : > { %5427 = vmatprep.subr.bf16.mxu0 %v9004_v61  ;;  %5457 = vmatprep.mubr.bf16.mxu0 %v9905_v30  ;;  %v9086_v61 = vld [vmem:[#allocation5 + $0x17e0] ss:$16 sps:$4 sm:$0xff]  }
 0x322   : > { %5867 = vmatprep.mubr.bf16.mxu1 %v9885_v10  ;;  %v9023_v10 = vld [vmem:[#allocation5 + $0x1288] ss:$16 sps:$4 sm:$0xff]  }
 0x323   : > { %5838 = vmatpush1.bf16.msra.mxu1 %v9005_v33  ;;  %v9094_v33 = vld [vmem:[#allocation5 + $0x140c] ss:$16 sps:$4 sm:$0xff]  }
 0x324   : > { %5428 = vmatpush1.bf16.msra.mxu0 %v9002_v32  ;;  %5839 = vmatprep.subr.bf16.mxu1 %v9013_v1  ;;  %v320_v32 = vld [vmem:[%s9782_s27 + $0xb0] sm:$0xff]  ;;  %v9092_v1 = vld [vmem:[#allocation5 + $0x1408] ss:$16 sps:$4 sm:$0xff]  }
 0x325   : > { %5429 = vmatprep.subr.bf16.mxu0 %v9010_v34  ;;  %v9912_v34 = vpack.c.bf16 %v320_v32, %v320_v32  ;;  %v9203_v32 = vld [vmem:[#allocation7 + $0x50] ss:$8 sps:$4 sm:$0xff]  }
 0x327   : > { %5840 = vmatpush1.bf16.msra.mxu1 %v9011_v52  ;;  %v9188_v52 = vld [vmem:[#allocation7] ss:$8 sps:$4 sm:$0xff]  }
 0x328   : > { %5430 = vmatpush1.bf16.msra.mxu0 %v9008_v35  ;;  %5841 = vmatprep.subr.bf16.mxu1 %v9019_v11  ;;  %v9097_v35 = vld [vmem:[#allocation5 + $0x142c] ss:$16 sps:$4 sm:$0xff]   ;;  %v9095_v11 = vld [vmem:[#allocation5 + $0x1428] ss:$16 sps:$4 sm:$0xff]  }
 0x329   : > { %5431 = vmatprep.subr.bf16.mxu0 %v9016_v37  ;;  %v9190_v37 = vld [vmem:[#allocation7 + $0x4] ss:$8 sps:$4 sm:$0xff]  }
 0x32b   : > { %5842 = vmatpush1.bf16.msra.mxu1 %v9017_v39  ;;  %v9100_v39 = vld [vmem:[#allocation5 + $0x144c] ss:$16 sps:$4 sm:$0xff]  }
 0x32c   : > { %5432 = vmatpush1.bf16.msra.mxu0 %v9014_v38  ;;  %5843 = vmatprep.subr.bf16.mxu1 %v9025_v41  ;;  %v9193_v38 = vld [vmem:[#allocation7 + $0x14] ss:$8 sps:$4 sm:$0xff]   ;;  %v9196_v41 = vld [vmem:[#allocation7 + $0x24] ss:$8 sps:$4 sm:$0xff]  }
 0x32d   : > { %5433 = vmatprep.subr.bf16.mxu0 %v9022_v40  ;;  %v9191_v40 = vld [vmem:[#allocation7 + $0x10] ss:$8 sps:$4 sm:$0xff]  }
 0x32f   : > { %5844 = vmatpush1.bf16.msra.mxu1 %v9023_v10  ;;  %v9103_v10 = vld [vmem:[#allocation5 + $0x146c] ss:$16 sps:$4 sm:$0xff]  }
 0x330   : > { %5434 = vmatpush1.bf16.msra.mxu0 %v9020_v42  ;;  %5845 = vmatprep.subr.bf16.mxu1 %v9031_v43  ;;  %v9098_v42 = vld [vmem:[#allocation5 + $0x1448] ss:$16 sps:$4 sm:$0xff]   ;;  %v9106_v43 = vld [vmem:[#allocation5 + $0x148c] ss:$16 sps:$4 sm:$0xff]  }
 0x331   : > { %5435 = vmatprep.subr.bf16.mxu0 %v9028_v16  ;;  %v9101_v16 = vld [vmem:[#allocation5 + $0x1468] ss:$16 sps:$4 sm:$0xff]  }
 0x333   : > { %5846 = vmatpush1.bf16.msra.mxu1 %v9029_v45  ;;  %v9107_v45 = vld [vmem:[#allocation5 + $0x14a8] ss:$16 sps:$4 sm:$0xff]  }
 0x334   : > { %5436 = vmatpush1.bf16.msra.mxu0 %v9026_v44  ;;  %5847 = vmatprep.subr.bf16.mxu1 %v9037_v48  ;;  %v9109_v44 = vld [vmem:[#allocation5 + $0x14ac] ss:$16 sps:$4 sm:$0xff]   ;;  %v9110_v48 = vld [vmem:[#allocation5 + $0x14c8] ss:$16 sps:$4 sm:$0xff]  }
 0x335   : > { %5437 = vmatprep.subr.bf16.mxu0 %v9034_v47  ;;  %v9112_v47 = vld [vmem:[#allocation5 + $0x14cc] ss:$16 sps:$4 sm:$0xff]  }
 0x337   : > { %5848 = vmatpush1.bf16.msra.mxu1 %v9035_v49  ;;  %v9113_v49 = vld [vmem:[#allocation5 + $0x14e8] ss:$16 sps:$4 sm:$0xff]  }
 0x338   : > { %5438 = vmatpush1.bf16.msra.mxu0 %v9032_v23  ;;  %5849 = vmatprep.subr.bf16.mxu1 %v9043_v53  ;;  %v9115_v23 = vld [vmem:[#allocation5 + $0x14ec] ss:$16 sps:$4 sm:$0xff]   ;;  %v9116_v53 = vld [vmem:[#allocation5 + $0x1508] ss:$16 sps:$4 sm:$0xff]  }
 0x339   : > { %5439 = vmatprep.subr.bf16.mxu0 %v9040_v51  ;;  %v9118_v51 = vld [vmem:[#allocation5 + $0x150c] ss:$16 sps:$4 sm:$0xff]  }
 0x33b   : > { %5850 = vmatpush1.bf16.msra.mxu1 %v9041_v54  ;;  %v9119_v54 = vld [vmem:[#allocation5 + $0x1528] ss:$16 sps:$4 sm:$0xff]  }
 0x33c   : > { %5440 = vmatpush1.bf16.msra.mxu0 %v9038_v26  ;;  %5851 = vmatprep.subr.bf16.mxu1 %v9049_v59  ;;  %v9121_v26 = vld [vmem:[#allocation5 + $0x152c] ss:$16 sps:$4 sm:$0xff]   ;;  %v9122_v59 = vld [vmem:[#allocation5 + $0x1548] ss:$16 sps:$4 sm:$0xff]  }
 0x33d   : > { %5441 = vmatprep.subr.bf16.mxu0 %v9046_v58  ;;  %v9124_v58 = vld [vmem:[#allocation5 + $0x154c] ss:$16 sps:$4 sm:$0xff]  }
 0x33f   : > { %5852 = vmatpush1.bf16.msra.mxu1 %v9047_v8  ;;  %v9125_v8 = vld [vmem:[#allocation5 + $0x1568] ss:$16 sps:$4 sm:$0xff]  }
 0x340   : > { %5442 = vmatpush1.bf16.msra.mxu0 %v9044_v60  ;;  %5853 = vmatprep.subr.bf16.mxu1 %v9055_v63  ;;  %v9127_v60 = vld [vmem:[#allocation5 + $0x156c] ss:$16 sps:$4 sm:$0xff]   ;;  %v9128_v63 = vld [vmem:[#allocation5 + $0x1588] ss:$16 sps:$4 sm:$0xff]  }
 0x341   : > { %5443 = vmatprep.subr.bf16.mxu0 %v9052_v62  ;;  %v9130_v62 = vld [vmem:[#allocation5 + $0x158c] ss:$16 sps:$4 sm:$0xff]  }
 0x343   : > { %5854 = vmatpush1.bf16.msra.mxu1 %v9053_v0  ;;  %v9131_v0 = vld [vmem:[#allocation5 + $0x15a8] ss:$16 sps:$4 sm:$0xff]  }
 0x344   : > { %5444 = vmatpush1.bf16.msra.mxu0 %v9050_v31  ;;  %5855 = vmatprep.subr.bf16.mxu1 %v9061_v3  ;;  %v9133_v31 = vld [vmem:[#allocation5 + $0x15ac] ss:$16 sps:$4 sm:$0xff]   ;;  %v9134_v3 = vld [vmem:[#allocation5 + $0x15c8] ss:$16 sps:$4 sm:$0xff]  }
 0x345   : > { %5445 = vmatprep.subr.bf16.mxu0 %v9058_v2  ;;  %v9136_v2 = vld [vmem:[#allocation5 + $0x15cc] ss:$16 sps:$4 sm:$0xff]  }
 0x347   : > { %5856 = vmatpush1.bf16.msra.mxu1 %v9059_v5  ;;  %v9137_v5 = vld [vmem:[#allocation5 + $0x15e8] ss:$16 sps:$4 sm:$0xff]  }
 0x348   : > { %5446 = vmatpush1.bf16.msra.mxu0 %v9056_v4  ;;  %5857 = vmatprep.subr.bf16.mxu1 %v9067_v7  ;;  %v9139_v4 = vld [vmem:[#allocation5 + $0x15ec] ss:$16 sps:$4 sm:$0xff]   ;;  %v9140_v7 = vld [vmem:[#allocation5 + $0x1608] ss:$16 sps:$4 sm:$0xff]  }
 0x349   : > { %5447 = vmatprep.subr.bf16.mxu0 %v9064_v6  ;;  %v9142_v6 = vld [vmem:[#allocation5 + $0x160c] ss:$16 sps:$4 sm:$0xff]  }
 0x34b   : > { %5858 = vmatpush1.bf16.msra.mxu1 %v9065_v9  ;;  %v9143_v9 = vld [vmem:[#allocation5 + $0x1628] ss:$16 sps:$4 sm:$0xff]  }
 0x34c   : > { %5448 = vmatpush1.bf16.msra.mxu0 %v9062_v36  ;;  %5859 = vmatprep.subr.bf16.mxu1 %v9073_v13  ;;  %v9145_v36 = vld [vmem:[#allocation5 + $0x162c] ss:$16 sps:$4 sm:$0xff]   ;;  %v9146_v13 = vld [vmem:[#allocation5 + $0x1648] ss:$16 sps:$4 sm:$0xff]  }
 0x34d   : > { %5449 = vmatprep.subr.bf16.mxu0 %v9070_v12  ;;  %v9148_v12 = vld [vmem:[#allocation5 + $0x164c] ss:$16 sps:$4 sm:$0xff]  }
 0x34f   : > { %5860 = vmatpush1.bf16.msra.mxu1 %v9071_v15  ;;  %v9149_v15 = vld [vmem:[#allocation5 + $0x1668] ss:$16 sps:$4 sm:$0xff]  }
 0x350   : > { %5450 = vmatpush1.bf16.msra.mxu0 %v9068_v14  ;;  %5861 = vmatprep.subr.bf16.mxu1 %v9079_v18  ;;  %v9151_v14 = vld [vmem:[#allocation5 + $0x166c] ss:$16 sps:$4 sm:$0xff]   ;;  %v9152_v18 = vld [vmem:[#allocation5 + $0x1688] ss:$16 sps:$4 sm:$0xff]  }
 0x351   : > { %5451 = vmatprep.subr.bf16.mxu0 %v9076_v17  ;;  %v9154_v17 = vld [vmem:[#allocation5 + $0x168c] ss:$16 sps:$4 sm:$0xff]  }
 0x353   : > { %5862 = vmatpush1.bf16.msra.mxu1 %v9077_v19  ;;  %v9160_v19 = vld [vmem:[#allocation5 + $0x16cc] ss:$16 sps:$4 sm:$0xff]  }
 0x354   : > { %5452 = vmatpush1.bf16.msra.mxu0 %v9074_v50  ;;  %5863 = vmatprep.subr.bf16.mxu1 %v9085_v22  ;;  %v9157_v50 = vld [vmem:[#allocation5 + $0x16ac] ss:$16 sps:$4 sm:$0xff]   ;;  %v9158_v22 = vld [vmem:[#allocation5 + $0x16c8] ss:$16 sps:$4 sm:$0xff]  }
 0x355   : > { %5453 = vmatprep.subr.bf16.mxu0 %v9082_v21  ;;  %v9199_v21 = vld [vmem:[#allocation7 + $0x34] ss:$8 sps:$4 sm:$0xff]  }
 0x357   : > { %5864 = vmatpush1.bf16.msra.mxu1 %v9083_v25  ;;  %v9202_v25 = vld [vmem:[#allocation7 + $0x44] ss:$8 sps:$4 sm:$0xff]  }
 0x358   : > { %5454 = vmatpush1.bf16.msra.mxu0 %v9080_v24  ;;  %5865 = vmatprep.subr.bf16.mxu1 %v9091_v28  ;;  %v9163_v24 = vld [vmem:[#allocation5 + $0x16ec] ss:$16 sps:$4 sm:$0xff]   ;;  %v9161_v28 = vld [vmem:[#allocation5 + $0x16e8] ss:$16 sps:$4 sm:$0xff]  }
 0x359   : > { %5455 = vmatprep.subr.bf16.mxu0 %v9088_v27  ;;  %v9200_v27 = vld [vmem:[#allocation7 + $0x40] ss:$8 sps:$4 sm:$0xff]  }
 0x35b   : > { %5866 = vmatpush1.bf16.msra.mxu1 %v9089_v29  ;;  %v9205_v29 = vld [vmem:[#allocation7 + $0x54] ss:$8 sps:$4 sm:$0xff]  }
 0x35c   : > { %5456 = vmatpush1.bf16.msra.mxu0 %v9086_v61  ;;  %5876 = vmatprep.subr.bf16.mxu1 %v9094_v33  ;;  %v9166_v61 = vld [vmem:[#allocation5 + $0x170c] ss:$16 sps:$4 sm:$0xff]   ;;  %v9164_v33 = vld [vmem:[#allocation5 + $0x1708] ss:$16 sps:$4 sm:$0xff]  }
 0x35d   : > { %6503 = vmatprep.subr.bf16.mxu0 %v9190_v37  ;;  %v9167_v37 = vld [vmem:[#allocation5 + $0x1728] ss:$16 sps:$4 sm:$0xff]  }
 0x35e   : > { %5868 = vmatmul.mubr.bf16.vlgmr.msra.gmra.mrb[4].mxu1 %v9892_v46  ;;  %v9194_v46 = vld [vmem:[#allocation7 + $0x20] ss:$8 sps:$4 sm:$0xff]  }
 0x35f   : > { %5458 = vmatmul.mubr.bf16.vlgmr.msra.gmra.mrb[0].mxu0 %v9912_v34  ;;  %5877 = vmatpush1.bf16.msra.mxu1 %v9092_v1  ;;  %v9169_v1 = vld [vmem:[#allocation5 + $0x172c] ss:$16 sps:$4 sm:$0xff]  }
 0x360   : > { %5908 = vmatprep.mubr.bf16.mxu1 %v9895_v20  ;;  %5878 = vmatprep.subr.bf16.mxu1 %v9097_v35  ;;  %v9104_v20 = vld [vmem:[#allocation5 + $0x1488] ss:$16 sps:$4 sm:$0xff]   ;;  %v9208_v35 = vld [vmem:[#allocation7 + $0x64] ss:$8 sps:$4 sm:$0xff]  }
 0x361   : > { %6504 = vmatpush1.bf16.msra.mxu0 %v9188_v52  ;;  %v9206_v52 = vld [vmem:[#allocation7 + $0x60] ss:$8 sps:$4 sm:$0xff]  }
 0x362   : > { %6505 = vmatprep.subr.bf16.mxu0 %v9193_v38  ;;  %v9211_v38 = vld [vmem:[#allocation7 + $0x74] ss:$8 sps:$4 sm:$0xff]  }
 0x363   : > { %5879 = vmatpush1.bf16.msra.mxu1 %v9095_v11  ;;  %v9172_v11 = vld [vmem:[#allocation5 + $0x174c] ss:$16 sps:$4 sm:$0xff]  }
 0x364   : > { %5880 = vmatprep.subr.bf16.mxu1 %v9100_v39  ;;  %v9209_v39 = vld [vmem:[#allocation7 + $0x70] ss:$8 sps:$4 sm:$0xff]  }
 0x365   : > { %6506 = vmatpush1.bf16.msra.mxu0 %v9191_v40  ;;  %v9170_v40 = vld [vmem:[#allocation5 + $0x1748] ss:$16 sps:$4 sm:$0xff]  }
 0x366   : > { %6507 = vmatprep.subr.bf16.mxu0 %v9196_v41  ;;  %v9175_v41 = vld [vmem:[#allocation5 + $0x176c] ss:$16 sps:$4 sm:$0xff]  }
 0x367   : > { %5881 = vmatpush1.bf16.msra.mxu1 %v9098_v42  ;;  %v9214_v42 = vld [vmem:[#allocation7 + $0x84] ss:$8 sps:$4 sm:$0xff]  }
 0x368   : > { %5882 = vmatprep.subr.bf16.mxu1 %v9103_v10  ;;  %v9212_v10 = vld [vmem:[#allocation7 + $0x80] ss:$8 sps:$4 sm:$0xff]  }
 0x369   : > { %6508 = vmatpush1.bf16.msra.mxu0 %v9194_v46  ;;  %v9173_v46 = vld [vmem:[#allocation5 + $0x1768] ss:$16 sps:$4 sm:$0xff]  }
 0x36a   : > { %6509 = vmatprep.subr.bf16.mxu0 %v9199_v21 }
 0x36b   : > { %5883 = vmatpush1.bf16.msra.mxu1 %v9101_v16  ;;  %v9178_v16 = vld [vmem:[#allocation5 + $0x178c] ss:$16 sps:$4 sm:$0xff]  }
 0x36c   : > { %5884 = vmatprep.subr.bf16.mxu1 %v9106_v43  ;;  %v9217_v43 = vld [vmem:[#allocation7 + $0x94] ss:$8 sps:$4 sm:$0xff]  }
 0x36f   : > { %5885 = vmatpush1.bf16.msra.mxu1 %v9104_v20  ;;  %v9215_v20 = vld [vmem:[#allocation7 + $0x90] ss:$8 sps:$4 sm:$0xff]  }
 0x370   : > { %5886 = vmatprep.subr.bf16.mxu1 %v9109_v44  ;;  %v9176_v44 = vld [vmem:[#allocation5 + $0x1788] ss:$16 sps:$4 sm:$0xff]  }
 0x373   : > { %5887 = vmatpush1.bf16.msra.mxu1 %v9107_v45  ;;  %v9181_v45 = vld [vmem:[#allocation5 + $0x17ac] ss:$16 sps:$4 sm:$0xff]  }
 0x374   : > { %5888 = vmatprep.subr.bf16.mxu1 %v9112_v47  ;;  %v9220_v47 = vld [vmem:[#allocation7 + $0xa4] ss:$8 sps:$4 sm:$0xff]  }
 0x377   : > { %5889 = vmatpush1.bf16.msra.mxu1 %v9110_v48  ;;  %v9218_v48 = vld [vmem:[#allocation7 + $0xa0] ss:$8 sps:$4 sm:$0xff]  }
 0x378   : > { %5890 = vmatprep.subr.bf16.mxu1 %v9115_v23  ;;  %v9179_v23 = vld [vmem:[#allocation5 + $0x17a8] ss:$16 sps:$4 sm:$0xff]  }
 0x37b   : > { %5891 = vmatpush1.bf16.msra.mxu1 %v9113_v49  ;;  %v9184_v49 = vld [vmem:[#allocation5 + $0x17cc] ss:$16 sps:$4 sm:$0xff]  }
 0x37c   : > { %5892 = vmatprep.subr.bf16.mxu1 %v9118_v51  ;;  %v9223_v51 = vld [vmem:[#allocation7 + $0xb4] ss:$8 sps:$4 sm:$0xff]  }
 0x37f   : > { %5893 = vmatpush1.bf16.msra.mxu1 %v9116_v53  ;;  %v9221_v53 = vld [vmem:[#allocation7 + $0xb0] ss:$8 sps:$4 sm:$0xff]  }
 0x380   : > { %5894 = vmatprep.subr.bf16.mxu1 %v9121_v26  ;;  %v9182_v26 = vld [vmem:[#allocation5 + $0x17c8] ss:$16 sps:$4 sm:$0xff]  }
 0x383   : > { %5895 = vmatpush1.bf16.msra.mxu1 %v9119_v54  ;;  %v9187_v54 = vld [vmem:[#allocation5 + $0x17ec] ss:$16 sps:$4 sm:$0xff]  }
 0x384   : > { %5896 = vmatprep.subr.bf16.mxu1 %v9124_v58  ;;  %v9226_v58 = vld [vmem:[#allocation7 + $0xc4] ss:$8 sps:$4 sm:$0xff]  }
 0x387   : > { %5897 = vmatpush1.bf16.msra.mxu1 %v9122_v59  ;;  %v9224_v59 = vld [vmem:[#allocation7 + $0xc0] ss:$8 sps:$4 sm:$0xff]  }
 0x388   : > { %5898 = vmatprep.subr.bf16.mxu1 %v9127_v60  ;;  %v9185_v60 = vld [vmem:[#allocation5 + $0x17e8] ss:$16 sps:$4 sm:$0xff]  }
 0x38b   : > { %5899 = vmatpush1.bf16.msra.mxu1 %v9125_v8  ;;  %v9229_v8 = vld [vmem:[#allocation7 + $0xd4] ss:$8 sps:$4 sm:$0xff]  }
 0x38c   : > { %5900 = vmatprep.subr.bf16.mxu1 %v9130_v62  ;;  %v9227_v62 = vld [vmem:[#allocation7 + $0xd0] ss:$8 sps:$4 sm:$0xff]  }
 0x38f   : > { %5901 = vmatpush1.bf16.msra.mxu1 %v9128_v63  ;;  %v9232_v63 = vld [vmem:[#allocation7 + $0xe4] ss:$8 sps:$4 sm:$0xff]  }
 0x390   : > { %5902 = vmatprep.subr.bf16.mxu1 %v9133_v31  ;;  %v9230_v31 = vld [vmem:[#allocation7 + $0xe0] ss:$8 sps:$4 sm:$0xff]  }
 0x393   : > { %5903 = vmatpush1.bf16.msra.mxu1 %v9131_v0  ;;  %v9235_v0 = vld [vmem:[#allocation7 + $0xf4] ss:$8 sps:$4 sm:$0xff]  }
 0x394   : > { %5904 = vmatprep.subr.bf16.mxu1 %v9136_v2  ;;  %v9233_v2 = vld [vmem:[#allocation7 + $0xf0] ss:$8 sps:$4 sm:$0xff]  }
 0x397   : > { %5905 = vmatpush1.bf16.msra.mxu1 %v9134_v3  ;;  %v9238_v3 = vld [vmem:[#allocation7 + $0x104] ss:$8 sps:$4 sm:$0xff]  }
 0x398   : > { %5906 = vmatprep.subr.bf16.mxu1 %v9139_v4  ;;  %v1118_v4 = vlaneseq }
 0x39b   : > { %5907 = vmatpush1.bf16.msra.mxu1 %v9137_v5  ;;  %v9920_v5 = vshrl.u32 %v1118_v4, 7 }
 0x39c   : > { %5917 = vmatprep.subr.bf16.mxu1 %v9142_v6 }
 0x39d   : > { %v9923_v6 = vsub.s32 0, %v9920_v5 }
 0x39e   : > { %5909 = vmatmul.mubr.bf16.vlgmr.msra.gmra.mrb[4].mxu1 %v9902_v57  ;;  %v9155_v57 = vld [vmem:[#allocation5 + $0x16a8] ss:$16 sps:$4 sm:$0xff]  }
 0x39f   : > { %5918 = vmatpush1.bf16.msra.mxu1 %v9140_v7  ;;  %5949 = vmatprep.mubr.bf16.mxu1 %v9905_v30  ;;  %v9197_v30 = vld [vmem:[#allocation7 + $0x30] ss:$8 sps:$4 sm:$0xff]   ;;  %v9925_v7 = vld [vmem:[#allocation10] sm:$0xff] }
 0x3a0   : > { %5919 = vmatprep.subr.bf16.mxu1 %v9145_v36  ;;  %6510 = vmatpush1.bf16.msra.mxu0 %v9197_v30  ;;  %v9927_v36 = vld [vmem:[#allocation10 + $0x8] sm:$0xff] }
 0x3a1   : > { %6511 = vmatprep.subr.bf16.mxu0 %v9202_v25 }
 0x3a3   : > { %5920 = vmatpush1.bf16.msra.mxu1 %v9143_v9  ;;  %v1121_v9 = vrot.slane %v9925_v7, %v9923_v6 }
 0x3a4   : > { %5921 = vmatprep.subr.bf16.mxu1 %v9148_v12  ;;  %6512 = vmatpush1.bf16.msra.mxu0 %v9200_v27 }
 0x3a5   : > { %6513 = vmatprep.subr.bf16.mxu0 %v9205_v29  ;;  %v5009_v12 = vadd.f32 %v9847_v55, %v1121_v9 }
 0x3a7   : > { %5922 = vmatpush1.bf16.msra.mxu1 %v9146_v13 }
 0x3a8   : > { %5923 = vmatprep.subr.bf16.mxu1 %v9151_v14  ;;  %6514 = vmatpush1.bf16.msra.mxu0 %v9203_v32 }
 0x3a9   : > { %6515 = vmatprep.subr.bf16.mxu0 %v9208_v35 }
 0x3ab   : > { %5924 = vmatpush1.bf16.msra.mxu1 %v9149_v15 }
 0x3ac   : > { %5925 = vmatprep.subr.bf16.mxu1 %v9154_v17  ;;  %6516 = vmatpush1.bf16.msra.mxu0 %v9206_v52 }
 0x3ad   : > { %6517 = vmatprep.subr.bf16.mxu0 %v9211_v38 }
 0x3af   : > { %5926 = vmatpush1.bf16.msra.mxu1 %v9152_v18 }
 0x3b0   : > { %5927 = vmatprep.subr.bf16.mxu1 %v9157_v50  ;;  %6518 = vmatpush1.bf16.msra.mxu0 %v9209_v39 }
 0x3b1   : > { %6519 = vmatprep.subr.bf16.mxu0 %v9214_v42 }
 0x3b3   : > { %5928 = vmatpush1.bf16.msra.mxu1 %v9155_v57 }
 0x3b4   : > { %5929 = vmatprep.subr.bf16.mxu1 %v9160_v19  ;;  %6520 = vmatpush1.bf16.msra.mxu0 %v9212_v10 }
 0x3b5   : > { %6521 = vmatprep.subr.bf16.mxu0 %v9217_v43 }
 0x3b7   : > { %5930 = vmatpush1.bf16.msra.mxu1 %v9158_v22 }
 0x3b8   : > { %5931 = vmatprep.subr.bf16.mxu1 %v9163_v24  ;;  %6522 = vmatpush1.bf16.msra.mxu0 %v9215_v20 }
 0x3b9   : > { %6523 = vmatprep.subr.bf16.mxu0 %v9220_v47 }
 0x3bb   : > { %5932 = vmatpush1.bf16.msra.mxu1 %v9161_v28 }
 0x3bc   : > { %5933 = vmatprep.subr.bf16.mxu1 %v9166_v61  ;;  %6524 = vmatpush1.bf16.msra.mxu0 %v9218_v48 }
 0x3bd   : > { %6525 = vmatprep.subr.bf16.mxu0 %v9223_v51 }
 0x3bf   : > { %5934 = vmatpush1.bf16.msra.mxu1 %v9164_v33 }
 0x3c0   : > { %5935 = vmatprep.subr.bf16.mxu1 %v9169_v1  ;;  %6526 = vmatpush1.bf16.msra.mxu0 %v9221_v53 }
 0x3c1   : > { %6527 = vmatprep.subr.bf16.mxu0 %v9226_v58 }
 0x3c3   : > { %5936 = vmatpush1.bf16.msra.mxu1 %v9167_v37 }
 0x3c4   : > { %5937 = vmatprep.subr.bf16.mxu1 %v9172_v11  ;;  %6528 = vmatpush1.bf16.msra.mxu0 %v9224_v59 }
 0x3c5   : > { %6529 = vmatprep.subr.bf16.mxu0 %v9229_v8 }
 0x3c7   : > { %5938 = vmatpush1.bf16.msra.mxu1 %v9170_v40 }
 0x3c8   : > { %5939 = vmatprep.subr.bf16.mxu1 %v9175_v41  ;;  %6530 = vmatpush1.bf16.msra.mxu0 %v9227_v62  ;;  %v9937_v62 = vsub.s32 1, %v9920_v5 }
 0x3c9   : > { %6531 = vmatprep.subr.bf16.mxu0 %v9232_v63 }
 0x3cb   : > { %5940 = vmatpush1.bf16.msra.mxu1 %v9173_v46 }
 0x3cc   : > { %5941 = vmatprep.subr.bf16.mxu1 %v9178_v16  ;;  %6532 = vmatpush1.bf16.msra.mxu0 %v9230_v31 }
 0x3cd   : > { %6533 = vmatprep.subr.bf16.mxu0 %v9235_v0 }
 0x3cf   : > { %5942 = vmatpush1.bf16.msra.mxu1 %v9176_v44 }
 0x3d0   : > { %5943 = vmatprep.subr.bf16.mxu1 %v9181_v45  ;;  %6534 = vmatpush1.bf16.msra.mxu0 %v9233_v2 }
 0x3d1   : > { %6544 = vmatprep.subr.bf16.mxu0 %v9238_v3  ;;  %v9942_v3 = vsub.s32 2, %v9920_v5 }
 0x3d3   : > { %5944 = vmatpush1.bf16.msra.mxu1 %v9179_v23 }
 0x3d4   : > { %5945 = vmatprep.subr.bf16.mxu1 %v9184_v49 }
 0x3d7   : > { %5946 = vmatpush1.bf16.msra.mxu1 %v9182_v26 }
 0x3d8   : > { %5947 = vmatprep.subr.bf16.mxu1 %v9187_v54 }
 0x3db   : > { %5948 = vmatpush1.bf16.msra.mxu1 %v9185_v60 }
 0x3de   : > { %5950 = vmatmul.mubr.bf16.vlgmr.msra.gmra.mrb[4].mxu1 %v9912_v34  ;;  %v1125_v34 = vrot.slane %v9927_v36, %v9923_v6 }
 0x3e0   : > { %v5011_v13 = vadd.f32 %v9849_v56, %v1125_v34 }
 0x432   : > { %v5459_v14 = vpop.f32.mrb[0].mxu0 }
 0x433   : > { %v7845_v15 = vadd.f32 %v5459_v14, %v5009_v12  ;;  %v5461_v17 = vpop.f32.mrb[1].mxu0 }
 0x434   : > { %v7847_v18 = vadd.f32 %v5461_v17, %v5011_v13  ;;  %v5463_v50 = vpop.f32.mrb[2].mxu0 }
 0x435   : > { %v5958_v57 = vmax.f32 %v7845_v15, 0.0  ;;  %v5464_v19 = vpop.f32.mrb[3].mxu0 }
 0x436   : > { %v5959_v21 = vmax.f32 %v7847_v18, 0.0 }
 0x437   : > { %v5962_v30 = vrot.slane %v5958_v57, 4  ;;  %v5991_v22 = vmul.f32 %v5958_v57, %v5958_v57 }
 0x438   : > { %v5968_v24 = vrot.slane %v5959_v21, 4  ;;  %v5992_v25 = vmul.f32 %v5959_v21, %v5959_v21 }
 0x439   : > { %v5963_v27 = vadd.f32 %v5962_v30, %v5958_v57  ;;  %v5995_v28 = vrot.slane %v5991_v22, 4 }
 0x43a   : > { %v5969_v61 = vadd.f32 %v5968_v24, %v5959_v21  ;;  %v6001_v29 = vrot.slane %v5992_v25, 4 }
 0x43b   : > { %v5964_v32 = vrot.slane %v5963_v27, 2  ;;  %v5996_v55 = vadd.f32 %v5995_v28, %v5991_v22  ;;  %v9236_v22 = vld [vmem:[#allocation7 + $0x100] ss:$8 sps:$4 sm:$0xff]   ;;  %v9244_v28 = vld [vmem:[#allocation7 + $0x124] ss:$8 sps:$4 sm:$0xff]  }
 0x43c   : > { %v5970_v33 = vrot.slane %v5969_v61, 2  ;;  %v6002_v56 = vadd.f32 %v6001_v29, %v5992_v25  ;;  %v9241_v25 = vld [vmem:[#allocation7 + $0x114] ss:$8 sps:$4 sm:$0xff]   ;;  %v9250_v29 = vld [vmem:[#allocation7 + $0x144] ss:$8 sps:$4 sm:$0xff]  }
 0x43d   : > { %v5965_v1 = vadd.f32 %v5964_v32, %v5963_v27  ;;  %v5997_v35 = vrot.slane %v5996_v55, 2  ;;  %v9239_v27 = vld [vmem:[#allocation7 + $0x110] ss:$8 sps:$4 sm:$0xff]   ;;  %v9248_v32 = vld [vmem:[#allocation7 + $0x140] ss:$8 sps:$4 sm:$0xff]  }
 0x43e   : > { %v5971_v52 = vadd.f32 %v5970_v33, %v5969_v61  ;;  %v6003_v37 = vrot.slane %v6002_v56, 2  ;;  %v9242_v61 = vld [vmem:[#allocation7 + $0x120] ss:$8 sps:$4 sm:$0xff]   ;;  %v9251_v33 = vld [vmem:[#allocation7 + $0x150] ss:$8 sps:$4 sm:$0xff]  }
 0x43f   : > { %v5966_v11 = vrot.slane %v5965_v1, 1  ;;  %v5998_v38 = vadd.f32 %v5997_v35, %v5996_v55  ;;  %v9253_v55 = vld [vmem:[#allocation7 + $0x154] ss:$8 sps:$4 sm:$0xff]  }
 0x440   : > { %v5972_v39 = vrot.slane %v5971_v52, 1  ;;  %v6004_v40 = vadd.f32 %v6003_v37, %v6002_v56  ;;  %v9256_v56 = vld [vmem:[#allocation7 + $0x164] ss:$8 sps:$4 sm:$0xff]   ;;  %v9259_v35 = vld [vmem:[#allocation7 + $0x174] ss:$8 sps:$4 sm:$0xff]  }
 0x441   : > { %v5967_v41 = vadd.f32 %v5966_v11, %v5965_v1  ;;  %v5999_v42 = vrot.slane %v5998_v38, 1  ;;  %v9254_v1 = vld [vmem:[#allocation7 + $0x160] ss:$8 sps:$4 sm:$0xff]   ;;  %v9262_v37 = vld [vmem:[#allocation7 + $0x184] ss:$8 sps:$4 sm:$0xff]  }
 0x442   : > { %v5973_v10 = vadd.f32 %v5972_v39, %v5971_v52  ;;  %v6005_v46 = vrot.slane %v6004_v40, 1  ;;  %v9257_v52 = vld [vmem:[#allocation7 + $0x170] ss:$8 sps:$4 sm:$0xff]   ;;  %v9260_v11 = vld [vmem:[#allocation7 + $0x180] ss:$8 sps:$4 sm:$0xff]  }
 0x443   : > { %v5987_v16 = vmul.f32 0.125, %v5967_v41  ;;  %v6000_v43 = vadd.f32 %v5999_v42, %v5998_v38  ;;  %v9265_v38 = vld [vmem:[#allocation7 + $0x194] ss:$8 sps:$4 sm:$0xff]   ;;  %v9263_v39 = vld [vmem:[#allocation7 + $0x190] ss:$8 sps:$4 sm:$0xff]  }
 0x444   : > { %v6006_v20 = vadd.f32 %v6005_v46, %v6004_v40  ;;  %v5988_v44 = vmul.f32 0.125, %v5973_v10  ;;  %v9268_v40 = vld [vmem:[#allocation7 + $0x1a4] ss:$8 sps:$4 sm:$0xff]   ;;  %v9266_v41 = vld [vmem:[#allocation7 + $0x1a0] ss:$8 sps:$4 sm:$0xff]  }
 0x445   : > { %v6019_v45 = vmul.f32 0.125, %v6000_v43  ;;  %v6023_v47 = vmul.f32 %v5987_v16, %v5987_v16  ;;  %v9271_v42 = vld [vmem:[#allocation7 + $0x1b4] ss:$8 sps:$4 sm:$0xff]   ;;  %v9269_v10 = vld [vmem:[#allocation7 + $0x1b0] ss:$8 sps:$4 sm:$0xff]  }
 0x446   : > { %v6020_v48 = vmul.f32 0.125, %v6006_v20  ;;  %v6024_v23 = vmul.f32 %v5988_v44, %v5988_v44  ;;  %v9274_v46 = vld [vmem:[#allocation7 + $0x1c4] ss:$8 sps:$4 sm:$0xff]   ;;  %v9277_v43 = vld [vmem:[#allocation7 + $0x1d4] ss:$8 sps:$4 sm:$0xff]  }
 0x447   : > { %v6027_v49 = vsub.f32 %v6019_v45, %v6023_v47  ;;  %v9275_v20 = vld [vmem:[#allocation7 + $0x1d0] ss:$8 sps:$4 sm:$0xff]   ;;  %v9278_v45 = vld [vmem:[#allocation7 + $0x1e0] ss:$8 sps:$4 sm:$0xff]   ;;  %v9283_v47 = vld [vmem:[#allocation7 + $0x1f4] ss:$8 sps:$4 sm:$0xff]  }
 0x448   : > { %v6028_v51 = vsub.f32 %v6020_v48, %v6024_v23  ;;  %v9281_v48 = vld [vmem:[#allocation7 + $0x1f0] ss:$8 sps:$4 sm:$0xff]  }
 0x449   : > { %v6031_v53 = vmax.f32 %v6027_v49, 0.0  ;;  %v348_v23 = vld [vmem:[#allocation10 + $0x10] sm:$0xff]  ;;  %v349_v49 = vld [vmem:[#allocation10 + $0x18] sm:$0xff] }
 0x44a   : > { %v6032_v26 = vmax.f32 %v6028_v51, 0.0  ;;  %v1129_v51 = vrot.slane %v348_v23, %v9923_v6 }
 0x44b   : > { %v6035_v54 = vadd.f32 1e-05, %v6031_v53  ;;  %v1133_v53 = vrot.slane %v349_v49, %v9923_v6 }
 0x44c   : > { %v6036_v58 = vadd.f32 1e-05, %v6032_v26 }
 0x44d   : > { %9300 = vrsqrt.f32 %v6035_v54 }
 0x44e   : > { %9302 = vrsqrt.f32 %v6036_v58 }
 0x457   : > { %v9301_v59 = vpop.eup %9300 }
 0x458   : > { %v9303_v60 = vpop.eup %9302  ;;  %v6043_v8 = vmul.f32 %v9301_v59, %v9925_v7 }
 0x459   : > { %v6044_v63 = vmul.f32 %v9303_v60, %v9927_v36 }
 0x45a   : > { %v6067_v31 = vmul.f32 %v6043_v8, %v5987_v16  ;;  %v6050_v2 = vrot.slane %v6043_v8, %v9937_v62  ;;  %v9272_v16 = vld [vmem:[#allocation7 + $0x1c0] ss:$8 sps:$4 sm:$0xff]  }
 0x45b   : > { %v6068_v0 = vmul.f32 %v6044_v63, %v5988_v44  ;;  %v6054_v9 = vrot.slane %v6044_v63, %v9937_v62  ;;  %v9280_v44 = vld [vmem:[#allocation7 + $0x1e4] ss:$8 sps:$4 sm:$0xff]  }
 0x45c   : > { %v6075_v4 = vrot.slane %v6067_v31, 7  ;;  %v6063_v14 = vmul.f32 %v6050_v2, %v5958_v57  ;;  %v9247_v57 = vld [vmem:[#allocation7 + $0x134] ss:$8 sps:$4 sm:$0xff]  }
 0x45d   : > { %v6076_v34 = vrot.slane %v6068_v0, 7  ;;  %v6064_v17 = vmul.f32 %v6054_v9, %v5959_v21  ;;  %v9245_v21 = vld [vmem:[#allocation7 + $0x130] ss:$8 sps:$4 sm:$0xff]  }
 0x45e   : > { %v6083_v12 = vsub.f32 %v9925_v7, %v6075_v4 }
 0x45f   : > { %v6084_v13 = vsub.f32 %v9927_v36, %v6076_v34 }
 0x460   : > { %v6090_v15 = vrot.slane %v6083_v12, %v9942_v3 }
 0x461   : > { %v6094_v18 = vrot.slane %v6084_v13, %v9942_v3 }
 0x462   : > { %v6103_v50 = vadd.f32 %v6090_v15, %v6063_v14 }
 0x463   : > { %v6104_v19 = vadd.f32 %v6094_v18, %v6064_v17 }
 0x464   : > { %v6107_v24 = vpack.c.bf16 %v6103_v50, %v6103_v50 }
 0x465   : > { %v6108_v30 = vpack.c.bf16 %v6104_v19, %v6104_v19 }
 0x467   : > { %6535 = vmatprep.mubr.bf16.mxu0 %v6108_v30 }
 0x468   : > { %6536 = vmatmul.mubr.bf16.vlgmr.msra.gmra.mrb[4].mxu0 %v6107_v24 }
 0x469   : > { %6545 = vmatpush1.bf16.msra.mxu0 %v9236_v22 }
 0x46a   : > { %6546 = vmatprep.subr.bf16.mxu0 %v9241_v25 }
 0x46d   : > { %6547 = vmatpush1.bf16.msra.mxu0 %v9239_v27 }
 0x46e   : > { %6548 = vmatprep.subr.bf16.mxu0 %v9244_v28 }
 0x471   : > { %6549 = vmatpush1.bf16.msra.mxu0 %v9242_v61 }
 0x472   : > { %6550 = vmatprep.subr.bf16.mxu0 %v9247_v57 }
 0x475   : > { %6551 = vmatpush1.bf16.msra.mxu0 %v9245_v21 }
 0x476   : > { %6552 = vmatprep.subr.bf16.mxu0 %v9250_v29 }
 0x479   : > { %6553 = vmatpush1.bf16.msra.mxu0 %v9248_v32 }
 0x47a   : > { %6554 = vmatprep.subr.bf16.mxu0 %v9253_v55 }
 0x47d   : > { %6555 = vmatpush1.bf16.msra.mxu0 %v9251_v33 }
 0x47e   : > { %6556 = vmatprep.subr.bf16.mxu0 %v9256_v56 }
 0x481   : > { %6557 = vmatpush1.bf16.msra.mxu0 %v9254_v1 }
 0x482   : > { %6558 = vmatprep.subr.bf16.mxu0 %v9259_v35 }
 0x485   : > { %6559 = vmatpush1.bf16.msra.mxu0 %v9257_v52 }
 0x486   : > { %6560 = vmatprep.subr.bf16.mxu0 %v9262_v37 }
 0x489   : > { %6561 = vmatpush1.bf16.msra.mxu0 %v9260_v11 }
 0x48a   : > { %6562 = vmatprep.subr.bf16.mxu0 %v9265_v38 }
 0x48d   : > { %6563 = vmatpush1.bf16.msra.mxu0 %v9263_v39 }
 0x48e   : > { %6564 = vmatprep.subr.bf16.mxu0 %v9268_v40 }
 0x491   : > { %6565 = vmatpush1.bf16.msra.mxu0 %v9266_v41 }
 0x492   : > { %6566 = vmatprep.subr.bf16.mxu0 %v9271_v42 }
 0x495   : > { %6567 = vmatpush1.bf16.msra.mxu0 %v9269_v10 }
 0x496   : > { %6568 = vmatprep.subr.bf16.mxu0 %v9274_v46 }
 0x499   : > { %6569 = vmatpush1.bf16.msra.mxu0 %v9272_v16 }
 0x49a   : > { %6570 = vmatprep.subr.bf16.mxu0 %v9277_v43 }
 0x49d   : > { %6571 = vmatpush1.bf16.msra.mxu0 %v9275_v20 }
 0x49e   : > { %6572 = vmatprep.subr.bf16.mxu0 %v9280_v44 }
 0x4a1   : > { %6573 = vmatpush1.bf16.msra.mxu0 %v9278_v45 }
 0x4a2   : > { %6574 = vmatprep.subr.bf16.mxu0 %v9283_v47 }
 0x4a5   : > { %6575 = vmatpush1.bf16.msra.mxu0 %v9281_v48 }
 0x4b1   : > { %v5951_v26 = vpop.f32.mrb[4].mxu1 }
 0x4b2   : > { %v7848_v54 = vadd.f32 %v5951_v26, %v1129_v51  ;;  %v5953_v58 = vpop.f32.mrb[5].mxu1 }
 0x4b3   : > { %v7849_v59 = vadd.f32 %v5953_v58, %v1133_v53  ;;  %v5955_v60 = vpop.f32.mrb[6].mxu1 }
 0x4b4   : > { %v5960_v8 = vmax.f32 %v7848_v54, 0.0  ;;  %v5956_v63 = vpop.f32.mrb[7].mxu1 }
 0x4b5   : > { %v5961_v31 = vmax.f32 %v7849_v59, 0.0 }
 0x4b6   : > { %v5974_v0 = vrot.slane %v5960_v8, 4  ;;  %v5993_v2 = vmul.f32 %v5960_v8, %v5960_v8 }
 0x4b7   : > { %v5980_v4 = vrot.slane %v5961_v31, 4  ;;  %v5994_v9 = vmul.f32 %v5961_v31, %v5961_v31 }
 0x4b8   : > { %v5975_v34 = vadd.f32 %v5974_v0, %v5960_v8  ;;  %v6007_v12 = vrot.slane %v5993_v2, 4 }
 0x4b9   : > { %v5981_v13 = vadd.f32 %v5980_v4, %v5961_v31  ;;  %v6013_v14 = vrot.slane %v5994_v9, 4 }
 0x4ba   : > { %v5976_v15 = vrot.slane %v5975_v34, 2  ;;  %v6008_v17 = vadd.f32 %v6007_v12, %v5993_v2  ;;  %v9286_v12 = vld [vmem:[#allocation8 + $0x48] sm:$0xff]  }
 0x4bb   : > { %v5982_v18 = vrot.slane %v5981_v13, 2  ;;  %v6014_v6 = vadd.f32 %v6013_v14, %v5994_v9  ;;  %v9284_v9 = vld [vmem:[#allocation8 + $0x40] sm:$0xff]   ;;  %v9294_v14 = vld [vmem:[#allocation8 + $0x68] sm:$0xff]  }
 0x4bc   : > { %v5977_v50 = vadd.f32 %v5976_v15, %v5975_v34  ;;  %v6009_v19 = vrot.slane %v6008_v17, 2  ;;  %v9285_v34 = vld [vmem:[#allocation8] sm:$0xff]   ;;  %7822 = vmatprep.subr.bf16.mxu1 %v9284_v9  ;;  %v9295_v15 = vld [vmem:[#allocation8 + $0x28] sm:$0xff]  }
 0x4bd   : > { %v5983_v30 = vadd.f32 %v5982_v18, %v5981_v13  ;;  %v6015_v22 = vrot.slane %v6014_v6, 2  ;;  %7823 = vmatpush3.bf16.msra.mxu1 %v9285_v34  ;;  %v9293_v13 = vld [vmem:[#allocation8 + $0x20] sm:$0xff]   ;;  %v9297_v18 = vld [vmem:[#allocation8 + $0x30] sm:$0xff]  }
 0x4be   : > { %v5978_v24 = vrot.slane %v5977_v50, 1  ;;  %v6010_v25 = vadd.f32 %v6009_v19, %v6008_v17  ;;  %7824 = vmatprep.subr.bf16.mxu1 %v9286_v12  ;;  %v9296_v17 = vld [vmem:[#allocation8 + $0x70] sm:$0xff]   ;;  %v6177_v19 = vsub.s32 3, %v9920_v5 }
 0x4bf   : > { %v5984_v27 = vrot.slane %v5983_v30, 1  ;;  %v6016_v28 = vadd.f32 %v6015_v22, %v6014_v6  ;;  %v9298_v6 = vld [vmem:[#allocation8 + $0x78] sm:$0xff]  }
 0x4c0   : > { %v5979_v61 = vadd.f32 %v5978_v24, %v5977_v50  ;;  %v6011_v57 = vrot.slane %v6010_v25, 1  ;;  %v9299_v50 = vld [vmem:[#allocation8 + $0x38] sm:$0xff]   ;;  %v6182_v22 = vrot.slane %v9927_v36, %v6177_v19 }
 0x4c1   : > { %v5985_v21 = vadd.f32 %v5984_v27, %v5983_v30  ;;  %v6017_v29 = vrot.slane %v6016_v28, 1  ;;  %v6178_v30 = vrot.slane %v9925_v7, %v6177_v19 }
 0x4c2   : > { %v5989_v32 = vmul.f32 0.125, %v5979_v61  ;;  %v6012_v55 = vadd.f32 %v6011_v57, %v6010_v25 }
 0x4c3   : > { %v5990_v33 = vmul.f32 0.125, %v5985_v21  ;;  %v6018_v56 = vadd.f32 %v6017_v29, %v6016_v28 }
 0x4c4   : > { %v6021_v1 = vmul.f32 0.125, %v6012_v55  ;;  %v6025_v35 = vmul.f32 %v5989_v32, %v5989_v32 }
 0x4c5   : > { %v6022_v52 = vmul.f32 0.125, %v6018_v56  ;;  %v6026_v37 = vmul.f32 %v5990_v33, %v5990_v33 }
 0x4c6   : > { %v6029_v11 = vsub.f32 %v6021_v1, %v6025_v35 }
 0x4c7   : > { %v6030_v38 = vsub.f32 %v6022_v52, %v6026_v37 }
 0x4c8   : > { %v6033_v39 = vmax.f32 %v6029_v11, 0.0 }
 0x4c9   : > { %v6034_v40 = vmax.f32 %v6030_v38, 0.0 }
 0x4ca   : > { %v6037_v41 = vadd.f32 1e-05, %v6033_v39 }
 0x4cb   : > { %v6038_v42 = vadd.f32 1e-05, %v6034_v40 }
 0x4cc   : > { %9304 = vrsqrt.f32 %v6037_v41 }
 0x4cd   : > { %9306 = vrsqrt.f32 %v6038_v42 }
 0x4d6   : > { %v9305_v10 = vpop.eup %9304 }
 0x4d7   : > { %v9307_v46 = vpop.eup %9306  ;;  %v6045_v16 = vmul.f32 %v9305_v10, %v348_v23 }
 0x4d8   : > { %v6046_v43 = vmul.f32 %v9307_v46, %v349_v49 }
 0x4d9   : > { %v6069_v20 = vmul.f32 %v6045_v16, %v5989_v32  ;;  %v6058_v45 = vrot.slane %v6045_v16, %v9937_v62 }
 0x4da   : > { %v6070_v44 = vmul.f32 %v6046_v43, %v5990_v33  ;;  %v6062_v51 = vrot.slane %v6046_v43, %v9937_v62  ;;  %v9287_v62 = vld [vmem:[#allocation8 + $0x8] sm:$0xff]  }
 0x4db   : > { %v6077_v47 = vrot.slane %v6069_v20, 7  ;;  %v6065_v54 = vmul.f32 %v6058_v45, %v5960_v8  ;;  %7825 = vmatpush3.bf16.msra.mxu1 %v9287_v62  ;;  %v9290_v8 = vld [vmem:[#allocation8 + $0x58] sm:$0xff]  }
 0x4dc   : > { %v6078_v48 = vrot.slane %v6070_v44, 7  ;;  %v6066_v59 = vmul.f32 %v6062_v51, %v5961_v31  ;;  %v9292_v31 = vld [vmem:[#allocation8 + $0x60] sm:$0xff]  }
 0x4dd   : > { %v6085_v53 = vsub.f32 %v348_v23, %v6077_v47  ;;  %v9288_v23 = vld [vmem:[#allocation8 + $0x50] sm:$0xff]  }
 0x4de   : > { %v6086_v26 = vsub.f32 %v349_v49, %v6078_v48  ;;  %v9289_v49 = vld [vmem:[#allocation8 + $0x10] sm:$0xff]   ;;  %7826 = vmatprep.subr.bf16.mxu1 %v9288_v23 }
 0x4df   : > { %v6098_v58 = vrot.slane %v6085_v53, %v9942_v3  ;;  %7827 = vmatpush3.bf16.msra.mxu1 %v9289_v49 }
 0x4e0   : > { %v6102_v60 = vrot.slane %v6086_v26, %v9942_v3  ;;  %v9291_v3 = vld [vmem:[#allocation8 + $0x18] sm:$0xff]   ;;  %7828 = vmatprep.subr.bf16.mxu1 %v9290_v8 }
 0x4e1   : > { %v6105_v63 = vadd.f32 %v6098_v58, %v6065_v54 }
 0x4e2   : > { %v6106_v0 = vadd.f32 %v6102_v60, %v6066_v59 }
 0x4e3   : > { %v6109_v4 = vpack.c.bf16 %v6105_v63, %v6105_v63  ;;  %7829 = vmatpush3.bf16.msra.mxu1 %v9291_v3  ;;  %v6631_v3 = vsub.s32 4, %v9920_v5 }
 0x4e4   : > { %v6110_v2 = vpack.c.bf16 %v6106_v0, %v6106_v0  ;;  %7830 = vmatprep.subr.bf16.mxu1 %v9292_v31 }
 0x4e6   : > { %6576 = vmatprep.mubr.bf16.mxu0 %v6110_v2 }
 0x4e7   : > { %6577 = vmatmul.mubr.bf16.vlgmr.msra.gmra.mrb[4].mxu0 %v6109_v4  ;;  %7831 = vmatpush3.bf16.msra.mxu1 %v9293_v13 }
 0x4e8   : > { %7832 = vmatprep.subr.bf16.mxu1 %v9294_v14 }
 0x4eb   : > { %7833 = vmatpush3.bf16.msra.mxu1 %v9295_v15 }
 0x4ec   : > { %7834 = vmatprep.subr.bf16.mxu1 %v9296_v17  ;;  %v6651_v17 = vsub.s32 5, %v9920_v5 }
 0x4ef   : > { %7835 = vmatpush3.bf16.msra.mxu1 %v9297_v18 }
 0x4f0   : > { %7836 = vmatprep.subr.bf16.mxu1 %v9298_v6 }
 0x4f3   : > { %7837 = vmatpush3.bf16.msra.mxu1 %v9299_v50 }
 0x5ba   : > { %v6578_v24 = vpop.f32.mrb[4].mxu0 }
 0x5bb   : > { %v7850_v25 = vadd.f32 %v6578_v24, %v6178_v30  ;;  %v6580_v27 = vpop.f32.mrb[5].mxu0 }
 0x5bc   : > { %v7851_v28 = vadd.f32 %v6580_v27, %v6182_v22  ;;  %v6582_v61 = vpop.f32.mrb[6].mxu0 }
 0x5bd   : > { %v6585_v57 = vmax.f32 %v7850_v25, 0.0  ;;  %v6583_v21 = vpop.f32.mrb[7].mxu0 }
 0x5be   : > { %v6586_v29 = vmax.f32 %v7851_v28, 0.0 }
 0x5bf   : > { %v6587_v32 = vrot.slane %v6585_v57, 4  ;;  %v6601_v55 = vmul.f32 %v6585_v57, %v6585_v57 }
 0x5c0   : > { %v6593_v33 = vrot.slane %v6586_v29, 4  ;;  %v6602_v56 = vmul.f32 %v6586_v29, %v6586_v29 }
 0x5c1   : > { %v6588_v1 = vadd.f32 %v6587_v32, %v6585_v57  ;;  %v6603_v35 = vrot.slane %v6601_v55, 4 }
 0x5c2   : > { %v6594_v52 = vadd.f32 %v6593_v33, %v6586_v29  ;;  %v6609_v37 = vrot.slane %v6602_v56, 4 }
 0x5c3   : > { %v6589_v11 = vrot.slane %v6588_v1, 2  ;;  %v6604_v38 = vadd.f32 %v6603_v35, %v6601_v55  ;;  %v6695_v55 = vsub.s32 6, %v9920_v5 }
 0x5c4   : > { %v6595_v39 = vrot.slane %v6594_v52, 2  ;;  %v6610_v40 = vadd.f32 %v6609_v37, %v6602_v56 }
 0x5c5   : > { %v6590_v41 = vadd.f32 %v6589_v11, %v6588_v1  ;;  %v6605_v42 = vrot.slane %v6604_v38, 2  ;;  %v6696_v56 = vrot.slane %v9925_v7, %v6695_v55 }
 0x5c6   : > { %v6596_v10 = vadd.f32 %v6595_v39, %v6594_v52  ;;  %v6611_v46 = vrot.slane %v6610_v40, 2 }
 0x5c7   : > { %v6591_v16 = vrot.slane %v6590_v41, 1  ;;  %v6606_v43 = vadd.f32 %v6605_v42, %v6604_v38 }
 0x5c8   : > { %v6597_v20 = vrot.slane %v6596_v10, 1  ;;  %v6612_v44 = vadd.f32 %v6611_v46, %v6610_v40 }
 0x5c9   : > { %v6592_v45 = vadd.f32 %v6591_v16, %v6590_v41  ;;  %v6607_v47 = vrot.slane %v6606_v43, 1 }
 0x5ca   : > { %v6598_v48 = vadd.f32 %v6597_v20, %v6596_v10  ;;  %v6613_v51 = vrot.slane %v6612_v44, 1 }
 0x5cb   : > { %v6599_v53 = vmul.f32 0.125, %v6592_v45  ;;  %v6608_v26 = vadd.f32 %v6607_v47, %v6606_v43 }
 0x5cc   : > { %v6614_v54 = vadd.f32 %v6613_v51, %v6612_v44  ;;  %v6600_v58 = vmul.f32 0.125, %v6598_v48 }
 0x5cd   : > { %v6615_v59 = vmul.f32 0.125, %v6608_v26  ;;  %v6617_v60 = vmul.f32 %v6599_v53, %v6599_v53 }
 0x5ce   : > { %v6616_v63 = vmul.f32 0.125, %v6614_v54  ;;  %v6618_v0 = vmul.f32 %v6600_v58, %v6600_v58 }
 0x5cf   : > { %v6619_v2 = vsub.f32 %v6615_v59, %v6617_v60 }
 0x5d0   : > { %v6620_v4 = vsub.f32 %v6616_v63, %v6618_v0 }
 0x5d1   : > { %v6621_v9 = vmax.f32 %v6619_v2, 0.0 }
 0x5d2   : > { %v6622_v34 = vmax.f32 %v6620_v4, 0.0 }
 0x5d3   : > { %v6623_v12 = vadd.f32 1e-05, %v6621_v9 }
 0x5d4   : > { %v6624_v62 = vadd.f32 1e-05, %v6622_v34 }
 0x5d5   : > { %9308 = vrsqrt.f32 %v6623_v12 }
 0x5d6   : > { %9310 = vrsqrt.f32 %v6624_v62 }
 0x5df   : > { %v9309_v23 = vpop.eup %9308 }
 0x5e0   : > { %v9311_v49 = vpop.eup %9310  ;;  %v6627_v8 = vmul.f32 %v9309_v23, %v9925_v7 }
 0x5e1   : > { %v6628_v31 = vmul.f32 %v9311_v49, %v9927_v36 }
 0x5e2   : > { %v6639_v13 = vmul.f32 %v6627_v8, %v6599_v53  ;;  %v6632_v15 = vrot.slane %v6627_v8, %v6631_v3 }
 0x5e3   : > { %v6640_v14 = vmul.f32 %v6628_v31, %v6600_v58  ;;  %v6636_v6 = vrot.slane %v6628_v31, %v6631_v3 }
 0x5e4   : > { %v6643_v18 = vrot.slane %v6639_v13, 7  ;;  %v6637_v22 = vmul.f32 %v6632_v15, %v6585_v57 }
 0x5e5   : > { %v6644_v50 = vrot.slane %v6640_v14, 7  ;;  %v6638_v25 = vmul.f32 %v6636_v6, %v6586_v29 }
 0x5e6   : > { %v6647_v19 = vsub.f32 %v9925_v7, %v6643_v18 }
 0x5e7   : > { %v6648_v30 = vsub.f32 %v9927_v36, %v6644_v50 }
 0x5e8   : > { %v6652_v24 = vrot.slane %v6647_v19, %v6651_v17 }
 0x5e9   : > { %v6656_v27 = vrot.slane %v6648_v30, %v6651_v17 }
 0x5ea   : > { %v6657_v28 = vadd.f32 %v6652_v24, %v6637_v22 }
 0x5eb   : > { %v6658_v61 = vadd.f32 %v6656_v27, %v6638_v25 }
 0x5ec   : > { %v6659_v32 = vpack.c.bf16 %v6657_v28, %v6657_v28 }
 0x5ed   : > { %v6660_v21 = vpack.c.bf16 %v6658_v61, %v6658_v61 }
 0x5ef   : > { %6825 = vmatprep.mubr.bf16.mxu1 %v6660_v21 }
 0x5f0   : > { %6826 = vmatmul.mubr.bf16.vlgmr.msra.gmra.mrb[8].mxu1 %v6659_v32 }
 0x6c3   : > { %v7838_v33 = vpop.f32.mrb[8].mxu1 }
 0x6c4   : > { %v7839_v36 = vpop.f32.mrb[9].mxu1 }
 0x6c5   : > { %v7840_v57 = vadd.f32 %v7839_v36, %v7838_v33  ;;  %v7841_v29 = vpop.f32.mrb[10].mxu1 }
 0x6c6   : > { %v7842_v1 = vpop.f32.mrb[11].mxu1 }
 0x6c7   : > { %v6828_v35 = vadd.f32 %v7840_v57, %v6696_v56 }
 0x6c9   : > { %6833 = vst [vmem:[%s296_s16] sm:$0xff] %v6828_v35 }
 0x6ca   : > { %9467 = shalt.err (!%p9464_p12)
}
 0x6cb   : > { %s9468_s29 = scalar_lea.hbm %s9971_s15, 128  ;;  %s9472_s8 = scalar_lea.hbm %s10020_s5, 256 }
 0x6cc   : > { %p9469_p13 = scmp.ne.s32.totalorder %s9971_s15, %s9468_s29  ;;  %p9473_p9 = scmp.lt.u32.totalorder %s9971_s15, %s10020_s5 }
 0x6cd   : > { %p9474_p4 = scmp.lt.u32.totalorder %s9472_s8, %s9468_s29  ;;  %p9476_p0 = scmp.lt.u32.totalorder %s9468_s29, %s9971_s15 }
 0x6ce   : > { %p9470_p3 = pnand %p9469_p13, %p10037_p6 }
 0x6cf   : > { %p9475_p8 = por %p9474_p4, %p9473_p9 }
 0x6d0   : > { %p9471_p7 = pneg %p9470_p3 }
 0x6d1   : > { %p9477_p2 = por %p9476_p0, %p9475_p8 }
 0x6d3   : > { %p9478_p5 = pnand %p9477_p2, %p9471_p7 }
 0x6d5   : > { %9481 = shalt.err (!%p9478_p5)
}
 0x6d6   : > { %7961 = dma.vmem_to_hbm [thread:$0]  (%p10037_p6), %s9973_s26, 128, %s9971_s15, %s6835_s17  }
 0x6d7 PF: > { %s6860_s10 = sand.u32 1, %s9516_s18   ;;  %p10038_p10 = scmp.ne.s32.totalorder %s10030_s13, 0 }
 0x6d8   : > { %p10039_p1 = scmp.ge.s32.totalorder %s9528_s21, 2  ;;  %s6861_s16 = scalar_lea.sflag [#allocation4], %s6860_s10 }
 0x6da   : > { %p7981_p11 = pnand %p10039_p1, %p10038_p10 }
 0x6dc   : > { %9511 = dma.done.wait (!%p7981_p11), %s6861_s16, 128  }
 0x6dd   : > { %9513 = vsyncadd (!%p7981_p11), %s6861_s16, 4294967168  ;;  %p20_p12 = scmp.ge.s32.totalorder %s9708_s28, 4   ;;  %s10040_s18 = smov %s9520_s19 }
 0x6de   : > { %s10041_s19 = smov %s9524_s20  ;;  %s10042_s20 = smov %s9719_s9 }
 0x6df   : > { %s10043_s21 = smov %s9708_s28  ;;  %22 = sbr.rel (!%p20_p12) target bundleno = 7 (0x7), region = 101 }
 0x6e6   :  { %6866 = vsyncpa [#allocation3], 1 }
 0x6e7   :  { %6868 = vsyncpa [#allocation3 + $0x1], 1 }
 0x6e8   :  { %6869 = vsyncpa [#allocation6], 1 }
 0x6e9   :  { %6870 = vsyncpa [#allocation9], 1 }
 0x6ea   :  { %6871 = vsyncpa [#allocation4], 1 }
 0x6eb   :  { %6873 = vsyncpa [#allocation4 + $0x1], 1 }

</bundles_post_ra>
